<compile_context>
chip_gen: v5e
topology: v5e:2x2
jax: 0.10.0
libtpu: 0.0.40
codegen_flags: <defaults>
</compile_context>

<pallas_src>
import jax
import jax.numpy as jnp
from jax.experimental import pallas as pl
from jax.experimental.pallas import tpu as pltpu

B = 2          # number of graphs
N = 128        # nodes per graph (lane-aligned)
BIN_NUM = 8    # histogram bins
STEP_NUM = 3   # transition-matrix steps


# ----------------------------------------------------------------------------
# single fused kernel: one grid step per graph, all outputs at once
# ----------------------------------------------------------------------------
def _make_fused_kernel(step_num):
    def kern(adj_ref, center_ref, width_ref,
             a3_ref, trinode_ref, tri_ref, sq_ref, tp_ref, hist_ref):
        a = adj_ref[0]                                        # (N, N) f32
        n = a.shape[0]

        # eye mask built once, reused by every consumer
        row = jax.lax.broadcasted_iota(jnp.int32, (n, n), 0)
        col = jax.lax.broadcasted_iota(jnp.int32, (n, n), 1)
        eye = (row == col).astype(a.dtype)

        # ---- ThreeStepPath / TrianglesOfEachNode (zero-diag adjacency powers)
        # Entries are small non-negative integers -> exact in bf16 operands
        # with f32 accumulation.
        p0 = a * (1.0 - eye)
        p0_bf = p0.astype(jnp.bfloat16)
        a2 = jnp.dot(p0_bf, p0_bf, preferred_element_type=jnp.float32)
        a3 = jnp.dot(a2.astype(jnp.bfloat16), p0_bf,
                     preferred_element_type=jnp.float32)
        a3_ref[0] = a3.astype(a3_ref.dtype)
        trinode_ref[0, 0, :] = (jnp.sum(a3 * eye, axis=1) / 6.0
                                ).astype(trinode_ref.dtype)

        # ---- tri / square counts (uses adj - I, like the PyTorch code) -----
        # Only the diagonals are needed, so skip the full matmuls:
        #   diag(two @ pm)[i]  = sum_k two[i,k] * pm[k,i]
        #   diag(two @ two)[i] = sum_k two[i,k] * two[k,i]
        pm = a - eye
        pm_bf = pm.astype(jnp.bfloat16)
        two = jnp.dot(pm_bf, pm_bf, preferred_element_type=jnp.float32)
        pm_t = jnp.transpose(pm)
        two_t = jnp.transpose(two)
        tri_ref[0, 0, :] = jnp.sum(two * pm_t, axis=-1).astype(tri_ref.dtype)
        sq_ref[0, 0, :] = jnp.sum(two * two_t, axis=-1).astype(sq_ref.dtype)

        # ---- S-step transition probability matrices (keep f32: not integers)
        rowsum = jnp.sum(a, axis=1, keepdims=True)            # (N, 1) torch .sum(2)
        p1 = a * (1.0 / jnp.maximum(rowsum, 1.0))             # clamp(min=1) ** -1
        tp_ref[0, 0] = p1.astype(tp_ref.dtype)
        prev = p1
        for i in range(1, step_num):
            prev = jnp.dot(p1, prev, preferred_element_type=jnp.float32)
            tp_ref[0, i] = prev.astype(tp_ref.dtype)

        # ---- degree histograms (lane-dense: nodes on the lane axis) --------
        c = center_ref[...]                                   # (BIN_NUM, 1)
        w = width_ref[...]                                    # (BIN_NUM, 1)
        in_deg = jnp.sum(a, axis=1).reshape(1, n)             # torch adj[i].sum(1)
        out_deg = jnp.sum(a, axis=0).reshape(1, n)            # torch adj[i].sum(0)

        def hist(deg_row):                                    # (1, N) -> (BIN_NUM,)
            score = jnp.maximum(1.0 - jnp.abs(deg_row - c) * w, 0.0)  # (BIN_NUM, N)
            return jnp.sum(score, axis=-1)

        hist_ref[0, 0, :] = hist(in_deg).astype(hist_ref.dtype)
        hist_ref[0, 1, :] = hist(out_deg).astype(hist_ref.dtype)

    return kern


def fused_graph_props(adj, center_col, width_col, step_num):
    """Runs the fused kernel.  center_col / width_col are (BIN_NUM, 1) f32."""
    b, n, _ = adj.shape
    m = center_col.shape[0]
    # TODO(synk): on v7x use dimension_semantics=(pltpu.CORE_PARALLEL,) to split
    # the batch axis across the two TensorCores; "parallel" is kept here for
    # portability across v5e/v6e/v7x.
    return pl.pallas_call(
        _make_fused_kernel(step_num),
        out_shape=(jax.ShapeDtypeStruct((b, n, n), jnp.float32),          # A^3
                   jax.ShapeDtypeStruct((b, 1, n), jnp.float32),          # tri/node
                   jax.ShapeDtypeStruct((b, 1, n), jnp.float32),          # tri diag
                   jax.ShapeDtypeStruct((b, 1, n), jnp.float32),          # sq diag
                   jax.ShapeDtypeStruct((b, step_num, n, n), jnp.float32),# trans mats
                   jax.ShapeDtypeStruct((b, 2, m), jnp.float32)),         # in/out hist
        grid=(b,),
        in_specs=[pl.BlockSpec((1, n, n), lambda i: (i, 0, 0)),
                  pl.BlockSpec((m, 1), lambda i: (0, 0)),
                  pl.BlockSpec((m, 1), lambda i: (0, 0))],
        out_specs=(pl.BlockSpec((1, n, n), lambda i: (i, 0, 0)),
                   pl.BlockSpec((1, 1, n), lambda i: (i, 0, 0)),
                   pl.BlockSpec((1, 1, n), lambda i: (i, 0, 0)),
                   pl.BlockSpec((1, 1, n), lambda i: (i, 0, 0)),
                   pl.BlockSpec((1, step_num, n, n), lambda i: (i, 0, 0, 0)),
                   pl.BlockSpec((1, 2, m), lambda i: (i, 0, 0))),
        compiler_params=pltpu.CompilerParams(dimension_semantics=("parallel",)),
    )(adj, center_col, width_col)


# ----------------------------------------------------------------------------
# Python-side equivalent of the PyTorch `kernel` module
# ----------------------------------------------------------------------------
class GraphKernel:
    def __init__(self, kernel_type, degree_bin_width, degree_bin_center,
                 step_num=STEP_NUM):
        self.kernel_type = list(kernel_type)
        # bins live on sublanes inside the kernel -> store as (BIN_NUM, 1)
        self.bin_width = jnp.asarray(degree_bin_width, jnp.float32).reshape(-1, 1)
        self.bin_center = jnp.asarray(degree_bin_center, jnp.float32).reshape(-1, 1)
        self.step_num = step_num
        # TODO(synk): the 'RPF' branch raises in the PyTorch source itself; not implemented.

    def __call__(self, adj):
        a3, trinode, tri, sq, tp, hist = fused_graph_props(
            adj, self.bin_center, self.bin_width, self.step_num)
        trinode = trinode[:, 0, :]
        tri = tri[:, 0, :]
        sq = sq[:, 0, :]

        vec = []
        for k in self.kernel_type:
            if k == 'TotalNumberOfTriangles':
                vec.append(jnp.sum(trinode, axis=-1))     # glue: sum over nodes
            if k == 'in_degree_dist':
                vec.append(hist[:, 0, :])
            if k == 'out_degree_dist':
                vec.append(hist[:, 1, :])
            if k == 'trans_matrix':
                vec.extend([tp[:, i] for i in range(self.step_num)])
            if k == 'tri':
                vec.append(tri)
                vec.append(sq)
            if k == 'TrianglesOfEachNode':
                vec.append(trinode)
            if k == 'ThreeStepPath':
                vec.append(a3)
        return vec


# ----------------------------------------------------------------------------
# pure-JAX reference (mirrors the PyTorch math) for a correctness check
# ----------------------------------------------------------------------------
def ref_forward(adj, kernel_type, center, width, s):
    n = adj.shape[-1]
    eye = jnp.eye(n, dtype=adj.dtype)
    c = center.reshape(1, -1, 1)
    w = width.reshape(1, -1, 1)

    def histo(deg):                                   # deg: (B, N)
        score = 1.0 - jnp.abs(deg[:, None, :] - c) * w
        return jnp.maximum(score, 0.0).sum(-1)

    vec = []
    for k in kernel_type:
        if k == 'TotalNumberOfTriangles':
            p = adj * (1 - eye)
            a3 = p @ p @ p
            vec.append(jnp.diagonal(a3, axis1=-2, axis2=-1).sum(-1) / 6.0)
        if k == 'in_degree_dist':
            vec.append(histo(adj.sum(2)))
        if k == 'out_degree_dist':
            vec.append(histo(adj.sum(1)))
        if k == 'trans_matrix':
            p1 = adj * (1.0 / jnp.maximum(adj.sum(2), 1.0))[:, :, None]
            tp = [p1]
            for _ in range(s - 1):
                tp.append(jnp.matmul(p1, tp[-1]))
            vec.extend(tp)
        if k == 'tri':
            p = adj - eye
            two = p @ p
            vec.append(jnp.diagonal(two @ p, axis1=-2, axis2=-1))
            vec.append(jnp.diagonal(two @ two, axis1=-2, axis2=-1))
        if k == 'TrianglesOfEachNode':
            p = adj * (1 - eye)
            a3 = p @ p @ p
            vec.append(jnp.diagonal(a3, axis1=-2, axis2=-1) / 6.0)
        if k == 'ThreeStepPath':
            p = adj * (1 - eye)
            vec.append(p @ p @ p)
    return vec


if __name__ == "__main__":
    key = jax.random.PRNGKey(0)
    adj = (jax.random.uniform(key, (B, N, N)) > 0.7).astype(jnp.float32)

    # deterministic histogram parameters (hat-function bins over degree range)
    centers = jnp.linspace(0.0, float(N), BIN_NUM, dtype=jnp.float32)
    widths = jnp.full((BIN_NUM,), float(BIN_NUM - 1) / float(N), dtype=jnp.float32)

    kernel_type = ['TotalNumberOfTriangles', 'in_degree_dist', 'out_degree_dist',
                   'trans_matrix', 'tri', 'TrianglesOfEachNode', 'ThreeStepPath']

    gk = GraphKernel(kernel_type, widths, centers, STEP_NUM)
    out = gk(adj)
    out = jax.block_until_ready(out)

    ref = ref_forward(adj, kernel_type, centers, widths, STEP_NUM)
    assert len(out) == len(ref), (len(out), len(ref))
    for o, r in zip(out, ref):
        assert o.shape == r.shape, (o.shape, r.shape)
        assert jnp.allclose(o, r, rtol=1e-3, atol=1e-2), float(jnp.max(jnp.abs(o - r)))

    print("KERNEL_OK")
</pallas_src>

<mosaic_0001>
module attributes {stable_mosaic.version = 11 : i64} {
  func.func @kern(%arg0: i32, %arg1: memref<1x128x128xf32, #tpu.memory_space<vmem>>, %arg2: memref<8x1xf32, #tpu.memory_space<vmem>>, %arg3: memref<8x1xf32, #tpu.memory_space<vmem>>, %arg4: memref<1x128x128xf32, #tpu.memory_space<vmem>>, %arg5: memref<1x1x128xf32, #tpu.memory_space<vmem>>, %arg6: memref<1x1x128xf32, #tpu.memory_space<vmem>>, %arg7: memref<1x1x128xf32, #tpu.memory_space<vmem>>, %arg8: memref<1x3x128x128xf32, #tpu.memory_space<vmem>>, %arg9: memref<1x2x8xf32, #tpu.memory_space<vmem>>) attributes {dimension_semantics = [#tpu.dimension_semantics<parallel>], iteration_bounds = array<i64: 2>, scalar_prefetch = 0 : i64, scratch_operands = 0 : i64, tpu.core_type = #tpu.core_type<tc>, window_params = [{transform_indices = @transform_0, window_bounds = array<i64: 1, 128, 128>}, {pipeline_mode = #tpu.pipeline_mode<synchronous>, transform_indices = @transform_1, window_bounds = array<i64: 8, 1>}, {pipeline_mode = #tpu.pipeline_mode<synchronous>, transform_indices = @transform_2, window_bounds = array<i64: 8, 1>}, {transform_indices = @transform_3, window_bounds = array<i64: 1, 128, 128>}, {transform_indices = @transform_4, window_bounds = array<i64: 1, 1, 128>}, {transform_indices = @transform_5, window_bounds = array<i64: 1, 1, 128>}, {transform_indices = @transform_6, window_bounds = array<i64: 1, 1, 128>}, {transform_indices = @transform_7, window_bounds = array<i64: 1, 3, 128, 128>}, {transform_indices = @transform_8, window_bounds = array<i64: 1, 2, 8>}]} {
    %c0 = arith.constant 0 : index
    %c0_0 = arith.constant 0 : index
    %c0_1 = arith.constant 0 : index
    %0 = vector.load %arg1[%c0, %c0_0, %c0_1] : memref<1x128x128xf32, #tpu.memory_space<vmem>>, vector<1x128x128xf32>
    %1 = vector.shape_cast %0 : vector<1x128x128xf32> to vector<128x128xf32>
    %2 = tpu.iota {dimensions = array<i32: 0>} : vector<128x128xi32>
    %3 = tpu.iota {dimensions = array<i32: 1>} : vector<128x128xi32>
    %4 = arith.cmpi eq, %2, %3 : vector<128x128xi32>
    %5 = arith.extui %4 : vector<128x128xi1> to vector<128x128xi32>
    %6 = arith.sitofp %5 : vector<128x128xi32> to vector<128x128xf32>
    %cst = arith.constant 1.000000e+00 : f32
    %7 = vector.broadcast %cst : f32 to vector<128x128xf32>
    %8 = arith.subf %7, %6 : vector<128x128xf32>
    %9 = arith.mulf %1, %8 : vector<128x128xf32>
    %10 = arith.truncf %9 : vector<128x128xf32> to vector<128x128xbf16>
    %cst_2 = arith.constant dense<0.000000e+00> : vector<128x128xf32>
    %11 = tpu.matmul %10, %10, %cst_2 {dimension_numbers = #tpu.dot_dimension_numbers<[1], [0], [0], [1], [0, 0, 1, 1], [], []>} : vector<128x128xbf16>, vector<128x128xbf16>, vector<128x128xf32> -> vector<128x128xf32>
    %12 = arith.truncf %11 : vector<128x128xf32> to vector<128x128xbf16>
    %cst_3 = arith.constant dense<0.000000e+00> : vector<128x128xf32>
    %13 = tpu.matmul %12, %10, %cst_3 {dimension_numbers = #tpu.dot_dimension_numbers<[1], [0], [0], [1], [0, 0, 1, 1], [], []>} : vector<128x128xbf16>, vector<128x128xbf16>, vector<128x128xf32> -> vector<128x128xf32>
    %c0_4 = arith.constant 0 : index
    %c0_5 = arith.constant 0 : index
    %c0_6 = arith.constant 0 : index
    %14 = vector.load %arg4[%c0_4, %c0_5, %c0_6] : memref<1x128x128xf32, #tpu.memory_space<vmem>>, vector<1x128x128xf32>
    %15 = vector.shape_cast %14 : vector<1x128x128xf32> to vector<128x128xf32>
    %16 = vector.shape_cast %13 : vector<128x128xf32> to vector<1x128x128xf32>
    tpu.vector_store %arg4[%c0_4, %c0_5, %c0_6], %16 {strides = array<i32>} : memref<1x128x128xf32, #tpu.memory_space<vmem>>, vector<1x128x128xf32>,
    %17 = arith.mulf %13, %6 : vector<128x128xf32>
    %cst_7 = arith.constant dense<0.000000e+00> : vector<128xf32>
    %18 = vector.multi_reduction <add>, %17, %cst_7 [1] : vector<128x128xf32> to vector<128xf32>
    %cst_8 = arith.constant 6.000000e+00 : f32
    %19 = vector.broadcast %cst_8 : f32 to vector<128xf32>
    %20 = arith.divf %18, %19 : vector<128xf32>
    %c0_9 = arith.constant 0 : index
    %c0_10 = arith.constant 0 : index
    %c0_11 = arith.constant 0 : index
    %21 = vector.load %arg5[%c0_9, %c0_10, %c0_11] : memref<1x1x128xf32, #tpu.memory_space<vmem>>, vector<1x1x128xf32>
    %22 = vector.shape_cast %21 : vector<1x1x128xf32> to vector<128xf32>
    %23 = vector.shape_cast %20 : vector<128xf32> to vector<1x1x128xf32>
    tpu.vector_store %arg5[%c0_9, %c0_10, %c0_11], %23 {strides = array<i32>} : memref<1x1x128xf32, #tpu.memory_space<vmem>>, vector<1x1x128xf32>,
    %24 = arith.subf %1, %6 : vector<128x128xf32>
    %25 = arith.truncf %24 : vector<128x128xf32> to vector<128x128xbf16>
    %cst_12 = arith.constant dense<0.000000e+00> : vector<128x128xf32>
    %26 = tpu.matmul %25, %25, %cst_12 {dimension_numbers = #tpu.dot_dimension_numbers<[1], [0], [0], [1], [0, 0, 1, 1], [], []>} : vector<128x128xbf16>, vector<128x128xbf16>, vector<128x128xf32> -> vector<128x128xf32>
    %27 = tpu.transpose %24, [1, 0] : vector<128x128xf32> -> vector<128x128xf32>
    %28 = tpu.transpose %26, [1, 0] : vector<128x128xf32> -> vector<128x128xf32>
    %29 = arith.mulf %26, %27 : vector<128x128xf32>
    %cst_13 = arith.constant dense<0.000000e+00> : vector<128xf32>
    %30 = vector.multi_reduction <add>, %29, %cst_13 [1] : vector<128x128xf32> to vector<128xf32>
    %c0_14 = arith.constant 0 : index
    %c0_15 = arith.constant 0 : index
    %c0_16 = arith.constant 0 : index
    %31 = vector.load %arg6[%c0_14, %c0_15, %c0_16] : memref<1x1x128xf32, #tpu.memory_space<vmem>>, vector<1x1x128xf32>
    %32 = vector.shape_cast %31 : vector<1x1x128xf32> to vector<128xf32>
    %33 = vector.shape_cast %30 : vector<128xf32> to vector<1x1x128xf32>
    tpu.vector_store %arg6[%c0_14, %c0_15, %c0_16], %33 {strides = array<i32>} : memref<1x1x128xf32, #tpu.memory_space<vmem>>, vector<1x1x128xf32>,
    %34 = arith.mulf %26, %28 : vector<128x128xf32>
    %cst_17 = arith.constant dense<0.000000e+00> : vector<128xf32>
    %35 = vector.multi_reduction <add>, %34, %cst_17 [1] : vector<128x128xf32> to vector<128xf32>
    %c0_18 = arith.constant 0 : index
    %c0_19 = arith.constant 0 : index
    %c0_20 = arith.constant 0 : index
    %36 = vector.load %arg7[%c0_18, %c0_19, %c0_20] : memref<1x1x128xf32, #tpu.memory_space<vmem>>, vector<1x1x128xf32>
    %37 = vector.shape_cast %36 : vector<1x1x128xf32> to vector<128xf32>
    %38 = vector.shape_cast %35 : vector<128xf32> to vector<1x1x128xf32>
    tpu.vector_store %arg7[%c0_18, %c0_19, %c0_20], %38 {strides = array<i32>} : memref<1x1x128xf32, #tpu.memory_space<vmem>>, vector<1x1x128xf32>,
    %cst_21 = arith.constant dense<0.000000e+00> : vector<128xf32>
    %39 = vector.multi_reduction <add>, %1, %cst_21 [1] : vector<128x128xf32> to vector<128xf32>
    %40 = vector.shape_cast %39 : vector<128xf32> to vector<128x1xf32>
    %cst_22 = arith.constant 1.000000e+00 : f32
    %41 = vector.broadcast %cst_22 : f32 to vector<128x1xf32>
    %42 = arith.maximumf %40, %41 : vector<128x1xf32>
    %cst_23 = arith.constant 1.000000e+00 : f32
    %43 = vector.broadcast %cst_23 : f32 to vector<128x1xf32>
    %44 = arith.divf %43, %42 : vector<128x1xf32>
    %45 = vector.broadcast %44 : vector<128x1xf32> to vector<128x128xf32>
    %46 = arith.mulf %1, %45 : vector<128x128xf32>
    %c0_24 = arith.constant 0 : index
    %c0_25 = arith.constant 0 : index
    %c0_26 = arith.constant 0 : index
    %c0_27 = arith.constant 0 : index
    %47 = vector.load %arg8[%c0_24, %c0_25, %c0_26, %c0_27] : memref<1x3x128x128xf32, #tpu.memory_space<vmem>>, vector<1x1x128x128xf32>
    %48 = vector.shape_cast %47 : vector<1x1x128x128xf32> to vector<128x128xf32>
    %49 = vector.shape_cast %46 : vector<128x128xf32> to vector<1x1x128x128xf32>
    tpu.vector_store %arg8[%c0_24, %c0_25, %c0_26, %c0_27], %49 {strides = array<i32>} : memref<1x3x128x128xf32, #tpu.memory_space<vmem>>, vector<1x1x128x128xf32>,
    %cst_28 = arith.constant dense<0.000000e+00> : vector<128x128xf32>
    %50 = tpu.matmul %46, %46, %cst_28 {dimension_numbers = #tpu.dot_dimension_numbers<[1], [0], [0], [1], [0, 0, 1, 1], [], []>} : vector<128x128xf32>, vector<128x128xf32>, vector<128x128xf32> -> vector<128x128xf32>
    %c0_29 = arith.constant 0 : index
    %c1 = arith.constant 1 : index
    %c0_30 = arith.constant 0 : index
    %c0_31 = arith.constant 0 : index
    %51 = vector.load %arg8[%c0_29, %c1, %c0_30, %c0_31] : memref<1x3x128x128xf32, #tpu.memory_space<vmem>>, vector<1x1x128x128xf32>
    %52 = vector.shape_cast %51 : vector<1x1x128x128xf32> to vector<128x128xf32>
    %53 = vector.shape_cast %50 : vector<128x128xf32> to vector<1x1x128x128xf32>
    tpu.vector_store %arg8[%c0_29, %c1, %c0_30, %c0_31], %53 {strides = array<i32>} : memref<1x3x128x128xf32, #tpu.memory_space<vmem>>, vector<1x1x128x128xf32>,
    %cst_32 = arith.constant dense<0.000000e+00> : vector<128x128xf32>
    %54 = tpu.matmul %46, %50, %cst_32 {dimension_numbers = #tpu.dot_dimension_numbers<[1], [0], [0], [1], [0, 0, 1, 1], [], []>} : vector<128x128xf32>, vector<128x128xf32>, vector<128x128xf32> -> vector<128x128xf32>
    %c0_33 = arith.constant 0 : index
    %c2 = arith.constant 2 : index
    %c0_34 = arith.constant 0 : index
    %c0_35 = arith.constant 0 : index
    %55 = vector.load %arg8[%c0_33, %c2, %c0_34, %c0_35] : memref<1x3x128x128xf32, #tpu.memory_space<vmem>>, vector<1x1x128x128xf32>
    %56 = vector.shape_cast %55 : vector<1x1x128x128xf32> to vector<128x128xf32>
    %57 = vector.shape_cast %54 : vector<128x128xf32> to vector<1x1x128x128xf32>
    tpu.vector_store %arg8[%c0_33, %c2, %c0_34, %c0_35], %57 {strides = array<i32>} : memref<1x3x128x128xf32, #tpu.memory_space<vmem>>, vector<1x1x128x128xf32>,
    %c0_36 = arith.constant 0 : index
    %c0_37 = arith.constant 0 : index
    %58 = vector.load %arg2[%c0_36, %c0_37] : memref<8x1xf32, #tpu.memory_space<vmem>>, vector<8x1xf32>
    %c0_38 = arith.constant 0 : index
    %c0_39 = arith.constant 0 : index
    %59 = vector.load %arg3[%c0_38, %c0_39] : memref<8x1xf32, #tpu.memory_space<vmem>>, vector<8x1xf32>
    %cst_40 = arith.constant dense<0.000000e+00> : vector<128xf32>
    %60 = vector.multi_reduction <add>, %1, %cst_40 [1] : vector<128x128xf32> to vector<128xf32>
    %61 = vector.shape_cast %60 : vector<128xf32> to vector<1x128xf32>
    %cst_41 = arith.constant dense<0.000000e+00> : vector<128xf32>
    %62 = vector.multi_reduction <add>, %1, %cst_41 [0] : vector<128x128xf32> to vector<128xf32>
    %63 = vector.shape_cast %62 : vector<128xf32> to vector<1x128xf32>
    %64 = vector.broadcast %61 : vector<1x128xf32> to vector<8x128xf32>
    %65 = vector.broadcast %58 : vector<8x1xf32> to vector<8x128xf32>
    %66 = arith.subf %64, %65 : vector<8x128xf32>
    %67 = math.absf %66 : vector<8x128xf32>
    %68 = vector.broadcast %59 : vector<8x1xf32> to vector<8x128xf32>
    %69 = arith.mulf %67, %68 : vector<8x128xf32>
    %cst_42 = arith.constant 1.000000e+00 : f32
    %70 = vector.broadcast %cst_42 : f32 to vector<8x128xf32>
    %71 = arith.subf %70, %69 : vector<8x128xf32>
    %cst_43 = arith.constant 0.000000e+00 : f32
    %72 = vector.broadcast %cst_43 : f32 to vector<8x128xf32>
    %73 = arith.maximumf %71, %72 : vector<8x128xf32>
    %cst_44 = arith.constant dense<0.000000e+00> : vector<8xf32>
    %74 = vector.multi_reduction <add>, %73, %cst_44 [1] : vector<8x128xf32> to vector<8xf32>
    %c0_45 = arith.constant 0 : index
    %c0_46 = arith.constant 0 : index
    %c0_47 = arith.constant 0 : index
    %75 = vector.load %arg9[%c0_45, %c0_46, %c0_47] : memref<1x2x8xf32, #tpu.memory_space<vmem>>, vector<1x1x8xf32>
    %76 = vector.shape_cast %75 : vector<1x1x8xf32> to vector<8xf32>
    %77 = vector.shape_cast %74 : vector<8xf32> to vector<1x1x8xf32>
    tpu.vector_store %arg9[%c0_45, %c0_46, %c0_47], %77 {strides = array<i32>} : memref<1x2x8xf32, #tpu.memory_space<vmem>>, vector<1x1x8xf32>,
    %78 = vector.broadcast %63 : vector<1x128xf32> to vector<8x128xf32>
    %79 = vector.broadcast %58 : vector<8x1xf32> to vector<8x128xf32>
    %80 = arith.subf %78, %79 : vector<8x128xf32>
    %81 = math.absf %80 : vector<8x128xf32>
    %82 = vector.broadcast %59 : vector<8x1xf32> to vector<8x128xf32>
    %83 = arith.mulf %81, %82 : vector<8x128xf32>
    %cst_48 = arith.constant 1.000000e+00 : f32
    %84 = vector.broadcast %cst_48 : f32 to vector<8x128xf32>
    %85 = arith.subf %84, %83 : vector<8x128xf32>
    %cst_49 = arith.constant 0.000000e+00 : f32
    %86 = vector.broadcast %cst_49 : f32 to vector<8x128xf32>
    %87 = arith.maximumf %85, %86 : vector<8x128xf32>
    %cst_50 = arith.constant dense<0.000000e+00> : vector<8xf32>
    %88 = vector.multi_reduction <add>, %87, %cst_50 [1] : vector<8x128xf32> to vector<8xf32>
    %c0_51 = arith.constant 0 : index
    %c1_52 = arith.constant 1 : index
    %c0_53 = arith.constant 0 : index
    %89 = vector.load %arg9[%c0_51, %c1_52, %c0_53] : memref<1x2x8xf32, #tpu.memory_space<vmem>>, vector<1x1x8xf32>
    %90 = vector.shape_cast %89 : vector<1x1x8xf32> to vector<8xf32>
    %91 = vector.shape_cast %88 : vector<8xf32> to vector<1x1x8xf32>
    tpu.vector_store %arg9[%c0_51, %c1_52, %c0_53], %91 {strides = array<i32>} : memref<1x2x8xf32, #tpu.memory_space<vmem>>, vector<1x1x8xf32>,
    return
  }
  func.func @transform_0(%arg0: i32) -> (i32, i32, i32) {
    %c0_i32 = arith.constant 0 : i32
    %c0_i32_0 = arith.constant 0 : i32
    %c0_i32_1 = arith.constant 0 : i32
    return %arg0, %c0_i32, %c0_i32_0 : i32, i32, i32
  }
  func.func @transform_1(%arg0: i32) -> (i32, i32) {
    %c0_i32 = arith.constant 0 : i32
    %c0_i32_0 = arith.constant 0 : i32
    %c0_i32_1 = arith.constant 0 : i32
    return %c0_i32, %c0_i32_0 : i32, i32
  }
  func.func @transform_2(%arg0: i32) -> (i32, i32) {
    %c0_i32 = arith.constant 0 : i32
    %c0_i32_0 = arith.constant 0 : i32
    %c0_i32_1 = arith.constant 0 : i32
    return %c0_i32, %c0_i32_0 : i32, i32
  }
  func.func @transform_3(%arg0: i32) -> (i32, i32, i32) {
    %c0_i32 = arith.constant 0 : i32
    %c0_i32_0 = arith.constant 0 : i32
    %c0_i32_1 = arith.constant 0 : i32
    return %arg0, %c0_i32, %c0_i32_0 : i32, i32, i32
  }
  func.func @transform_4(%arg0: i32) -> (i32, i32, i32) {
    %c0_i32 = arith.constant 0 : i32
    %c0_i32_0 = arith.constant 0 : i32
    %c0_i32_1 = arith.constant 0 : i32
    return %arg0, %c0_i32, %c0_i32_0 : i32, i32, i32
  }
  func.func @transform_5(%arg0: i32) -> (i32, i32, i32) {
    %c0_i32 = arith.constant 0 : i32
    %c0_i32_0 = arith.constant 0 : i32
    %c0_i32_1 = arith.constant 0 : i32
    return %arg0, %c0_i32, %c0_i32_0 : i32, i32, i32
  }
  func.func @transform_6(%arg0: i32) -> (i32, i32, i32) {
    %c0_i32 = arith.constant 0 : i32
    %c0_i32_0 = arith.constant 0 : i32
    %c0_i32_1 = arith.constant 0 : i32
    return %arg0, %c0_i32, %c0_i32_0 : i32, i32, i32
  }
  func.func @transform_7(%arg0: i32) -> (i32, i32, i32, i32) {
    %c0_i32 = arith.constant 0 : i32
    %c0_i32_0 = arith.constant 0 : i32
    %c0_i32_1 = arith.constant 0 : i32
    %c0_i32_2 = arith.constant 0 : i32
    return %arg0, %c0_i32, %c0_i32_0, %c0_i32_1 : i32, i32, i32, i32
  }
  func.func @transform_8(%arg0: i32) -> (i32, i32, i32) {
    %c0_i32 = arith.constant 0 : i32
    %c0_i32_0 = arith.constant 0 : i32
    %c0_i32_1 = arith.constant 0 : i32
    return %arg0, %c0_i32, %c0_i32_0 : i32, i32, i32
  }
}

</mosaic_0001>

<bundles_post_ra>
// kernel: tpu_custom_call.1
= control target key start
LH: loop header
LB: loop body
LE: loop exit
PB: predicated region body
PF: predicated region fallthrough
CT: control target
= control target key end

     0   :  { %s6469_s0 = inlined_call_operand.hbm [shape: f32[2,128,128], index: 0, kind: input, shape index: {}]   ;;  %s6470_s1 = inlined_call_operand.vmem [shape: f32[8,1], index: 1, kind: input, shape index: {}]   ;;  %s6471_s2 = inlined_call_operand.vmem [shape: f32[8,1], index: 2, kind: input, shape index: {}]   ;;  %s6472_s3 = inlined_call_operand.hbm [shape: f32[2,128,128], index: 3, kind: output, shape index: {0}]   ;;  %s6473_s4 = inlined_call_operand.hbm [shape: f32[2,1,128], index: 4, kind: output, shape index: {1}]   ;;  %s6474_s5 = inlined_call_operand.hbm [shape: f32[2,1,128], index: 5, kind: output, shape index: {2}]   ;;  %s6475_s6 = inlined_call_operand.hbm [shape: f32[2,1,128], index: 6, kind: output, shape index: {3}]   ;;  %s6476_s7 = inlined_call_operand.hbm [shape: f32[2,3,128,128], index: 7, kind: output, shape index: {4}]   ;;  %s6477_s8 = inlined_call_operand.hbm [shape: f32[2,2,8], index: 8, kind: output, shape index: {5}]  }
   0x1   :  { %6583 = sst [smem:[#allocation92_spill]] %s6469_s0 }
   0x2   :  { %6584 = sst [smem:[#allocation93_spill]] %s6470_s1 }
   0x3   :  { %6585 = sst [smem:[#allocation94_spill]] %s6471_s2 }
   0x4   :  { %6586 = sst [smem:[#allocation95_spill]] %s6472_s3 }
   0x5   :  { %6587 = sst [smem:[#allocation96_spill]] %s6473_s4 }
   0x6   :  { %6588 = sst [smem:[#allocation97_spill]] %s6475_s6 }
   0x7   :  { %14 = vsyncpa [#allocation3], 0 }
   0x8   :  { %16 = vsyncpa [#allocation3 + $0x1], 0 }
   0x9   :  { %17 = vsyncpa [#allocation4], 0 }
   0xa   :  { %19 = vsyncpa [#allocation4 + $0x1], 0 }
   0xb   :  { %20 = vsyncpa [#allocation7], 0 }
   0xc   :  { %22 = vsyncpa [#allocation7 + $0x1], 0 }
   0xd   :  { %23 = vsyncpa [#allocation10], 0 }
   0xe   :  { %25 = vsyncpa [#allocation10 + $0x1], 0 }
   0xf   :  { %26 = vsyncpa [#allocation13], 0 }
  0x10   :  { %28 = vsyncpa [#allocation13 + $0x1], 0  ;;  %s3944_s27 = smov 0   ;;  %s3946_s28 = smov 0  }
  0x11   :  { %s3948_s29 = smov 0   ;;  %s3950_s30 = smov 0  }
  0x12 LB: > { %6589 = sst [smem:[#allocation19_spill]] %s3886_s29  ;;  %s3965_s9 = sadd.s32 4294967295, %s3890_s30   ;;  %s3890_s30 = sphi %s3950_s30, %s6889_s30   ;;  %s3886_s29 = sphi %s3948_s29, %s6886_s29   ;;  %s3882_s28 = sphi %s3946_s28, %s6888_s28   ;;  %s3878_s27 = sphi %s3944_s27, %s6887_s27  }
  0x13   : > { %s6478_s10 = sadd.s32 4294967294, %s3890_s30   ;;  %s3969_s11 = sadd.s32 1, %s3890_s30  }
  0x14   : > { %s41_s12 = sadd.s32 1, %s3886_s29  ;;  %s38_s13 = ssub.s32 %s3890_s30, %s3969_s11 }
  0x15   : > { %p48_p0 = scmp.ne.s32.totalorder %s3886_s29, %s3882_s28  ;;  %p39_p1 = scmp.eq.s32.totalorder %s38_s13, 0 }
  0x16   : > { %p49_p2 = scmp.eq.s32.totalorder %s3890_s30, 0  ;;  %p54_p3 = scmp.ne.s32.totalorder %s3882_s28, %s3878_s27 }
  0x17   : > { %p55_p4 = scmp.eq.s32.totalorder %s3965_s9, 0  ;;  %p120_p7 = scmp.eq.s32.totalorder %s3965_s9, 1 }
  0x18   : > { %s3981_s14 = scalar_select %p39_p1, %s3886_s29, %s41_s12  }
  0x19   : > { %p3983_p5 = por %p49_p2, %p48_p0  ;;  %p3987_p6 = por %p55_p4, %p54_p3 }
  0x1a   : > { %6590 = sst [smem:[#allocation20_spill]] %s3981_s14  ;;  %p126_p8 = scmp.eq.s32.totalorder %s6478_s10, 1 }
  0x1b   : > { %p3532_p10 = scmp.lt.s32.totalorder %s3890_s30, 2  ;;  %p3996_p11 = por %p120_p7, %p48_p0 }
  0x1c   : > { %p4000_p12 = por %p126_p8, %p54_p3  ;;  %s282_s19 = sand.u32 1, %s3886_s29  }
  0x1d   : > { %s3467_s20 = sshll.u32 %s3890_s30, 7  ;;  %s3404_s21 = sshll.u32 %s282_s19, 7 }
  0x1e   : > { %s6595_s0 = sld [smem:[#allocation92_spill]]  ;;  %s286_s26 = scalar_lea.vmem [#allocation2], %s3404_s21 }
  0x1f   : > { %s294_s12 = sshll.u32 %s286_s26, 4  ;;  %p4011_p13 = pnand %p3532_p10, %p3983_p5  ;;  %s295_s12 = int_to_ptr.vmem [resolvable:$true] %s294_s12 }
  0x20   : > { %p3407_p0 = scmp.ge.s32.totalorder %s3890_s30, 1  ;;  %p302_p1 = scmp.lt.s32.totalorder %s3890_s30, 3 }
  0x21   : > { %s283_s10 = scalar_lea.sflag [#allocation3], %s282_s19  ;;  %p3646_p3 = pneg %p4011_p13 }
  0x24   : > { %s291_s24 = scalar_lea.hbm %s6595_s0, %s3467_s20  ;;  %s3649_s15 = scalar_lea.hbm %s6595_s0, 256 }
  0x25   : > { %s292_s25 = sshll.u32 %s291_s24, 4  ;;  %s293_s25 = int_to_ptr.hbm [resolvable:$true] %s292_s25 }
  0x26   : > { %s3642_s14 = sshra.s32 %s293_s25, 4  ;;  %s3643_s14 = int_to_ptr.hbm [resolvable:$true] %s3642_s14 }
  0x27   : > { %s3644_s29 = scalar_lea.hbm %s3643_s14, 128  ;;  %p3650_p5 = scmp.lt.s32.totalorder %s3643_s14, %s6595_s0 }
  0x28   : > { %p3645_p2 = scmp.ne.s32.totalorder %s3643_s14, %s3644_s29  ;;  %p3651_p8 = scmp.lt.s32.totalorder %s3649_s15, %s3644_s29 }
  0x2a   : > { %p3647_p4 = pnand %p3646_p3, %p3645_p2  ;;  %p3652_p10 = por %p3651_p8, %p3650_p5 }
  0x2c   : > { %p3648_p7 = pneg %p3647_p4 }
  0x2e   : > { %p3653_p9 = pnand %p3652_p10, %p3648_p7 }
  0x30   : > { %3656 = shalt.err (!%p3653_p9)
}
  0x31   : > { %s3892_s19 = smov 128   ;;  %s3893_s24 = smov 8  }
  0x32   : > { %3512 = dma.hbm_to_vmem [thread:$0]  (!%p4011_p13), %s293_s25, 2048, %s295_s12, %s283_s10, %s3892_s19, %s3892_s19, %s3893_s24  }
  0x33   : > { %p303_p2 = pnand %p3407_p0, %p302_p1 }
  0x35   : > { %306 = sbr.rel (%p303_p2) target bundleno = 1525 (0x5f5), region = 32 }
  0x3a   : > { %s4032_s26 = sand.u32 1, %s3882_s28  }
  0x3b   : > { %s3408_s29 = sshll.u32 %s4032_s26, 7  ;;  %s309_s14 = scalar_lea.sflag [#allocation3], %s4032_s26 }
  0x3c   : > { %s4038_s20 = scalar_lea.vmem [#allocation2], %s3408_s29 }
  0x3d   : > { %3857 = dma.done.wait (%p3987_p6), %s309_s14, 2048  }
  0x3e   : > { %3859 = vsyncadd (%p3987_p6), %s309_s14, 4294965248  ;;  %v384_v0 = vlaneseq  ;;  %v3894_v4 = vmov 0.0   ;;  %v4057_v8 = vld [vmem:[%s4038_s20] sm:$0xff]  ;;  %v4070_v12 = vld [vmem:[%s4038_s20 + $0x8] sm:$0xff]  ;;  %s6615_s2 = sld [smem:[#allocation94_spill]]  ;;  %s3493_s13 = smul.u32 384, %s4032_s26 }
  0x3f   : > { %1094 = vadd.xlane.f32.xlu0 %v4057_v8  ;;  %v4080_v15 = vld [vmem:[%s4038_s20 + $0x70] sm:$0xff]  ;;  %v4083_v16 = vld [vmem:[%s4038_s20 + $0x78] sm:$0xff]  ;;  %v4089_v18 = vld [vmem:[%s4038_s20 + $0x28] sm:$0xff]  ;;  %s6618_s1 = sld [smem:[#allocation93_spill]]  ;;  %s4745_s15 = scalar_lea.vmem [#allocation5], %s3408_s29 }
  0x40   : > { %v4044_v1 = vshrl.u32 %v384_v0, 7  ;;  %v4046_v2 = vand.u32 127, %v384_v0  ;;  %1104 = vadd.xlane.f32.xlu2 %v4089_v18  ;;  %v4104_v25 = vld [vmem:[%s4038_s20 + $0x60] sm:$0xff]  ;;  %v4111_v27 = vld [vmem:[%s4038_s20 + $0x68] sm:$0xff]  ;;  %v4118_v30 = vld [vmem:[%s4038_s20 + $0x10] sm:$0xff]  ;;  %s4474_s21 = scalar_lea.vmem [#allocation11], %s3493_s13 }
  0x41   : > { %v4143_v43 = vld [vmem:[%s4038_s20 + $0x50] sm:$0xff]  ;;  %v4150_v45 = vld [vmem:[%s4038_s20 + $0x40] sm:$0xff]  ;;  %v4158_v48 = vld [vmem:[%s4038_s20 + $0x58] sm:$0xff]  ;;  %s6580_s22 = scalar_lea.vmem [#allocation8], %s4032_s26  ;;  %s341_s23 = scalar_lea.vmem [#allocation6], %s4032_s26 }
  0x42   : > { %6597 = vst [vmem:[#allocation21_spill] sm:$0xff] %v4046_v2  ;;  %vm403_vm0 = vcmp.eq.s32.totalorder %v4044_v1, %v4046_v2  ;;  %v386_v3 = vadd.s32 8, %v4044_v1  ;;  %v399_v6 = vadd.s32 112, %v4044_v1  ;;  %v400_v7 = vadd.s32 120, %v4044_v1  ;;  %v4177_v54 = vld [vmem:[%s4038_s20 + $0x48] sm:$0xff]  ;;  %s6581_s19 = scalar_lea.vmem [#allocation9], %s4032_s26 }
  0x43   : > { %v4052_v5 = vsel %vm403_vm0, 1.0, %v3894_v4  ;;  %v387_v10 = vadd.s32 16, %v4044_v1  ;;  %v397_v11 = vadd.s32 96, %v4044_v1  ;;  %v398_v21 = vadd.s32 104, %v4044_v1  ;;  %s3410_s24 = sshll.u32 %s4032_s26, 1  ;;  %s6582_s14 = sand.u32 1, %s3965_s9  }
  0x44   : > { %6598 = vst [vmem:[#allocation22_spill] sm:$0xff] %v4052_v5  ;;  %vm404_vm1 = vcmp.eq.s32.totalorder %v386_v3, %v4046_v2  ;;  %vm417_vm2 = vcmp.eq.s32.totalorder %v399_v6, %v4046_v2  ;;  %v4063_v9 = vsub.f32 %v4057_v8, %v4052_v5  ;;  %vm418_vm3 = vcmp.eq.s32.totalorder %v400_v7, %v4046_v2  ;;  %v4212_v7 = vld [vmem:[%s4038_s20 + $0x18] sm:$0xff]  ;;  %s6301_s29 = scalar_lea.vmem [#allocation12], %s3410_s24  ;;  %s6875_s4 = sld [smem:[#allocation96_spill]] }
  0x45   : > { %v4073_v13 = vsel %vm404_vm1, 1.0, %v3894_v4  ;;  %v4077_v14 = vsel %vm417_vm2, 1.0, %v3894_v4  ;;  %v4086_v17 = vsel %vm418_vm3, 1.0, %v3894_v4  ;;  %vm405_vm4 = vcmp.eq.s32.totalorder %v387_v10, %v4046_v2  ;;  %s3127_s25 = sshll.u32 %s341_s23, 4  ;;  %s6333_s13 = scalar_lea.sflag [#allocation7], %s6582_s14  ;;  %s3128_s25 = int_to_ptr.vmem [resolvable:$true] %s3127_s25 }
  0x46   : > { %836 = vxpose.xlu1.b32.start [1/16] %v4063_v9, 128  ;;  %6599 = vst [vmem:[#allocation23_spill] sm:$0xff] %v4073_v13  ;;  %v465_v19 = vsub.f32 1.0, %v4077_v14  ;;  %v466_v20 = vsub.f32 1.0, %v4086_v17  ;;  %v4097_v22 = vsub.f32 %v4070_v12, %v4073_v13  ;;  %vm415_vm5 = vcmp.eq.s32.totalorder %v397_v11, %v4046_v2  ;;  %v4218_v11 = vld [vmem:[%s4038_s20 + $0x30] sm:$0xff] }
  0x47   : > { %6600 = vst [vmem:[#allocation24_spill] sm:$0xff] %v4077_v14  ;;  %vm416_vm6 = vcmp.eq.s32.totalorder %v398_v21, %v4046_v2  ;;  %v4108_v26 = vsel %vm415_vm5, 1.0, %v3894_v4  ;;  %v4121_v31 = vsel %vm405_vm4, 1.0, %v3894_v4  ;;  %v395_v34 = vadd.s32 80, %v4044_v1  ;;  %1096 = vadd.xlane.f32.xlu0 %v4070_v12 }
  0x48   : > { %6601 = vst [vmem:[#allocation25_spill] sm:$0xff] %v4086_v17  ;;  %v481_v23 = vmul.f32 %v465_v19, %v4080_v15  ;;  %v482_v24 = vmul.f32 %v466_v20, %v4083_v16  ;;  %v4114_v28 = vsel %vm416_vm6, 1.0, %v3894_v4  ;;  %v463_v29 = vsub.f32 1.0, %v4108_v26  ;;  %1110 = vadd.xlane.f32.xlu2 %v4150_v45  ;;  %v4221_v19 = vld [vmem:[%s4038_s20 + $0x38] sm:$0xff] }
  0x49   : > { %6602 = vst [vmem:[#allocation26_spill] sm:$0xff] %v4108_v26  ;;  %v464_v33 = vsub.f32 1.0, %v4114_v28  ;;  %v388_v35 = vadd.s32 24, %v4044_v1  ;;  %v389_v37 = vadd.s32 32, %v4044_v1  ;;  %v396_v38 = vadd.s32 88, %v4044_v1 }
  0x4a   : > { %6603 = vst [vmem:[#allocation27_spill] sm:$0xff] %v4114_v28  ;;  %v4123_v32 = vpack.c.bf16 %v482_v24, %v481_v23  ;;  %v479_v36 = vmul.f32 %v463_v29, %v4104_v25  ;;  %vm413_vm7 = vcmp.eq.s32.totalorder %v395_v34, %v4046_v2  ;;  %v393_v40 = vadd.s32 64, %v4044_v1  ;;  %v4241_v34 = vld [vmem:[%s4038_s20 + $0x20] sm:$0xff]  ;;  %s3125_s16 = scalar_lea.hbm %s6875_s4, %s3965_s9  ;;  %s3692_s10 = scalar_lea.hbm %s6875_s4, 2 }
  0x4b   : > { %v480_v39 = vmul.f32 %v464_v33, %v4111_v27  ;;  %v394_v41 = vadd.s32 72, %v4044_v1  ;;  %v4140_v42 = vsub.f32 %v4118_v30, %v4121_v31  ;;  %vm414_vm8 = vcmp.eq.s32.totalorder %v396_v38, %v4046_v2  ;;  %s3129_s12 = sshll.u32 %s3125_s16, 4  ;;  %s3130_s12 = int_to_ptr.hbm [resolvable:$true] %s3129_s12 }
  0x4c   : > { %3470 = vmatpush.bf16.msra.mxu2 %v4123_v32  ;;  %v4147_v44 = vsel %vm413_vm7, 1.0, %v3894_v4  ;;  %v390_v46 = vadd.s32 40, %v4044_v1  ;;  %491 = vmatpush.bf16.msra.mxu0 %v4123_v32  ;;  %v4161_v49 = vsel %vm414_vm8, 1.0, %v3894_v4  ;;  %vm411_vm9 = vcmp.eq.s32.totalorder %v393_v40, %v4046_v2  ;;  %s3686_s24 = sshra.s32 %s3130_s12, 4  ;;  %s3687_s24 = int_to_ptr.hbm [resolvable:$true] %s3686_s24 }
  0x4d   : > { %6604 = vst [vmem:[#allocation28_spill] sm:$0xff] %v4147_v44  ;;  %3469 = vmatpush.bf16.msra.mxu1 %v4123_v32  ;;  %v4155_v47 = vpack.c.bf16 %v480_v39, %v479_v36  ;;  %v461_v50 = vsub.f32 1.0, %v4147_v44  ;;  %3471 = vmatpush.bf16.msra.mxu3 %v4123_v32  ;;  %v462_v51 = vsub.f32 1.0, %v4161_v49  ;;  %vm412_vm10 = vcmp.eq.s32.totalorder %v394_v41, %v4046_v2  ;;  %p3693_p0 = scmp.lt.s32.totalorder %s3687_s24, %s6875_s4 }
  0x4e   : > { %837 = vxpose.xlu1.b32.cont [2/16] %v4097_v22, 128  ;;  %6605 = vst [vmem:[#allocation29_spill] sm:$0xff] %v4161_v49  ;;  %v4170_v52 = vsel %vm411_vm9, 1.0, %v3894_v4  ;;  %vm408_vm11 = vcmp.eq.s32.totalorder %v390_v46, %v4046_v2  ;;  %vm407_vm12 = vcmp.eq.s32.totalorder %v389_v37, %v4046_v2  ;;  %v4180_v55 = vsel %vm412_vm10, 1.0, %v3894_v4 }
  0x4f   : > { %6606 = vst [vmem:[#allocation30_spill] sm:$0xff] %v4170_v52  ;;  %v477_v53 = vmul.f32 %v461_v50, %v4143_v43  ;;  %v459_v56 = vsub.f32 1.0, %v4170_v52  ;;  %vm406_vm13 = vcmp.eq.s32.totalorder %v388_v35, %v4046_v2  ;;  %v478_v57 = vmul.f32 %v462_v51, %v4158_v48  ;;  %1098 = vadd.xlane.f32.xlu0 %v4118_v30 }
  0x50   : > { %3473 = vmatpush.bf16.msra.mxu2 %v4155_v47  ;;  %6607 = vst [vmem:[#allocation31_spill] sm:$0xff] %v4180_v55  ;;  %v460_v58 = vsub.f32 1.0, %v4180_v55  ;;  %492 = vmatpush.bf16.msra.mxu0 %v4155_v47  ;;  %v4190_v60 = vsel %vm408_vm11, 1.0, %v3894_v4  ;;  %v391_v61 = vadd.s32 48, %v4044_v1  ;;  %v392_v62 = vadd.s32 56, %v4044_v1 }
  0x51   : > { %3472 = vmatpush.bf16.msra.mxu1 %v4155_v47  ;;  %v475_v59 = vmul.f32 %v459_v56, %v4150_v45  ;;  %6608 = vst [vmem:[#allocation32_spill] sm:$0xff] %v4190_v60  ;;  %3474 = vmatpush.bf16.msra.mxu3 %v4155_v47  ;;  %v4199_v63 = vsel %vm407_vm12, 1.0, %v3894_v4  ;;  %v4201_v0 = vpack.c.bf16 %v478_v57, %v477_v53  ;;  %v4206_v6 = vsel %vm406_vm13, 1.0, %v3894_v4 }
  0x52   : > { %6609 = vst [vmem:[#allocation33_spill] sm:$0xff] %v4199_v63  ;;  %v476_v3 = vmul.f32 %v460_v58, %v4177_v54  ;;  %v455_v1 = vsub.f32 1.0, %v4199_v63  ;;  %vm409_vm14 = vcmp.eq.s32.totalorder %v391_v61, %v4046_v2  ;;  %vm410_vm15 = vcmp.eq.s32.totalorder %v392_v62, %v4046_v2  ;;  %1116 = vadd.xlane.f32.xlu2 %v4158_v48 }
  0x53   : > { %v456_v20 = vsub.f32 1.0, %v4190_v60  ;;  %v4225_v21 = vsel %vm409_vm14, 1.0, %v3894_v4  ;;  %v4228_v23 = vsel %vm410_vm15, 1.0, %v3894_v4  ;;  %v4238_v33 = vsub.f32 %v4212_v7, %v4206_v6 }
  0x54   : > { %3476 = vmatpush.bf16.msra.mxu2 %v4201_v0  ;;  %v4215_v10 = vpack.c.bf16 %v476_v3, %v475_v59  ;;  %6610 = vst [vmem:[#allocation34_spill] sm:$0xff] %v4225_v21  ;;  %493 = vmatpush.bf16.msra.mxu0 %v4201_v0  ;;  %v457_v24 = vsub.f32 1.0, %v4225_v21  ;;  %v458_v29 = vsub.f32 1.0, %v4228_v23  ;;  %v453_v36 = vsub.f32 1.0, %v4121_v31 }
  0x55   : > { %3475 = vmatpush.bf16.msra.mxu1 %v4201_v0  ;;  %3477 = vmatpush.bf16.msra.mxu3 %v4201_v0  ;;  %v454_v37 = vsub.f32 1.0, %v4206_v6  ;;  %v471_v38 = vmul.f32 %v455_v1, %v4241_v34  ;;  %v472_v39 = vmul.f32 %v456_v20, %v4089_v18  ;;  %v451_v41 = vsub.f32 1.0, %v4052_v5 }
  0x56   : > { %838 = vxpose.xlu1.b32.cont [3/16] %v4140_v42, 128  ;;  %v473_v4 = vmul.f32 %v457_v24, %v4218_v11  ;;  %v474_v35 = vmul.f32 %v458_v29, %v4221_v19  ;;  %v452_v46 = vsub.f32 1.0, %v4073_v13  ;;  %v469_v50 = vmul.f32 %v453_v36, %v4118_v30 }
  0x57   : > { %1100 = vadd.xlane.f32.xlu0 %v4212_v7  ;;  %v470_v51 = vmul.f32 %v454_v37, %v4212_v7  ;;  %v4261_v53 = vpack.c.bf16 %v472_v39, %v471_v38  ;;  %v767_v56 = vsub.f32 %v4241_v34, %v4199_v63  ;;  %v467_v57 = vmul.f32 %v451_v41, %v4057_v8 }
  0x58   : > { %3479 = vmatpush.bf16.msra.mxu2 %v4215_v10  ;;  %494 = vmatpush.bf16.msra.mxu0 %v4215_v10  ;;  %v4251_v40 = vpack.c.bf16 %v474_v35, %v473_v4  ;;  %v468_v30 = vmul.f32 %v452_v46, %v4070_v12  ;;  %v4276_v59 = vsub.f32 %v4080_v15, %v4077_v14 }
  0x59   : > { %3478 = vmatpush.bf16.msra.mxu1 %v4215_v10  ;;  %3480 = vmatpush.bf16.msra.mxu3 %v4215_v10  ;;  %v484_v58 = vpack.c.bf16 %v470_v51, %v469_v50  ;;  %v4280_v61 = vsub.f32 %v4083_v16, %v4086_v17  ;;  %v775_v62 = vsub.f32 %v4104_v25, %v4108_v26 }
  0x5a   : > { %1122 = vadd.xlane.f32.xlu2 %v4080_v15  ;;  %v483_v8 = vpack.c.bf16 %v468_v30, %v467_v57  ;;  %v776_v3 = vsub.f32 %v4111_v27, %v4114_v28  ;;  %v768_v1 = vsub.f32 %v4089_v18, %v4190_v60  ;;  %v773_v24 = vsub.f32 %v4143_v43, %v4147_v44  ;;  %v1579_v30 = vld [vmem:[%s6615_s2] sm:$0xff] }
  0x5b   : > { %v4287_v12 = vpack.c.bf16 %v4280_v61, %v4276_v59  ;;  %v774_v29 = vsub.f32 %v4158_v48, %v4161_v49  ;;  %v772_v35 = vsub.f32 %v4177_v54, %v4180_v55  ;;  %v769_v36 = vsub.f32 %v4218_v11, %v4225_v21 }
  0x5c   : > { %3482 = vmatpush.bf16.msra.mxu2 %v4251_v40  ;;  %495 = vmatpush.bf16.msra.mxu0 %v4251_v40  ;;  %v785_v20 = vpack.c.bf16 %v776_v3, %v775_v62  ;;  %v771_v37 = vsub.f32 %v4150_v45, %v4170_v52  ;;  %v770_v39 = vsub.f32 %v4221_v19, %v4228_v23 }
  0x5d   : > { %3481 = vmatpush.bf16.msra.mxu1 %v4251_v40  ;;  %3483 = vmatpush.bf16.msra.mxu3 %v4251_v40  ;;  %v784_v4 = vpack.c.bf16 %v774_v29, %v773_v24  ;;  %v781_v46 = vpack.c.bf16 %v768_v1, %v767_v56 }
  0x5e   : > { %839 = vxpose.xlu1.b32.cont [4/16] %v4238_v33, 128  ;;  %v783_v38 = vpack.c.bf16 %v772_v35, %v771_v37  ;;  %v782_v41 = vpack.c.bf16 %v770_v39, %v769_v36 }
  0x5f   : > { %1106 = vadd.xlane.f32.xlu0 %v4218_v11 }
  0x60   : > { %3485 = vmatpush.bf16.msra.mxu2 %v4261_v53  ;;  %496 = vmatpush.bf16.msra.mxu0 %v4261_v53 }
  0x61   : > { %3484 = vmatpush.bf16.msra.mxu1 %v4261_v53  ;;  %3486 = vmatpush.bf16.msra.mxu3 %v4261_v53 }
  0x64   : > { %3488 = vmatpush.bf16.msra.mxu2 %v484_v58  ;;  %497 = vmatpush.bf16.msra.mxu0 %v484_v58 }
  0x65   : > { %3487 = vmatpush.bf16.msra.mxu1 %v484_v58  ;;  %3489 = vmatpush.bf16.msra.mxu3 %v484_v58 }
  0x66   : > { %840 = vxpose.xlu1.b32.cont [5/16] %v767_v56, 128 }
  0x67   : > { %1112 = vadd.xlane.f32.xlu0 %v4177_v54 }
  0x68   : > { %3491 = vmatpush.bf16.msra.mxu2 %v483_v8  ;;  %498 = vmatpush.bf16.msra.mxu0 %v483_v8 }
  0x69   : > { %3490 = vmatpush.bf16.msra.mxu1 %v483_v8  ;;  %3492 = vmatpush.bf16.msra.mxu3 %v483_v8 }
  0x6b   : > { %519 = vmatmul.bf16.vlgmr.msra.gmra.mxu2 %v4215_v10  ;;  %499 = vmatmul.bf16.vlgmr.msra.gmra.mxu0 %v483_v8 }
  0x6c   : > { %787 = vmatpush.bf16.msrb.mxu2 %v4287_v12  ;;  %509 = vmatmul.bf16.vlgmr.msra.gmra.mxu1 %v4261_v53 }
  0x6d   : > { %548 = vmatpush.bf16.msrb.mxu1 %v4123_v32  ;;  %529 = vmatmul.bf16.vlgmr.msra.gmra.mxu3 %v4155_v47 }
  0x6e   : > { %841 = vxpose.xlu1.b32.cont [6/16] %v768_v1, 128 }
  0x6f   : > { %1118 = vadd.xlane.f32.xlu0 %v4104_v25 }
  0x70   : > { %788 = vmatpush.bf16.msrb.mxu2 %v785_v20 }
  0x71   : > { %549 = vmatpush.bf16.msrb.mxu1 %v4155_v47  ;;  %v780_v47 = vpack.c.bf16 %v4238_v33, %v4140_v42  ;;  %v3895_v33 = vmov 0  }
  0x72   : > { %3574 = vset.pattern.permute.xlu2 %v3895_v33  ;;  %3575 = vset.pattern.permute.xlu0 %v3895_v33 }
  0x73   : > { %1880 = vperm.xlu2 %3574, %v1579_v30  }
  0x74   : > { %789 = vmatpush.bf16.msrb.mxu2 %v784_v4 }
  0x75   : > { %550 = vmatpush.bf16.msrb.mxu1 %v4201_v0 }
  0x76   : > { %842 = vxpose.xlu1.b32.cont [7/16] %v769_v36, 128 }
  0x77   : > { %1124 = vadd.xlane.f32.xlu0 %v4083_v16 }
  0x78   : > { %790 = vmatpush.bf16.msrb.mxu2 %v783_v38 }
  0x79   : > { %551 = vmatpush.bf16.msrb.mxu1 %v4215_v10  ;;  %v779_v10 = vpack.c.bf16 %v4097_v22, %v4063_v9 }
  0x7b   : > { %524 = vmatmul.bf16.gmra.mxu2 %v4201_v0  ;;  %504 = vmatmul.bf16.gmra.mxu0 %v484_v58 }
  0x7c   : > { %791 = vmatpush.bf16.msrb.mxu2 %v782_v41  ;;  %514 = vmatmul.bf16.gmra.mxu1 %v4251_v40 }
  0x7d   : > { %552 = vmatpush.bf16.msrb.mxu1 %v4251_v40  ;;  %534 = vmatmul.bf16.gmra.mxu3 %v4123_v32 }
  0x7e   : > { %843 = vxpose.xlu1.b32.cont [8/16] %v770_v39, 128 }
  0x80   : > { %792 = vmatpush.bf16.msrb.mxu2 %v781_v46 }
  0x81   : > { %553 = vmatpush.bf16.msrb.mxu1 %v4261_v53 }
  0x84   : > { %793 = vmatpush.bf16.msrb.mxu2 %v780_v47 }
  0x85   : > { %554 = vmatpush.bf16.msrb.mxu1 %v484_v58 }
  0x86   : > { %844 = vxpose.xlu1.b32.cont [9/16] %v771_v37, 128 }
  0x88   : > { %794 = vmatpush.bf16.msrb.mxu2 %v779_v10 }
  0x89   : > { %555 = vmatpush.bf16.msrb.mxu1 %v483_v8 }
  0x8b   : > { %795 = vmatmul.bf16.vlgmr.msrb.gmra.mxu2 %v779_v10 }
  0x8e   : > { %845 = vxpose.xlu1.b32.cont [10/16] %v772_v35, 128 }
  0x96   : > { %846 = vxpose.xlu1.b32.cont [11/16] %v773_v24, 128 }
  0x9b   : > { %800 = vmatmul.bf16.gmra.mxu2 %v780_v47 }
  0x9e   : > { %847 = vxpose.xlu1.b32.cont [12/16] %v774_v29, 128 }
  0xa6   : > { %848 = vxpose.xlu1.b32.cont [13/16] %v775_v62, 128 }
  0xab   : > { %805 = vmatmul.bf16.gmra.mxu2 %v781_v46 }
  0xae   : > { %849 = vxpose.xlu1.b32.cont [14/16] %v776_v3, 128 }
  0xb2   : > { %v4353_v58 = vpop.xlane.xlu0 %1094 }
  0xb6   : > { %850 = vxpose.xlu1.b32.cont [15/16] %v4276_v59, 128 }
  0xba   : > { %v4357_v62 = vpop.xlane.xlu0 %1096 }
  0xbb   : > { %810 = vmatmul.bf16.gmra.mxu2 %v782_v41  ;;  %v4374_v41 = vpop.xlane.xlu2 %1104 }
  0xbc   : > { %6624 = vst [vmem:[#allocation46_spill] sm:$0xff] %v4374_v41 }
  0xbe   : > { %851 = vxpose.xlu1.b32.end [16/16] %v4280_v61, 128 }
  0xc2   : > { %v4364_v24 = vpop.xlane.xlu0 %1098 }
  0xc3   : > { %6619 = vst [vmem:[#allocation41_spill] sm:$0xff] %v4364_v24 }
  0xca   : > { %v4368_v36 = vpop.xlane.xlu0 %1100 }
  0xcb   : > { %815 = vmatmul.bf16.gmra.mxu2 %v783_v38  ;;  %6621 = vst [vmem:[#allocation43_spill] sm:$0xff] %v4368_v36 }
  0xd2   : > { %v4372_v38 = vpop.xlane.xlu0 %1106 }
  0xd3   : > { %6623 = vst [vmem:[#allocation45_spill] sm:$0xff] %v4372_v38 }
  0xda   : > { %v4378_v10 = vpop.xlane.xlu0 %1112 }
  0xdb   : > { %820 = vmatmul.bf16.gmra.mxu2 %v784_v4  ;;  %6626 = vst [vmem:[#allocation48_spill] sm:$0xff] %v4378_v10 }
  0xe8   : > { %v500_v51 = vpop.f32.mrf.mxu0 }
  0xe9   : > { %v510_v3 = vpop.f32.mrf.mxu1 }
  0xea   : > { %v4329_v9 = vpop.trf.xlu1 }
  0xeb   : > { %825 = vmatmul.bf16.gmra.mxu2 %v785_v20  ;;  %v1578_v20 = vld [vmem:[%s6618_s1] sm:$0xff] }
  0xee   : > { %v520_v47 = vpop.f32.mrf.mxu2 }
  0xf0   : > { %v502_v56 = vpop.f32.mrf.mxu0 }
  0xf1   : > { %v540_v57 = vpack.c.bf16 %v502_v56, %v500_v51  ;;  %v512_v29 = vpop.f32.mrf.mxu1  ;;  %v4380_v51 = vpop.xlane.xlu2 %1110 }
  0xf2   : > { %v4331_v22 = vpop.trf.xlu1  ;;  %v542_v35 = vpack.c.bf16 %v512_v29, %v510_v3  ;;  %6627 = vst [vmem:[#allocation49_spill] sm:$0xff] %v4380_v51  ;;  %v1131_v3 = vmax.f32 %v4374_v41, 1.0  ;;  %v4396_v14 = vmax.f32 %v4380_v51, 1.0 }
  0xf3   : > { %556 = vmatmul.bf16.vlgmr.msrb.gmra.mxu1 %v540_v57 }
  0xf4   : > { %3576 = vrcp.f32 %v1131_v3  ;;  %vm1222_vm3 = vweird.f32 %v1131_v3  ;;  %vm1267_vm9 = vweird.f32 %v4396_v14 }
  0xf5   : > { %3578 = vrcp.f32 %v4396_v14 }
  0xf6   : > { %v522_v30 = vpop.f32.mrf.mxu2 }
  0xf7   : > { %v544_v29 = vpack.c.bf16 %v522_v30, %v520_v47 }
  0xf8   : > { %v505_v59 = vpop.f32.mrf.mxu0 }
  0xf9   : > { %v515_v39 = vpop.f32.mrf.mxu1 }
  0xfa   : > { %v4334_v32 = vpop.trf.xlu1 }
  0xfb   : > { %830 = vmatmul.bf16.gmra.mxu2 %v4287_v12 }
 0x100   : > { %v507_v8 = vpop.f32.mrf.mxu0 }
 0x101   : > { %v541_v12 = vpack.c.bf16 %v507_v8, %v505_v59  ;;  %v4384_v59 = vpop.xlane.xlu0 %1118  ;;  %v4386_v8 = vpop.xlane.xlu2 %1116 }
 0x102   : > { %v4336_v42 = vpop.trf.xlu1  ;;  %6629 = vst [vmem:[#allocation51_spill] sm:$0xff] %v4384_v59  ;;  %v4411_v21 = vmax.f32 %v4386_v8, 1.0 }
 0x103   : > { %561 = vmatmul.bf16.gmra.mxu1 %v541_v12  ;;  %6630 = vst [vmem:[#allocation52_spill] sm:$0xff] %v4386_v8 }
 0x104   : > { %v1318_v2 = vand.u32 2147483648, %v4411_v21 }
 0x10a   : > { %v4338_v0 = vpop.trf.xlu1 }
 0x10b   : > { %6611 = vst [vmem:[#allocation35_spill] sm:$0xff] %v4338_v0 }
 0x111   : > { %3573 = vset.pattern.permute.xlu1 %v3895_v33  ;;  %v517_v33 = vpop.f32.mrf.mxu1 }
 0x112   : > { %v4341_v40 = vpop.trf.xlu1  ;;  %v543_v57 = vpack.c.bf16 %v517_v33, %v515_v39  ;;  %v4398_v39 = vpop.xlane.xlu2 %1122 }
 0x113   : > { %6612 = vst [vmem:[#allocation36_spill] sm:$0xff] %v4341_v40  ;;  %566 = vmatmul.bf16.gmra.mxu1 %v542_v35  ;;  %v4393_v35 = vpop.xlane.xlu0 %1124  ;;  %v3577_v33 = vpop.eup %3576  ;;  %v4405_v52 = vmax.f32 %v4398_v39, 1.0 }
 0x114   : > { %6632 = vst [vmem:[#allocation54_spill] sm:$0xff] %v4393_v35  ;;  %v1218_v49 = vmul.f32 %v3577_v33, %v1131_v3  ;;  %vm1223_vm4 = vweird.f32 %v3577_v33 }
 0x115   : > { %6633 = vst [vmem:[#allocation55_spill] sm:$0xff] %v4398_v39  ;;  %v1363_v55 = vand.u32 2147483648, %v4405_v52  ;;  %vm1357_vm1 = vweird.f32 %v4405_v52  ;;  %vm4425_vm5 = vmor %vm1222_vm3, %vm1223_vm4 }
 0x116   : > { %v1219_v60 = vsub.f32 1.0, %v1218_v49  ;;  %v1228_v49 = vand.u32 2147483648, %v1131_v3 }
 0x11a   : > { %v4344_v50 = vpop.trf.xlu1 }
 0x11b   : > { %6613 = vst [vmem:[#allocation37_spill] sm:$0xff] %v4344_v50  ;;  %v1273_v50 = vand.u32 2147483648, %v4396_v14 }
 0x11e   : > { %1102 = vadd.xlane.f32.xlu1 %v4241_v34 }
 0x122   : > { %v4348_v53 = vpop.trf.xlu1 }
 0x123   : > { %6614 = vst [vmem:[#allocation38_spill] sm:$0xff] %v4348_v53  ;;  %571 = vmatmul.bf16.gmra.mxu1 %v543_v57  ;;  %v1141_v57 = vmax.f32 %v4393_v35, 1.0 }
 0x125   : > { %3580 = vrcp.f32 %v1141_v57  ;;  %v1376_v30 = vand.u32 2147483647, %v1141_v57  ;;  %v1378_v26 = vand.u32 2147483648, %v1141_v57  ;;  %vm1372_vm0 = vweird.f32 %v1141_v57 }
 0x126   : > { %1108 = vadd.xlane.f32.xlu1 %v4221_v19  ;;  %3582 = vrcp.f32 %v4405_v52 }
 0x127   : > { %vm4416_vm2 = vcmp.eq.f32.partialorder %v1376_v30, 8.507059e+37  ;;  %3584 = vrcp.f32 %v4411_v21  ;;  %v1274_v30 = vor.u32 1.1754944e-38, %v1273_v50 }
 0x12a   : > { %v4355_v61 = vpop.trf.xlu1 }
 0x12b   : > { %6616 = vst [vmem:[#allocation39_spill] sm:$0xff] %v4355_v61 }
 0x12e   : > { %1114 = vadd.xlane.f32.xlu1 %v4143_v43 }
 0x132   : > { %v4359_v1 = vpop.trf.xlu1 }
 0x133   : > { %6617 = vst [vmem:[#allocation40_spill] sm:$0xff] %v4359_v1  ;;  %576 = vmatmul.bf16.gmra.mxu1 %v544_v29  ;;  %v3579_v29 = vpop.eup %3578  ;;  %v1229_v1 = vor.u32 1.1754944e-38, %v1228_v49 }
 0x134   : > { %v1263_v13 = vmul.f32 %v3579_v29, %v4396_v14  ;;  %v3581_v5 = vpop.eup %3580  ;;  %vm1268_vm10 = vweird.f32 %v3579_v29 }
 0x135   : > { %v3583_v61 = vpop.eup %3582  ;;  %vm1373_vm6 = vweird.f32 %v3581_v5  ;;  %vm1269_vm11 = vmor %vm1267_vm9, %vm1268_vm10 }
 0x136   : > { %1120 = vadd.xlane.f32.xlu1 %v4111_v27  ;;  %v1264_v28 = vsub.f32 1.0, %v1263_v13  ;;  %vm1358_vm8 = vweird.f32 %v3583_v61  ;;  %vm4448_vm12 = vmor %vm1372_vm0, %vm1373_vm6  ;;  %vm1312_vm0 = vweird.f32 %v4411_v21 }
 0x137   : > { %vm4463_vm14 = vmor %vm1357_vm1, %vm1358_vm8 }
 0x138   : > { %v1265_v53 = vmul.f32 %v3579_v29, %v1264_v28  ;;  %v1271_v28 = vand.u32 2147483647, %v4396_v14  ;;  %v4455_v14 = vmax.f32 %v4378_v10, 1.0 }
 0x13a   : > { %v4366_v4 = vpop.trf.xlu1  ;;  %v1266_v49 = vadd.f32 %v3579_v29, %v1265_v53  ;;  %vm1272_vm13 = vcmp.eq.f32.partialorder %v1271_v28, 8.507059e+37  ;;  %vm1282_vm8 = vweird.f32 %v4455_v14 }
 0x13b   : > { %6620 = vst [vmem:[#allocation42_spill] sm:$0xff] %v4366_v4  ;;  %v1364_v4 = vor.u32 1.1754944e-38, %v1363_v55 }
 0x13c   : > { %v1270_v40 = vsel %vm1269_vm11, %v3579_v29, %v1266_v49 }
 0x13d   : > { %v1275_v13 = vsel %vm1272_vm13, %v1274_v30, %v1270_v40  ;;  %v1319_v30 = vor.u32 1.1754944e-38, %v1318_v2 }
 0x142   : > { %v4370_v37 = vpop.trf.xlu1 }
 0x143   : > { %6622 = vst [vmem:[#allocation44_spill] sm:$0xff] %v4370_v37  ;;  %v1368_v37 = vmul.f32 %v3581_v5, %v1141_v57 }
 0x145   : > { %v1369_v55 = vsub.f32 1.0, %v1368_v37 }
 0x14a   : > { %v4376_v46 = vpop.trf.xlu1 }
 0x14b   : > { %6625 = vst [vmem:[#allocation47_spill] sm:$0xff] %v4376_v46  ;;  %v1226_v46 = vand.u32 2147483647, %v1131_v3  ;;  %v1353_v3 = vmul.f32 %v3583_v61, %v4405_v52 }
 0x14d   : > { %vm4431_vm7 = vcmp.eq.f32.partialorder %v1226_v46, 8.507059e+37  ;;  %v1370_v46 = vmul.f32 %v3581_v5, %v1369_v55 }
 0x14f   : > { %1603 = vperm.xlu1 %3573, %v1578_v20   ;;  %v4391_v20 = vpop.f32.mrf.mxu2  ;;  %v1371_v50 = vadd.f32 %v3581_v5, %v1370_v46 }
 0x151   : > { %v1375_v40 = vsel %vm4448_vm12, %v3581_v5, %v1371_v50 }
 0x152   : > { %v4382_v56 = vpop.trf.xlu1 }
 0x153   : > { %6628 = vst [vmem:[#allocation50_spill] sm:$0xff] %v4382_v56 }
 0x157   : > { %v527_v47 = vpop.f32.mrf.mxu2 }
 0x158   : > { %v545_v63 = vpack.c.bf16 %v527_v47, %v4391_v20  ;;  %v4421_v47 = vmax.f32 %v4384_v59, 1.0 }
 0x15a   : > { %v4388_v12 = vpop.trf.xlu1  ;;  %3586 = vrcp.f32 %v4421_v47  ;;  %581 = vmatmul.bf16.gmra.mxu1 %v545_v63  ;;  %v4470_v63 = vmul.f32 %v1275_v13, %v4150_v45  ;;  %vm1327_vm3 = vweird.f32 %v4421_v47  ;;  %v1331_v50 = vand.u32 2147483647, %v4421_v47 }
 0x15b   : > { %6631 = vst [vmem:[#allocation53_spill] sm:$0xff] %v4388_v12  ;;  %v1361_v12 = vand.u32 2147483647, %v4405_v52  ;;  %3588 = vrcp.f32 %v4455_v14 }
 0x15c   : > { %1406 = vst [vmem:[%s4474_s21 + $0x40] sm:$0xff] %v4470_v63 }
 0x15d   : > { %vm1362_vm15 = vcmp.eq.f32.partialorder %v1361_v12, 8.507059e+37 }
 0x162   : > { %v4402_v17 = vpop.trf.xlu1 }
 0x163   : > { %6634 = vst [vmem:[#allocation56_spill] sm:$0xff] %v4402_v17  ;;  %v1220_v17 = vmul.f32 %v3577_v33, %v1219_v60  ;;  %v1379_v60 = vor.u32 1.1754944e-38, %v1378_v26 }
 0x165   : > { %v1221_v56 = vadd.f32 %v3577_v33, %v1220_v17  ;;  %v1380_v29 = vsel %vm4416_vm2, %v1379_v60, %v1375_v40 }
 0x166   : > { %v1397_v12 = vmul.f32 %v1380_v29, %v4083_v16 }
 0x167   : > { %v1225_v17 = vsel %vm4425_vm5, %v3577_v33, %v1221_v56  ;;  %v4442_v56 = vpop.eup %3584  ;;  %v1354_v33 = vsub.f32 1.0, %v1353_v3 }
 0x168   : > { %v1230_v37 = vsel %vm4431_vm7, %v1229_v1, %v1225_v17  ;;  %v1308_v53 = vmul.f32 %v4442_v56, %v4411_v21  ;;  %v3587_v55 = vpop.eup %3586  ;;  %vm1313_vm1 = vweird.f32 %v4442_v56  ;;  %1413 = vst [vmem:[%s4474_s21 + $0x78] sm:$0xff] %v1397_v12  ;;  %1414 = vmatpush.msrb.mxu3 %v1397_v12  ;;  %vm1332_vm7 = vcmp.eq.f32.partialorder %v1331_v50, 8.507059e+37 }
 0x169   : > { %v1355_v3 = vmul.f32 %v3583_v61, %v1354_v33  ;;  %v4458_v1 = vmul.f32 %v1230_v37, %v4089_v18  ;;  %v1323_v17 = vmul.f32 %v3587_v55, %v4421_v47  ;;  %vm4495_vm2 = vmor %vm1312_vm0, %vm1313_vm1  ;;  %v1316_v33 = vand.u32 2147483647, %v4411_v21  ;;  %v3589_v37 = vpop.eup %3588 }
 0x16a   : > { %v1309_v0 = vsub.f32 1.0, %v1308_v53  ;;  %vm1328_vm4 = vweird.f32 %v3587_v55  ;;  %vm1283_vm9 = vweird.f32 %v3589_v37  ;;  %v4542_v12 = vmax.f32 %v4372_v38, 1.0 }
 0x16b   : > { %v1356_v18 = vadd.f32 %v3583_v61, %v1355_v3  ;;  %1403 = vst [vmem:[%s4474_s21 + $0x28] sm:$0xff] %v4458_v1  ;;  %v1324_v45 = vsub.f32 1.0, %v1323_v17  ;;  %vm1329_vm5 = vmor %vm1327_vm3, %vm1328_vm4  ;;  %vm1317_vm6 = vcmp.eq.f32.partialorder %v1316_v33, 8.507059e+37  ;;  %v1278_v3 = vmul.f32 %v3589_v37, %v4455_v14 }
 0x16c   : > { %v1310_v49 = vmul.f32 %v4442_v56, %v1309_v0  ;;  %vm4537_vm10 = vmor %vm1282_vm8, %vm1283_vm9 }
 0x16d   : > { %v1360_v28 = vsel %vm4463_vm14, %v3583_v61, %v1356_v18  ;;  %v1325_v60 = vmul.f32 %v3587_v55, %v1324_v45  ;;  %v1333_v61 = vand.u32 2147483648, %v4421_v47  ;;  %v1279_v40 = vsub.f32 1.0, %v1278_v3 }
 0x16e   : > { %v1365_v20 = vsel %vm1362_vm15, %v1364_v4, %v1360_v28  ;;  %v1311_v0 = vadd.f32 %v4442_v56, %v1310_v49  ;;  %v1288_v45 = vand.u32 2147483648, %v4455_v14 }
 0x16f   : > { %v4502_v16 = vmul.f32 %v1365_v20, %v4080_v15  ;;  %v1326_v53 = vadd.f32 %v3587_v55, %v1325_v60  ;;  %v1334_v15 = vor.u32 1.1754944e-38, %v1333_v61 }
 0x170   : > { %v1315_v21 = vsel %vm4495_vm2, %v4442_v56, %v1311_v0  ;;  %v1280_v56 = vmul.f32 %v3589_v37, %v1279_v40 }
 0x171   : > { %6648 = vst [vmem:[#allocation58_spill] sm:$0xff] %v4502_v16  ;;  %1415 = vmatpush.msrb.mxu3 %v4502_v16  ;;  %v1330_v13 = vsel %vm1329_vm5, %v3587_v55, %v1326_v53  ;;  %v1320_v57 = vsel %vm1317_vm6, %v1319_v30, %v1315_v21  ;;  %vm1237_vm5 = vweird.f32 %v4542_v12 }
 0x172   : > { %1412 = vst [vmem:[%s4474_s21 + $0x70] sm:$0xff] %v4502_v16  ;;  %v1335_v47 = vsel %vm1332_vm7, %v1334_v15, %v1330_v13  ;;  %v4519_v17 = vmul.f32 %v1320_v57, %v4158_v48  ;;  %v1281_v48 = vadd.f32 %v3589_v37, %v1280_v56 }
 0x173   : > { %v4522_v18 = vmul.f32 %v1335_v47, %v4104_v25  ;;  %v1286_v25 = vand.u32 2147483647, %v4455_v14  ;;  %v1289_v14 = vor.u32 1.1754944e-38, %v1288_v45 }
 0x174   : > { %6649 = vst [vmem:[#allocation59_spill] sm:$0xff] %v4519_v17  ;;  %v1285_v0 = vsel %vm4537_vm10, %v3589_v37, %v1281_v48 }
 0x175   : > { %6650 = vst [vmem:[#allocation60_spill] sm:$0xff] %v4522_v18  ;;  %vm1287_vm11 = vcmp.eq.f32.partialorder %v1286_v25, 8.507059e+37 }
 0x176   : > { %1409 = vst [vmem:[%s4474_s21 + $0x58] sm:$0xff] %v4519_v17  ;;  %v1290_v53 = vsel %vm1287_vm11, %v1289_v14, %v1285_v0  ;;  %v1243_v0 = vand.u32 2147483648, %v4542_v12 }
 0x177   : > { %1410 = vst [vmem:[%s4474_s21 + $0x60] sm:$0xff] %v4522_v18  ;;  %v4563_v21 = vmul.f32 %v1290_v53, %v4177_v54 }
 0x179   : > { %1407 = vst [vmem:[%s4474_s21 + $0x48] sm:$0xff] %v4563_v21 }
 0x191   : > { %v4435_v26 = vpop.xlane.xlu1 %1102 }
 0x192   : > { %v4479_v52 = vmax.f32 %v4435_v26, 1.0 }
 0x194   : > { %v1211_v15 = vand.u32 2147483647, %v4479_v52  ;;  %vm1207_vm13 = vweird.f32 %v4479_v52  ;;  %v1213_v2 = vand.u32 2147483648, %v4479_v52 }
 0x196   : > { %vm4582_vm3 = vcmp.eq.f32.partialorder %v1211_v15, 8.507059e+37 }
 0x199   : > { %v4487_v5 = vpop.xlane.xlu1 %1108 }
 0x19a   : > { %6645 = vst [vmem:[#allocation57_spill] sm:$0xff] %v4487_v5  ;;  %v4506_v4 = vmax.f32 %v4487_v5, 1.0 }
 0x19c   : > { %3590 = vrcp.f32 %v4506_v4  ;;  %v1256_v28 = vand.u32 2147483647, %v4506_v4  ;;  %v1258_v20 = vand.u32 2147483648, %v4506_v4  ;;  %vm1252_vm12 = vweird.f32 %v4506_v4 }
 0x19d   : > { %3592 = vrcp.f32 %v4479_v52 }
 0x19e   : > { %vm4568_vm15 = vcmp.eq.f32.partialorder %v1256_v28, 8.507059e+37  ;;  %v1259_v47 = vor.u32 1.1754944e-38, %v1258_v20  ;;  %v1241_v20 = vand.u32 2147483647, %v4542_v12 }
 0x1a0   : > { %vm4637_vm11 = vcmp.eq.f32.partialorder %v1241_v20, 8.507059e+37 }
 0x1a1   : > { %v4524_v29 = vpop.xlane.xlu1 %1114 }
 0x1a2   : > { %v4532_v55 = vmax.f32 %v4524_v29, 1.0  ;;  %v3591_v49 = vpop.eup %3590 }
 0x1a3   : > { %v4547_v60 = vpop.eup %3592  ;;  %v1248_v46 = vmul.f32 %v3591_v49, %v4506_v4  ;;  %vm1253_vm14 = vweird.f32 %v3591_v49 }
 0x1a4   : > { %3594 = vrcp.f32 %v4532_v55  ;;  %v1303_v33 = vand.u32 2147483648, %v4532_v55  ;;  %v1301_v30 = vand.u32 2147483647, %v4532_v55  ;;  %v1203_v3 = vmul.f32 %v4547_v60, %v4479_v52  ;;  %vm1254_vm4 = vmor %vm1252_vm12, %vm1253_vm14 }
 0x1a5   : > { %3596 = vrcp.f32 %v4542_v12  ;;  %v1249_v50 = vsub.f32 1.0, %v1248_v46  ;;  %vm1297_vm0 = vweird.f32 %v4532_v55  ;;  %vm1208_vm1 = vweird.f32 %v4547_v60 }
 0x1a6   : > { %v1304_v56 = vor.u32 1.1754944e-38, %v1303_v33  ;;  %vm4578_vm2 = vcmp.eq.f32.partialorder %v1301_v30, 8.507059e+37  ;;  %v1204_v14 = vsub.f32 1.0, %v1203_v3  ;;  %vm4612_vm8 = vmor %vm1207_vm13, %vm1208_vm1 }
 0x1a7   : > { %v1250_v13 = vmul.f32 %v3591_v49, %v1249_v50  ;;  %v4598_v50 = vmax.f32 %v4357_v62, 1.0 }
 0x1a8   : > { %v1205_v4 = vmul.f32 %v4547_v60, %v1204_v14  ;;  %v1214_v14 = vor.u32 1.1754944e-38, %v1213_v2 }
 0x1a9   : > { %v4555_v61 = vpop.xlane.xlu1 %1120  ;;  %v1251_v48 = vadd.f32 %v3591_v49, %v1250_v13 }
 0x1aa   : > { %v4560_v37 = vmax.f32 %v4555_v61, 1.0  ;;  %v3595_v40 = vpop.eup %3594  ;;  %v1206_v57 = vadd.f32 %v4547_v60, %v1205_v4 }
 0x1ab   : > { %v1293_v54 = vmul.f32 %v3595_v40, %v4532_v55  ;;  %v3597_v28 = vpop.eup %3596  ;;  %vm1298_vm6 = vweird.f32 %v3595_v40  ;;  %v1255_v33 = vsel %vm1254_vm4, %v3591_v49, %v1251_v48  ;;  %v1244_v55 = vor.u32 1.1754944e-38, %v1243_v0 }
 0x1ac   : > { %3598 = vrcp.f32 %v4560_v37  ;;  %v1233_v30 = vmul.f32 %v3597_v28, %v4542_v12  ;;  %v1260_v53 = vsel %vm4568_vm15, %v1259_v47, %v1255_v33  ;;  %vm1238_vm7 = vweird.f32 %v3597_v28  ;;  %vm4621_vm9 = vmor %vm1297_vm0, %vm1298_vm6 }
 0x1ad   : > { %v1294_v46 = vsub.f32 1.0, %v1293_v54  ;;  %v4601_v13 = vmul.f32 %v1260_v53, %v4221_v19  ;;  %v4604_v54 = vmax.f32 %v4368_v36, 1.0  ;;  %v1346_v48 = vand.u32 2147483647, %v4560_v37  ;;  %vm4633_vm10 = vmor %vm1237_vm5, %vm1238_vm7 }
 0x1ae   : > { %v1234_v3 = vsub.f32 1.0, %v1233_v30  ;;  %3600 = vrcp.f32 %v4598_v50  ;;  %v4628_v30 = vmax.f32 %v4364_v24, 1.0  ;;  %v1210_v4 = vsel %vm4612_vm8, %v4547_v60, %v1206_v57 }
 0x1af   : > { %v1295_v15 = vmul.f32 %v3595_v40, %v1294_v46  ;;  %1405 = vst [vmem:[%s4474_s21 + $0x38] sm:$0xff] %v4601_v13  ;;  %3602 = vrcp.f32 %v4604_v54  ;;  %v1215_v20 = vsel %vm4582_vm3, %v1214_v14, %v1210_v4  ;;  %v1348_v16 = vand.u32 2147483648, %v4560_v37 }
 0x1b0   : > { %v1235_v52 = vmul.f32 %v3597_v28, %v1234_v3  ;;  %v4653_v60 = vmul.f32 %v1215_v20, %v4241_v34  ;;  %3604 = vrcp.f32 %v4628_v30  ;;  %vm1342_vm13 = vweird.f32 %v4560_v37 }
 0x1b1   : > { %v1296_v46 = vadd.f32 %v3595_v40, %v1295_v15  ;;  %vm1347_vm15 = vcmp.eq.f32.partialorder %v1346_v48, 8.507059e+37  ;;  %v1196_v33 = vand.u32 2147483647, %v4604_v54  ;;  %vm1192_vm0 = vweird.f32 %v4604_v54 }
 0x1b2   : > { %v3599_v49 = vpop.eup %3598  ;;  %v1236_v3 = vadd.f32 %v3597_v28, %v1235_v52  ;;  %1402 = vst [vmem:[%s4474_s21 + $0x20] sm:$0xff] %v4653_v60  ;;  %v1183_v4 = vand.u32 2147483648, %v4628_v30  ;;  %vm1177_vm3 = vweird.f32 %v4628_v30  ;;  %vm1162_vm6 = vweird.f32 %v4598_v50 }
 0x1b3   : > { %v1338_v19 = vmul.f32 %v3599_v49, %v4560_v37  ;;  %v1300_v12 = vsel %vm4621_vm9, %v3595_v40, %v1296_v46  ;;  %vm1343_vm12 = vweird.f32 %v3599_v49 }
 0x1b4   : > { %v1305_v0 = vsel %vm4578_vm2, %v1304_v56, %v1300_v12  ;;  %v1240_v40 = vsel %vm4633_vm10, %v3597_v28, %v1236_v3  ;;  %v4661_v25 = vpop.eup %3600  ;;  %vm1344_vm14 = vmor %vm1342_vm13, %vm1343_vm12  ;;  %v1349_v28 = vor.u32 1.1754944e-38, %v1348_v16  ;;  %v4698_v12 = vmax.f32 %v4353_v58, 1.0 }
 0x1b5   : > { %v1339_v15 = vsub.f32 1.0, %v1338_v19  ;;  %v4656_v47 = vmul.f32 %v1305_v0, %v4143_v43  ;;  %v1245_v14 = vsel %vm4637_vm11, %v1244_v55, %v1240_v40  ;;  %v1158_v34 = vmul.f32 %v4661_v25, %v4598_v50  ;;  %v3603_v45 = vpop.eup %3602  ;;  %v4686_v55 = vpop.permute.xlu2 %1880 }
 0x1b6   : > { %v4671_v43 = vmul.f32 %v1245_v14, %v4218_v11  ;;  %v1188_v46 = vmul.f32 %v3603_v45, %v4604_v54  ;;  %v1198_v11 = vand.u32 2147483648, %v4604_v54  ;;  %v4681_v2 = vpop.eup %3604  ;;  %vm1193_vm1 = vweird.f32 %v3603_v45 }
 0x1b7   : > { %v1340_v57 = vmul.f32 %v3599_v49, %v1339_v15  ;;  %1408 = vst [vmem:[%s4474_s21 + $0x50] sm:$0xff] %v4656_v47  ;;  %v1159_v52 = vsub.f32 1.0, %v1158_v34  ;;  %v1173_v48 = vmul.f32 %v4681_v2, %v4628_v30  ;;  %v4701_v3 = vperm.slane %v4686_v55, 0  ;;  %vm4714_vm4 = vmor %vm1192_vm0, %vm1193_vm1  ;;  %v3611_v34 = vld [vmem:[%s4038_s20 + $0x8] sm:$0xff] }
 0x1b8   : > { %1404 = vst [vmem:[%s4474_s21 + $0x30] sm:$0xff] %v4671_v43  ;;  %v1189_v16 = vsub.f32 1.0, %v1188_v46  ;;  %vm4703_vm2 = vcmp.eq.f32.partialorder %v1196_v33, 8.507059e+37  ;;  %v1199_v0 = vor.u32 1.1754944e-38, %v1198_v11  ;;  %vm1163_vm7 = vweird.f32 %v4661_v25  ;;  %v4733_v33 = vpop.f32.mrf.mxu1 }
 0x1b9   : > { %v1341_v56 = vadd.f32 %v3599_v49, %v1340_v57  ;;  %v1166_v54 = vand.u32 2147483647, %v4598_v50  ;;  %vm1178_vm8 = vweird.f32 %v4681_v2  ;;  %3606 = vrcp.f32 %v4698_v12  ;;  %6674 = vst [vmem:[#allocation62_spill] sm:$0xff] %v4733_v33  ;;  %vm4761_vm9 = vmor %vm1162_vm6, %vm1163_vm7 }
 0x1ba   : > { %v1190_v15 = vmul.f32 %v3603_v45, %v1189_v16  ;;  %597 = vst [vmem:[%s4745_s15] sm:$0xff] %v4733_v33  ;;  %vm4772_vm10 = vmor %vm1177_vm3, %vm1178_vm8  ;;  %vm1147_vm12 = vweird.f32 %v4698_v12  ;;  %vm703_vm0 = vcmask 130112   ;;  %vm707_vm1 = vcmask 195712  }
 0x1bb   : > { %v1345_v19 = vsel %vm1344_vm14, %v3599_v49, %v1341_v56  ;;  %v1181_v49 = vand.u32 2147483647, %v4628_v30  ;;  %v1174_v56 = vsub.f32 1.0, %v1173_v48  ;;  %vm1167_vm11 = vcmp.eq.f32.partialorder %v1166_v54, 8.507059e+37 }
 0x1bc   : > { %v1350_v37 = vsel %vm1347_vm15, %v1349_v28, %v1345_v19  ;;  %v1191_v40 = vadd.f32 %v3603_v45, %v1190_v15  ;;  %v1184_v19 = vor.u32 1.1754944e-38, %v1183_v4  ;;  %vm715_vm3 = vcmask 326912  }
 0x1bd   : > { %v4684_v53 = vmul.f32 %v1350_v37, %v4111_v27  ;;  %v1160_v27 = vmul.f32 %v4661_v25, %v1159_v52  ;;  %vm4718_vm5 = vcmp.eq.f32.partialorder %v1181_v49, 8.507059e+37  ;;  %v1168_v37 = vand.u32 2147483648, %v4598_v50 }
 0x1be   : > { %v1195_v49 = vsel %vm4714_vm4, %v3603_v45, %v1191_v40  ;;  %v1175_v4 = vmul.f32 %v4681_v2, %v1174_v56  ;;  %vm719_vm4 = vcmask 392512   ;;  %vm727_vm6 = vcmask 523712  }
 0x1bf   : > { %6667 = vst [vmem:[#allocation61_spill] sm:$0xff] %v4684_v53  ;;  %1416 = vmatpush.msrb.mxu3 %v4684_v53  ;;  %v1161_v46 = vadd.f32 %v4661_v25, %v1160_v27  ;;  %v1200_v48 = vsel %vm4703_vm2, %v1199_v0, %v1195_v49  ;;  %vm711_vm2 = vcmask 261312   ;;  %vm731_vm7 = vcmask 589312  }
 0x1c0   : > { %1411 = vst [vmem:[%s4474_s21 + $0x68] sm:$0xff] %v4684_v53  ;;  %v4766_v14 = vmul.f32 %v1200_v48, %v4212_v7  ;;  %v1176_v50 = vadd.f32 %v4681_v2, %v1175_v4  ;;  %v4785_v48 = vpop.eup %3606  ;;  %v3610_v53 = vld [vmem:[%s4038_s20 + $0x10] sm:$0xff]  ;;  %vm735_vm8 = vcmask 654912  }
 0x1c1   : > { %v4708_v57 = vpop.permute.xlu1 %1603  ;;  %1417 = vmatpush.msrb.mxu3 %v4522_v18  ;;  %vm1148_vm13 = vweird.f32 %v4785_v48  ;;  %v3612_v18 = vld [vmem:[%s4038_s20] sm:$0xff] }
 0x1c2   : > { %v4724_v28 = vperm.slane %v4708_v57, 0  ;;  %1401 = vst [vmem:[%s4474_s21 + $0x18] sm:$0xff] %v4766_v14  ;;  %v1180_v4 = vsel %vm4772_vm10, %v4681_v2, %v1176_v50  ;;  %vm4839_vm14 = vmor %vm1147_vm12, %vm1148_vm13  ;;  %vm743_vm10 = vcmask 786112   ;;  %vm6578_vm12 = vcmask 917312  }
 0x1c3   : > { %1418 = vmatpush.msrb.mxu3 %v4519_v17  ;;  %vm755_vm13 = vcmask 982912  }
 0x1c4   : > { %v1624_v11 = vsub.f32 %v4364_v24, %v4724_v28  ;;  %v1623_v52 = vsub.f32 %v4357_v62, %v4724_v28  ;;  %v1622_v16 = vsub.f32 %v4353_v58, %v4724_v28  ;;  %v1626_v15 = vsub.f32 %v4435_v26, %v4724_v28 }
 0x1c5   : > { %1419 = vmatpush.msrb.mxu3 %v4656_v47  ;;  %v1625_v45 = vsub.f32 %v4368_v36, %v4724_v28 }
 0x1c6   : > { %v1752_v40 = vand.u32 2147483647, %v1624_v11  ;;  %v1751_v20 = vand.u32 2147483647, %v1623_v52  ;;  %v1750_v0 = vand.u32 2147483647, %v1622_v16  ;;  %v1629_v11 = vsub.f32 %v4487_v5, %v4724_v28 }
 0x1c7   : > { %1420 = vmatpush.msrb.mxu3 %v4563_v21  ;;  %v1754_v49 = vand.u32 2147483647, %v1626_v15  ;;  %v1753_v33 = vand.u32 2147483647, %v1625_v45  ;;  %v1169_v16 = vor.u32 1.1754944e-38, %v1168_v37  ;;  %v1165_v45 = vsel %vm4761_vm9, %v4661_v25, %v1161_v46  ;;  %v4802_v25 = vpop.f32.mrf.mxu1 }
 0x1c8   : > { %v1901_v7 = vmul.f32 %v4701_v3, %v1752_v40  ;;  %v1900_v52 = vmul.f32 %v4701_v3, %v1751_v20  ;;  %v1899_v30 = vmul.f32 %v4701_v3, %v1750_v0  ;;  %v1757_v15 = vand.u32 2147483647, %v1629_v11  ;;  %6679 = vst [vmem:[#allocation63_spill] sm:$0xff] %v4802_v25 }
 0x1c9   : > { %1421 = vmatpush.msrb.mxu3 %v4470_v63  ;;  %v1185_v37 = vsel %vm4718_vm5, %v1184_v19, %v1180_v4  ;;  %v1903_v2 = vmul.f32 %v4701_v3, %v1754_v49  ;;  %v1902_v27 = vmul.f32 %v4701_v3, %v1753_v33  ;;  %v1170_v11 = vsel %vm1167_vm11, %v1169_v16, %v1165_v45 }
 0x1ca   : > { %v2029_v40 = vsub.f32 1.0, %v1901_v7  ;;  %v2028_v20 = vsub.f32 1.0, %v1900_v52  ;;  %v2027_v0 = vsub.f32 1.0, %v1899_v30  ;;  %v4798_v56 = vmul.f32 %v3610_v53, %v1185_v37  ;;  %v4804_v7 = vpop.f32.mrf.mxu3  ;;  %598 = vst [vmem:[%s4745_s15 + $0x8] sm:$0xff] %v4802_v25 }
 0x1cb   : > { %1422 = vmatpush.msrb.mxu3 %v4601_v13  ;;  %v1906_v53 = vmul.f32 %v4701_v3, %v1757_v15  ;;  %v4813_v19 = vmul.f32 %v3611_v34, %v1170_v11  ;;  %v1143_v33 = vmul.f32 %v4785_v48, %v4698_v12  ;;  %v1151_v49 = vand.u32 2147483647, %v4698_v12 }
 0x1cc   : > { %v2157_v54 = vmax.f32 %v2029_v40, 0.0  ;;  %v2156_v46 = vmax.f32 %v2028_v20, 0.0  ;;  %v2155_v50 = vmax.f32 %v2027_v0, 0.0  ;;  %1400 = vst [vmem:[%s4474_s21 + $0x10] sm:$0xff] %v4798_v56  ;;  %v1628_v52 = vsub.f32 %v4372_v38, %v4724_v28 }
 0x1cd   : > { %1423 = vmatpush.msrb.mxu3 %v4671_v43  ;;  %v1627_v30 = vsub.f32 %v4374_v41, %v4724_v28  ;;  %v2031_v16 = vsub.f32 1.0, %v1903_v2  ;;  %v2030_v4 = vsub.f32 1.0, %v1902_v27  ;;  %1399 = vst [vmem:[%s4474_s21 + $0x8] sm:$0xff] %v4813_v19  ;;  %v1153_v15 = vand.u32 2147483648, %v4698_v12 }
 0x1ce   : > { %2418 = vperm.xlu1 %3573, %v2157_v54   ;;  %2415 = vperm.xlu2 %3574, %v2156_v46   ;;  %v1632_v45 = vsub.f32 %v4524_v29, %v4724_v28  ;;  %v1144_v40 = vsub.f32 1.0, %v1143_v33  ;;  %v1756_v20 = vand.u32 2147483647, %v1628_v52  ;;  %v2034_v37 = vsub.f32 1.0, %v1906_v53 }
 0x1cf   : > { %2412 = vperm.xlu0 %3575, %v2155_v50   ;;  %1424 = vmatpush.msrb.mxu3 %v4458_v1  ;;  %v1755_v0 = vand.u32 2147483647, %v1627_v30  ;;  %v1631_v27 = vsub.f32 %v4378_v10, %v4724_v28  ;;  %v1630_v46 = vsub.f32 %v4380_v51, %v4724_v28  ;;  %vm4843_vm15 = vcmp.eq.f32.partialorder %v1151_v49, 8.507059e+37  ;;  %v4850_v52 = vpop.f32.mrf.mxu1 }
 0x1d0   : > { %v1760_v54 = vand.u32 2147483647, %v1632_v45  ;;  %v1145_v2 = vmul.f32 %v4785_v48, %v1144_v40  ;;  %v1154_v53 = vor.u32 1.1754944e-38, %v1153_v15  ;;  %v1905_v34 = vmul.f32 %v4701_v3, %v1756_v20  ;;  %599 = vst [vmem:[%s4745_s15 + $0x10] sm:$0xff] %v4850_v52 }
 0x1d1   : > { %1425 = vmatpush.msrb.mxu3 %v4653_v60  ;;  %v1635_v33 = vsub.f32 %v4555_v61, %v4724_v28  ;;  %v2159_v30 = vmax.f32 %v2031_v16, 0.0  ;;  %v2158_v45 = vmax.f32 %v2030_v4, 0.0  ;;  %v1904_v40 = vmul.f32 %v4701_v3, %v1755_v0 }
 0x1d2   : > { %v1146_v12 = vadd.f32 %v4785_v48, %v1145_v2  ;;  %v2162_v49 = vmax.f32 %v2034_v37, 0.0  ;;  %v1909_v15 = vmul.f32 %v4701_v3, %v1760_v54  ;;  %v4859_v20 = vperm.slane %v4708_v57, 1  ;;  %v532_v2 = vpop.f32.mrf.mxu3 }
 0x1d3   : > { %1426 = vmatpush.msrb.mxu3 %v4766_v14  ;;  %v1759_v4 = vand.u32 2147483647, %v1631_v27  ;;  %v1758_v0 = vand.u32 2147483647, %v1630_v46  ;;  %v2033_v54 = vsub.f32 1.0, %v1905_v34  ;;  %v546_v27 = vpack.c.bf16 %v532_v2, %v4804_v7 }
 0x1d4   : > { %v1150_v16 = vsel %vm4839_vm14, %v4785_v48, %v1146_v12  ;;  %v1763_v25 = vand.u32 2147483647, %v1635_v33  ;;  %v1634_v48 = vsub.f32 %v4384_v59, %v4724_v28  ;;  %v4874_v46 = vperm.slane %v4686_v55, 1 }
 0x1d5   : > { %1427 = vmatpush.msrb.mxu3 %v4798_v56  ;;  %v1155_v37 = vsel %vm4843_vm15, %v1154_v53, %v1150_v16  ;;  %v1908_v50 = vmul.f32 %v4701_v3, %v1759_v4  ;;  %v1640_v11 = vsub.f32 %v4364_v24, %v4859_v20  ;;  %v2161_v53 = vmax.f32 %v2033_v54, 0.0  ;;  %586 = vmatmul.bf16.gmra.mxu1 %v546_v27 }
 0x1d6   : > { %2424 = vperm.xlu1 %3573, %v2159_v30   ;;  %2421 = vperm.xlu2 %3574, %v2158_v45   ;;  %v4868_v44 = vmul.f32 %v3612_v18, %v1155_v37  ;;  %v2032_v30 = vsub.f32 1.0, %v1904_v40  ;;  %v2037_v45 = vsub.f32 1.0, %v1909_v15  ;;  %v1907_v18 = vmul.f32 %v4701_v3, %v1758_v0 }
 0x1d7   : > { %2433 = vperm.xlu0 %3575, %v2162_v49   ;;  %1428 = vmatpush.msrb.mxu3 %v4813_v19  ;;  %v1912_v7 = vmul.f32 %v4701_v3, %v1763_v25  ;;  %v4885_v34 = vpop.f32.mrf.mxu1  ;;  %v1643_v33 = vsub.f32 %v4374_v41, %v4859_v20  ;;  %v1641_v12 = vsub.f32 %v4368_v36, %v4859_v20  ;;  %v1768_v15 = vand.u32 2147483647, %v1640_v11 }
 0x1d8   : > { %6684 = vst [vmem:[#allocation64_spill] sm:$0xff] %v4868_v44  ;;  %v2160_v40 = vmax.f32 %v2032_v30, 0.0  ;;  %v1633_v49 = vsub.f32 %v4386_v8, %v4724_v28  ;;  %v1646_v16 = vsub.f32 %v4380_v51, %v4859_v20  ;;  %v2165_v25 = vmax.f32 %v2037_v45, 0.0 }
 0x1d9   : > { %1398 = vst [vmem:[%s4474_s21] sm:$0xff] %v4868_v44  ;;  %1429 = vmatpush.msrb.mxu3 %v4868_v44  ;;  %v1638_v4 = vsub.f32 %v4353_v58, %v4859_v20  ;;  %v1771_v0 = vand.u32 2147483647, %v1643_v33  ;;  %v1769_v2 = vand.u32 2147483647, %v1641_v12  ;;  %v4900_v37 = vmul.f32 %v4874_v46, %v1768_v15 }
 0x1da   : > { %1430 = vmatmul.f32.vlgmr.msrb.gmra.mxu3 %v4868_v44  ;;  %600 = vst [vmem:[%s4745_s15 + $0x18] sm:$0xff] %v4885_v34  ;;  %v1774_v54 = vand.u32 2147483647, %v1646_v16  ;;  %v2036_v30 = vsub.f32 1.0, %v1908_v50  ;;  %v1762_v27 = vand.u32 2147483647, %v1634_v48  ;;  %v1637_v15 = vsub.f32 %v4393_v35, %v4724_v28 }
 0x1db   : > { %v4903_v11 = vmul.f32 %v4874_v46, %v1771_v0  ;;  %v4906_v44 = vmul.f32 %v4874_v46, %v1769_v2  ;;  %v2035_v45 = vsub.f32 1.0, %v1907_v18  ;;  %v1761_v17 = vand.u32 2147483647, %v1633_v49 }
 0x1dc   : > { %v4909_v33 = vmul.f32 %v4874_v46, %v1774_v54  ;;  %v1766_v12 = vand.u32 2147483647, %v1638_v4  ;;  %v2164_v48 = vmax.f32 %v2036_v30, 0.0  ;;  %v1911_v50 = vmul.f32 %v4701_v3, %v1762_v27 }
 0x1dd   : > { %v1652_v18 = vsub.f32 %v4398_v39, %v4859_v20  ;;  %v2163_v49 = vmax.f32 %v2035_v45, 0.0  ;;  %v1644_v30 = vsub.f32 %v4372_v38, %v4859_v20  ;;  %vm723_vm5 = vcmask 458112  }
 0x1de   : > { %2430 = vperm.xlu1 %3573, %v2161_v53   ;;  %2427 = vperm.xlu2 %3574, %v2160_v40   ;;  %6685 = vst [vmem:[#allocation65_spill] sm:$0xff] %v4909_v33  ;;  %v2040_v53 = vsub.f32 1.0, %v1912_v7  ;;  %v1649_v40 = vsub.f32 %v4386_v8, %v4859_v20  ;;  %v1910_v7 = vmul.f32 %v4701_v3, %v1761_v17  ;;  %vm739_vm9 = vcmask 720512  }
 0x1df   : > { %2442 = vperm.xlu0 %3575, %v2165_v25   ;;  %v4917_v16 = vpop.f32.mrf.mxu1  ;;  %v1636_v25 = vsub.f32 %v4398_v39, %v4724_v28  ;;  %v1915_v2 = vmul.f32 %v4874_v46, %v1766_v12  ;;  %v1780_v54 = vand.u32 2147483647, %v1652_v18  ;;  %v1639_v17 = vsub.f32 %v4357_v62, %v4859_v20 }
 0x1e0   : > { %6686 = vst [vmem:[#allocation66_spill] sm:$0xff] %v4917_v16  ;;  %v1777_v4 = vand.u32 2147483647, %v1649_v40  ;;  %v2168_v0 = vmax.f32 %v2040_v53, 0.0  ;;  %v1765_v28 = vand.u32 2147483647, %v1637_v15 }
 0x1e1   : > { %601 = vst [vmem:[%s4745_s15 + $0x20] sm:$0xff] %v4917_v16  ;;  %v4935_v45 = vmul.f32 %v4874_v46, %v1780_v54  ;;  %v1772_v53 = vand.u32 2147483647, %v1644_v30  ;;  %v2039_v12 = vsub.f32 1.0, %v1911_v50  ;;  %v2038_v40 = vsub.f32 1.0, %v1910_v7 }
 0x1e2   : > { %1433 = vmatmul.f32.gmra.mxu3 %v4813_v19  ;;  %v4930_v27 = vmul.f32 %v4874_v46, %v1777_v4  ;;  %v1764_v18 = vand.u32 2147483647, %v1636_v25  ;;  %v1767_v33 = vand.u32 2147483647, %v1639_v17  ;;  %v2043_v16 = vsub.f32 1.0, %v1915_v2 }
 0x1e3   : > { %v2167_v15 = vmax.f32 %v2039_v12, 0.0  ;;  %v1914_v54 = vmul.f32 %v4701_v3, %v1765_v28  ;;  %v1647_v2 = vsub.f32 %v4378_v10, %v4859_v20  ;;  %v1650_v12 = vsub.f32 %v4384_v59, %v4859_v20 }
 0x1e4   : > { %v1913_v50 = vmul.f32 %v4701_v3, %v1764_v18  ;;  %v2171_v7 = vmax.f32 %v2043_v16, 0.0  ;;  %v1642_v16 = vsub.f32 %v4435_v26, %v4859_v20  ;;  %vm747_vm11 = vcmask 851712  }
 0x1e5   : > { %v2042_v25 = vsub.f32 1.0, %v1914_v54  ;;  %v1775_v30 = vand.u32 2147483647, %v1647_v2  ;;  %v1778_v18 = vand.u32 2147483647, %v1650_v12  ;;  %v1648_v54 = vsub.f32 %v4524_v29, %v4859_v20 }
 0x1e6   : > { %2439 = vperm.xlu1 %3573, %v2164_v48   ;;  %2436 = vperm.xlu2 %3574, %v2163_v49   ;;  %v4938_v48 = vmul.f32 %v4874_v46, %v1772_v53  ;;  %v4941_v49 = vmul.f32 %v4874_v46, %v1767_v33  ;;  %v2041_v33 = vsub.f32 1.0, %v1913_v50  ;;  %v4970_v50 = vpop.f32.mrf.mxu2  ;;  %v4980_v2 = vperm.slane %v4708_v57, 2 }
 0x1e7   : > { %2451 = vperm.xlu0 %3575, %v2168_v0   ;;  %v4944_v4 = vpop.f32.mrf.mxu1  ;;  %v2166_v0 = vmax.f32 %v2038_v40, 0.0  ;;  %v2170_v53 = vmax.f32 %v2042_v25, 0.0  ;;  %v4958_v3 = vmul.f32 %v4874_v46, %v1775_v30  ;;  %v1770_v40 = vand.u32 2147483647, %v1642_v16 }
 0x1e8   : > { %602 = vst [vmem:[%s4745_s15 + $0x28] sm:$0xff] %v4944_v4  ;;  %v2169_v28 = vmax.f32 %v2041_v33, 0.0  ;;  %v4977_v25 = vmul.f32 %v4874_v46, %v1778_v18  ;;  %v4996_v12 = vperm.slane %v4686_v55, 2  ;;  %v1651_v18 = vsub.f32 %v4555_v61, %v4859_v20 }
 0x1e9   : > { %6687 = vst [vmem:[#allocation67_spill] sm:$0xff] %v4958_v3  ;;  %vm6579_vm14 = vcmask 1048512  }
 0x1ea   : > { %1436 = vmatmul.f32.gmra.mxu3 %v4798_v56  ;;  %6689 = vst [vmem:[#allocation69_spill] sm:$0xff] %v4977_v25 }
 0x1ee   : > { %2448 = vperm.xlu1 %3573, %v2167_v15   ;;  %2445 = vperm.xlu2 %3574, %v2166_v0   ;;  %v1653_v15 = vsub.f32 %v4393_v35, %v4859_v20 }
 0x1ef   : > { %2460 = vperm.xlu0 %3575, %v2171_v7   ;;  %v4953_v17 = vpop.f32.mrf.mxu1  ;;  %v4974_v7 = vmul.f32 %v4874_v46, %v1770_v40 }
 0x1f0   : > { %603 = vst [vmem:[%s4745_s15 + $0x30] sm:$0xff] %v4953_v17  ;;  %v1781_v33 = vand.u32 2147483647, %v1653_v15  ;;  %v1659_v15 = vsub.f32 %v4374_v41, %v4980_v2 }
 0x1f1   : > { %6688 = vst [vmem:[#allocation68_spill] sm:$0xff] %v4974_v7 }
 0x1f2   : > { %1439 = vmatmul.f32.gmra.mxu3 %v4766_v14  ;;  %v1645_v14 = vsub.f32 %v4487_v5, %v4859_v20  ;;  %v5014_v20 = vpop.f32.mrf.mxu2 }
 0x1f4   : > { %v1773_v0 = vand.u32 2147483647, %v1645_v14  ;;  %v1656_v14 = vsub.f32 %v4364_v24, %v4980_v2 }
 0x1f6   : > { %2457 = vperm.xlu1 %3573, %v2170_v53   ;;  %2454 = vperm.xlu2 %3574, %v2169_v28   ;;  %v4985_v53 = vmul.f32 %v4874_v46, %v1773_v0  ;;  %v1776_v28 = vand.u32 2147483647, %v1648_v54  ;;  %v1784_v40 = vand.u32 2147483647, %v1656_v14  ;;  %v1654_v0 = vsub.f32 %v4353_v58, %v4980_v2 }
 0x1f7   : > { %v4982_v30 = vpop.f32.mrf.mxu1  ;;  %v1662_v54 = vsub.f32 %v4380_v51, %v4980_v2  ;;  %v1779_v14 = vand.u32 2147483647, %v1651_v18  ;;  %v1657_v18 = vsub.f32 %v4368_v36, %v4980_v2 }
 0x1f8   : > { %6690 = vst [vmem:[#allocation70_spill] sm:$0xff] %v4985_v53  ;;  %v4993_v16 = vmul.f32 %v4874_v46, %v1776_v28  ;;  %v5012_v28 = vmul.f32 %v4996_v12, %v1784_v40 }
 0x1f9   : > { %604 = vst [vmem:[%s4745_s15 + $0x38] sm:$0xff] %v4982_v30  ;;  %v1790_v25 = vand.u32 2147483647, %v1662_v54 }
 0x1fa   : > { %1442 = vmatmul.f32.gmra.mxu3 %v4653_v60  ;;  %v4990_v60 = vmul.f32 %v4874_v46, %v1781_v33  ;;  %6692 = vst [vmem:[#allocation72_spill] sm:$0xff] %v4993_v16  ;;  %v1787_v16 = vand.u32 2147483647, %v1659_v15  ;;  %v1665_v15 = vsub.f32 %v4386_v8, %v4980_v2  ;;  %v5045_v54 = vpop.f32.mrf.mxu2 }
 0x1fb   : > { %6693 = vst [vmem:[#allocation73_spill] sm:$0xff] %v5012_v28  ;;  %v5028_v40 = vmul.f32 %v4996_v12, %v1790_v25  ;;  %v1668_v25 = vsub.f32 %v4398_v39, %v4980_v2 }
 0x1fc   : > { %6691 = vst [vmem:[#allocation71_spill] sm:$0xff] %v4990_v60  ;;  %v1782_v60 = vand.u32 2147483647, %v1654_v0  ;;  %v5022_v53 = vmul.f32 %v4996_v12, %v1787_v16  ;;  %v1785_v16 = vand.u32 2147483647, %v1657_v18 }
 0x1fd   : > { %6697 = vst [vmem:[#allocation77_spill] sm:$0xff] %v5028_v40  ;;  %v1793_v0 = vand.u32 2147483647, %v1665_v15 }
 0x1fe   : > { %6695 = vst [vmem:[#allocation75_spill] sm:$0xff] %v5022_v53  ;;  %v5025_v7 = vmul.f32 %v4996_v12, %v1782_v60  ;;  %v1660_v60 = vsub.f32 %v4372_v38, %v4980_v2 }
 0x1ff   : > { %v5009_v33 = vpop.f32.mrf.mxu1  ;;  %v5051_v40 = vmul.f32 %v4996_v12, %v1793_v0  ;;  %v1669_v0 = vsub.f32 %v4393_v35, %v4980_v2 }
 0x200   : > { %605 = vst [vmem:[%s4745_s15 + $0x40] sm:$0xff] %v5009_v33  ;;  %v1788_v18 = vand.u32 2147483647, %v1660_v60  ;;  %v900_v60 = vmul.f32 %v4329_v9, %v4970_v50  ;;  %v901_v9 = vmul.f32 %v4331_v22, %v5014_v20  ;;  %v535_v22 = vpop.f32.mrf.mxu3 }
 0x201   : > { %6696 = vst [vmem:[#allocation76_spill] sm:$0xff] %v5025_v7  ;;  %v1796_v7 = vand.u32 2147483647, %v1668_v25 }
 0x202   : > { %1445 = vmatmul.f32.gmra.mxu3 %v4458_v1  ;;  %v5019_v1 = vmul.f32 %v4874_v46, %v1779_v14  ;;  %v5048_v14 = vmul.f32 %v4996_v12, %v1785_v16  ;;  %6699 = vst [vmem:[#allocation79_spill] sm:$0xff] %v5051_v40  ;;  %v5054_v53 = vmul.f32 %v4996_v12, %v1788_v18 }
 0x203   : > { %v1666_v16 = vsub.f32 %v4384_v59, %v4980_v2 }
 0x204   : > { %6694 = vst [vmem:[#allocation74_spill] sm:$0xff] %v5019_v1  ;;  %v5057_v1 = vmul.f32 %v4996_v12, %v1796_v7  ;;  %v5070_v7 = vpop.f32.mrf.mxu2 }
 0x205   : > { %6698 = vst [vmem:[#allocation78_spill] sm:$0xff] %v5048_v14  ;;  %v1794_v25 = vand.u32 2147483647, %v1666_v16 }
 0x206   : > { %6700 = vst [vmem:[#allocation80_spill] sm:$0xff] %v5054_v53 }
 0x207   : > { %v5035_v46 = vpop.f32.mrf.mxu1  ;;  %6701 = vst [vmem:[#allocation81_spill] sm:$0xff] %v5057_v1  ;;  %v5073_v18 = vmul.f32 %v4996_v12, %v1794_v25 }
 0x208   : > { %606 = vst [vmem:[%s4745_s15 + $0x48] sm:$0xff] %v5035_v46 }
 0x209   : > { %6703 = vst [vmem:[#allocation83_spill] sm:$0xff] %v5073_v18  ;;  %v6717_v18 = vld [vmem:[#allocation58_spill] sm:$0xff] }
 0x20a   : > { %1448 = vmatmul.f32.gmra.mxu3 %v4671_v43  ;;  %v1663_v43 = vsub.f32 %v4378_v10, %v4980_v2 }
 0x20c   : > { %v1791_v15 = vand.u32 2147483647, %v1663_v43  ;;  %v1797_v43 = vand.u32 2147483647, %v1669_v0  ;;  %v5084_v16 = vpop.f32.mrf.mxu2  ;;  %v616_v0 = vmul.f32 %v4206_v6, %v4885_v34  ;;  %v6705_v34 = vld [vmem:[#allocation59_spill] sm:$0xff] }
 0x20e   : > { %v5060_v28 = vmul.f32 %v4996_v12, %v1791_v15  ;;  %v615_v15 = vmul.f32 %v4121_v31, %v4850_v52  ;;  %v620_v31 = vmul.f32 %v4228_v23, %v4982_v30  ;;  %v6708_v23 = vld [vmem:[#allocation35_spill] sm:$0xff] }
 0x20f   : > { %v582_v39 = vpop.f32.mrf.mxu1  ;;  %v904_v30 = vmul.f32 %v6708_v23, %v5084_v16 }
 0x210   : > { %6702 = vst [vmem:[#allocation82_spill] sm:$0xff] %v5060_v28 }
 0x211   : > { %607 = vst [vmem:[%s4745_s15 + $0x50] sm:$0xff] %v582_v39 }
 0x212   : > { %1451 = vmatmul.f32.gmra.mxu3 %v4601_v13  ;;  %v5076_v13 = vmul.f32 %v4996_v12, %v1797_v43 }
 0x214   : > { %6704 = vst [vmem:[#allocation84_spill] sm:$0xff] %v5076_v13  ;;  %v5096_v52 = vpop.f32.mrf.mxu2 }
 0x217   : > { %v5139_v28 = vpop.f32.mrf.mxu1 }
 0x218   : > { %608 = vst [vmem:[%s4745_s15 + $0x58] sm:$0xff] %v5139_v28 }
 0x219   : > { %916 = vadd.xlane.f32.xlu0 %v900_v60  ;;  %v537_v60 = vpop.f32.mrf.mxu3 }
 0x21a   : > { %1454 = vmatmul.f32.gmra.mxu3 %v4470_v63  ;;  %v902_v63 = vmul.f32 %v4334_v32, %v5045_v54  ;;  %v6706_v32 = vld [vmem:[#allocation28_spill] sm:$0xff]  ;;  %v547_v25 = vpack.c.bf16 %v537_v60, %v535_v22  ;;  %v6711_v22 = vld [vmem:[#allocation21_spill] sm:$0xff] }
 0x21b   : > { %v5143_v53 = vadd.s32 4294967256, %v6711_v22  ;;  %v5157_v14 = vadd.s32 4294967240, %v6711_v22  ;;  %v5183_v51 = vadd.s32 4294967216, %v6711_v22  ;;  %v5196_v41 = vadd.s32 4294967200, %v6711_v22 }
 0x21c   : > { %868 = vxpose.xlu2.b32.start [1/16] %v4970_v50, 128  ;;  %v5103_v43 = vpop.f32.mrf.mxu2  ;;  %591 = vmatmul.bf16.gmra.mxu1 %v547_v25  ;;  %v5221_v59 = vadd.s32 4294967176, %v6711_v22 }
 0x21d   : > { %6707 = vst [vmem:[#allocation59_spill] sm:$0xff] %v5103_v43 }
 0x21e   : > { %6729 = vst [vmem:[#allocation87_spill] sm:$0xff] %v5196_v41 }
 0x21f   : > { %6734 = vst [vmem:[#allocation90_spill] sm:$0xff] %v5221_v59 }
 0x220   : > { %633 = vadd.xlane.f32.xlu1 %v615_v15 }
 0x221   : > { %918 = vadd.xlane.f32.xlu0 %v901_v9  ;;  %v6710_v9 = vld [vmem:[#allocation36_spill] sm:$0xff] }
 0x222   : > { %1457 = vmatmul.f32.gmra.mxu3 %v4563_v21  ;;  %v903_v21 = vmul.f32 %v4336_v42, %v5070_v7  ;;  %v6709_v42 = vld [vmem:[#allocation60_spill] sm:$0xff]  ;;  %6718 = vst [vmem:[#allocation36_spill] sm:$0xff] %v5143_v53 }
 0x224   : > { %869 = vxpose.xlu2.b32.cont [2/16] %v5014_v20, 128 }
 0x228   : > { %635 = vadd.xlane.f32.xlu1 %v616_v0  ;;  %v2416_v6 = vpop.permute.xlu2 %2415  ;;  %v905_v0 = vmul.f32 %v6710_v9, %v5096_v52 }
 0x229   : > { %920 = vadd.xlane.f32.xlu0 %v902_v63 }
 0x22a   : > { %1460 = vmatmul.f32.gmra.mxu3 %v4656_v47  ;;  %v623_v47 = vmul.f32 %v6706_v32, %v582_v39  ;;  %v5111_v39 = vpop.f32.mrf.mxu2  ;;  %v6713_v32 = vld [vmem:[#allocation61_spill] sm:$0xff] }
 0x22b   : > { %6721 = vst [vmem:[#allocation61_spill] sm:$0xff] %v5157_v14 }
 0x22c   : > { %870 = vxpose.xlu2.b32.cont [3/16] %v5045_v54, 128 }
 0x230   : > { %643 = vadd.xlane.f32.xlu1 %v620_v31  ;;  %v2422_v15 = vpop.permute.xlu2 %2421 }
 0x231   : > { %922 = vadd.xlane.f32.xlu0 %v903_v21  ;;  %v5114_v21 = vadd.s32 4294967288, %v6711_v22 }
 0x232   : > { %1463 = vmatmul.f32.gmra.mxu3 %v6705_v34  ;;  %v5117_v34 = vadd.s32 4294967280, %v6711_v22  ;;  %v5133_v13 = vpop.f32.mrf.mxu2 }
 0x233   : > { %v2796_v60 = vperm.slane %v2416_v6, %v5114_v21  ;;  %6716 = vst [vmem:[#allocation60_spill] sm:$0xff] %v5133_v13 }
 0x234   : > { %871 = vxpose.xlu2.b32.cont [4/16] %v5070_v7, 128  ;;  %6712 = vst [vmem:[#allocation28_spill] sm:$0xff] %v5117_v34 }
 0x238   : > { %649 = vadd.xlane.f32.xlu1 %v623_v47  ;;  %v2428_v25 = vpop.permute.xlu2 %2427 }
 0x239   : > { %924 = vadd.xlane.f32.xlu0 %v904_v30  ;;  %v5125_v30 = vadd.s32 4294967264, %v6711_v22 }
 0x23a   : > { %1466 = vmatmul.f32.gmra.mxu3 %v6709_v42  ;;  %v6715_v42 = vld [vmem:[#allocation37_spill] sm:$0xff] }
 0x23b   : > { %6714 = vst [vmem:[#allocation35_spill] sm:$0xff] %v5125_v30  ;;  %v906_v9 = vmul.f32 %v6715_v42, %v5103_v43  ;;  %v2045_v42 = vsub.f32 1.0, %v4900_v37 }
 0x23c   : > { %872 = vxpose.xlu2.b32.cont [5/16] %v5084_v16, 128 }
 0x240   : > { %v2419_v63 = vpop.permute.xlu1 %2418  ;;  %v2437_v40 = vpop.permute.xlu2 %2436 }
 0x241   : > { %v2413_v31 = vpop.permute.xlu0 %2412  ;;  %926 = vadd.xlane.f32.xlu0 %v905_v0  ;;  %v2798_v23 = vperm.slane %v2419_v63, %v5117_v34  ;;  %v5130_v0 = vadd.s32 4294967272, %v6711_v22 }
 0x242   : > { %1469 = vmatmul.f32.gmra.mxu3 %v6713_v32  ;;  %v2795_v47 = vperm.slane %v2413_v31, %v6711_v22 }
 0x243   : > { %v2800_v1 = vperm.slane %v2422_v15, %v5130_v0  ;;  %v6720_v15 = vld [vmem:[#allocation38_spill] sm:$0xff] }
 0x244   : > { %873 = vxpose.xlu2.b32.cont [6/16] %v5096_v52, 128  ;;  %v2797_v31 = vsel %vm703_vm0, %v2796_v60, %v2795_v47  ;;  %v5149_v60 = vadd.s32 4294967248, %v6711_v22 }
 0x245   : > { %v2799_v6 = vsel %vm707_vm1, %v2798_v23, %v2797_v31  ;;  %v907_v23 = vmul.f32 %v6720_v15, %v5111_v39  ;;  %v2804_v31 = vperm.slane %v2428_v25, %v5143_v53  ;;  %v5167_v25 = vadd.s32 4294967232, %v6711_v22 }
 0x246   : > { %6719 = vst [vmem:[#allocation21_spill] sm:$0xff] %v5149_v60  ;;  %v5174_v15 = vadd.s32 4294967224, %v6711_v22 }
 0x247   : > { %6723 = vst [vmem:[#allocation58_spill] sm:$0xff] %v5167_v25 }
 0x248   : > { %v2425_v32 = vpop.permute.xlu1 %2424  ;;  %6725 = vst [vmem:[#allocation85_spill] sm:$0xff] %v5174_v15 }
 0x249   : > { %928 = vadd.xlane.f32.xlu0 %v906_v9  ;;  %v2802_v63 = vperm.slane %v2425_v32, %v5125_v30  ;;  %v2434_v47 = vpop.permute.xlu0 %2433  ;;  %v2173_v9 = vmax.f32 %v2045_v42, 0.0  ;;  %v5170_v42 = vpop.f32.mrf.mxu2 }
 0x24a   : > { %1472 = vmatmul.f32.gmra.mxu3 %v6717_v18  ;;  %v2801_v18 = vsel %vm711_vm2, %v2800_v1, %v2799_v6  ;;  %6724 = vst [vmem:[#allocation38_spill] sm:$0xff] %v5170_v42 }
 0x24b   : > { %v2803_v37 = vsel %vm715_vm3, %v2802_v63, %v2801_v18  ;;  %v5163_v63 = vld [vmem:[%s4474_s21 + $0x78] sm:$0xff]  ;;  %v2808_v18 = vperm.slane %v2434_v47, %v5157_v14 }
 0x24c   : > { %874 = vxpose.xlu2.b32.cont [7/16] %v5103_v43, 128  ;;  %v2805_v1 = vsel %vm719_vm4, %v2804_v31, %v2803_v37  ;;  %6722 = vst [vmem:[#allocation37_spill] sm:$0xff] %v5163_v63  ;;  %v2810_v31 = vperm.slane %v2437_v40, %v5167_v25  ;;  %v5191_v40 = vadd.s32 4294967208, %v6711_v22 }
 0x24e   : > { %6728 = vst [vmem:[#allocation86_spill] sm:$0xff] %v5191_v40 }
 0x250   : > { %v2431_v32 = vpop.permute.xlu1 %2430 }
 0x251   : > { %v2806_v8 = vperm.slane %v2431_v32, %v5149_v60  ;;  %930 = vadd.xlane.f32.xlu0 %v907_v23  ;;  %2466 = vperm.xlu1 %3573, %v2173_v9   ;;  %v2443_v37 = vpop.permute.xlu0 %2442  ;;  %v6726_v23 = vld [vmem:[#allocation39_spill] sm:$0xff] }
 0x252   : > { %1475 = vmatmul.f32.gmra.mxu3 %v5163_v63  ;;  %v908_v9 = vmul.f32 %v6726_v23, %v5133_v13  ;;  %6727 = vst [vmem:[#allocation39_spill] sm:$0xff] %v5183_v51  ;;  %v2814_v3 = vperm.slane %v2443_v37, %v5183_v51  ;;  %v5209_v63 = vadd.s32 4294967192, %v6711_v22 }
 0x253   : > { %v2807_v6 = vsel %vm723_vm5, %v2806_v8, %v2805_v1  ;;  %v5180_v1 = vpop.f32.mrf.mxu1 }
 0x254   : > { %875 = vxpose.xlu2.b32.cont [8/16] %v5111_v39, 128  ;;  %v2809_v8 = vsel %vm727_vm6, %v2808_v18, %v2807_v6  ;;  %609 = vst [vmem:[%s4745_s15 + $0x60] sm:$0xff] %v5180_v1  ;;  %v2446_v18 = vpop.permute.xlu2 %2445 }
 0x255   : > { %v2811_v6 = vsel %vm731_vm7, %v2810_v31, %v2809_v8  ;;  %v6731_v31 = vld [vmem:[#allocation40_spill] sm:$0xff] }
 0x256   : > { %6732 = vst [vmem:[#allocation40_spill] sm:$0xff] %v5209_v63 }
 0x258   : > { %v2440_v32 = vpop.permute.xlu1 %2439 }
 0x259   : > { %v2812_v47 = vperm.slane %v2440_v32, %v5174_v15  ;;  %932 = vadd.xlane.f32.xlu0 %v908_v9  ;;  %v5200_v32 = vpop.f32.mrf.mxu2 }
 0x25a   : > { %6730 = vst [vmem:[#allocation88_spill] sm:$0xff] %v5200_v32 }
 0x25b   : > { %v2813_v23 = vsel %vm735_vm8, %v2812_v47, %v2811_v6  ;;  %v909_v47 = vmul.f32 %v6731_v31, %v5170_v42  ;;  %v2816_v6 = vperm.slane %v2446_v18, %v5191_v40  ;;  %v589_v37 = vpop.f32.mrf.mxu1  ;;  %v5216_v31 = vadd.s32 4294967184, %v6711_v22 }
 0x25c   : > { %876 = vxpose.xlu2.b32.cont [9/16] %v5133_v13, 128  ;;  %v2815_v8 = vsel %vm739_vm9, %v2814_v3, %v2813_v23  ;;  %610 = vst [vmem:[%s4745_s15 + $0x68] sm:$0xff] %v589_v37  ;;  %v2452_v3 = vpop.permute.xlu0 %2451  ;;  %v2455_v18 = vpop.permute.xlu2 %2454 }
 0x25d   : > { %v5198_v9 = vpop.f32.mrf.mxu3  ;;  %v2817_v23 = vsel %vm743_vm10, %v2816_v6, %v2815_v8  ;;  %6733 = vst [vmem:[#allocation89_spill] sm:$0xff] %v5216_v31  ;;  %v2820_v43 = vperm.slane %v2452_v3, %v5209_v63  ;;  %v2822_v6 = vperm.slane %v2455_v18, %v5216_v31  ;;  %v6738_v18 = vld [vmem:[#allocation44_spill] sm:$0xff] }
 0x25e   : > { %3427 = vst [vmem:[%s4474_s21 + $0x80] sm:$0xff] %v5198_v9 }
 0x260   : > { %v2449_v13 = vpop.permute.xlu1 %2448 }
 0x261   : > { %v2818_v24 = vperm.slane %v2449_v13, %v5196_v41  ;;  %934 = vadd.xlane.f32.xlu0 %v909_v47 }
 0x263   : > { %v2819_v35 = vsel %vm747_vm11, %v2818_v24, %v2817_v23  ;;  %v6735_v24 = vld [vmem:[#allocation42_spill] sm:$0xff] }
 0x264   : > { %877 = vxpose.xlu2.b32.cont [10/16] %v5170_v42, 128  ;;  %v2821_v47 = vsel %vm6578_vm12, %v2820_v43, %v2819_v35  ;;  %v910_v8 = vmul.f32 %v6735_v24, %v5200_v32  ;;  %v5232_v42 = vpop.f32.mrf.mxu2  ;;  %v5264_v38 = vpop.permute.xlu0 %2460 }
 0x265   : > { %v5223_v13 = vpop.f32.mrf.mxu3  ;;  %6736 = vst [vmem:[#allocation42_spill] sm:$0xff] %v5232_v42  ;;  %v2823_v10 = vsel %vm755_vm13, %v2822_v6, %v2821_v47  ;;  %v911_v24 = vmul.f32 %v6738_v18, %v5232_v42  ;;  %v6741_v6 = vld [vmem:[#allocation27_spill] sm:$0xff] }
 0x266   : > { %3428 = vst [vmem:[%s4474_s21 + $0x88] sm:$0xff] %v5223_v13 }
 0x267   : > { %6745 = vst [vmem:[#allocation27_spill] sm:$0xff] %v5264_v38 }
 0x268   : > { %v2458_v23 = vpop.permute.xlu1 %2457 }
 0x269   : > { %v2824_v3 = vperm.slane %v2458_v23, %v5221_v59  ;;  %936 = vadd.xlane.f32.xlu0 %v910_v8 }
 0x26b   : > { %v5236_v35 = vsel %vm6579_vm14, %v2824_v3, %v2823_v10  ;;  %v6740_v10 = vld [vmem:[#allocation47_spill] sm:$0xff]  ;;  %v626_v3 = vmul.f32 %v6741_v6, %v589_v37 }
 0x26c   : > { %6737 = vst [vmem:[#allocation91_spill] sm:$0xff] %v5236_v35  ;;  %878 = vxpose.xlu2.b32.cont [11/16] %v5200_v32, 128  ;;  %v5245_v23 = vpop.f32.mrf.mxu2  ;;  %v6743_v35 = vld [vmem:[#allocation62_spill] sm:$0xff] }
 0x26d   : > { %v5239_v43 = vpop.f32.mrf.mxu3  ;;  %6739 = vst [vmem:[#allocation44_spill] sm:$0xff] %v5245_v23  ;;  %v912_v8 = vmul.f32 %v6740_v10, %v5245_v23  ;;  %v6746_v10 = vld [vmem:[#allocation50_spill] sm:$0xff] }
 0x26e   : > { %3429 = vst [vmem:[%s4474_s21 + $0x90] sm:$0xff] %v5239_v43 }
 0x271   : > { %938 = vadd.xlane.f32.xlu0 %v911_v24 }
 0x274   : > { %879 = vxpose.xlu2.b32.cont [12/16] %v5232_v42, 128  ;;  %v5258_v24 = vpop.f32.mrf.mxu2  ;;  %v6744_v42 = vld [vmem:[#allocation22_spill] sm:$0xff] }
 0x275   : > { %v5248_v47 = vpop.f32.mrf.mxu3  ;;  %6742 = vst [vmem:[#allocation47_spill] sm:$0xff] %v5258_v24  ;;  %v613_v32 = vmul.f32 %v6744_v42, %v6743_v35  ;;  %v6748_v35 = vld [vmem:[#allocation63_spill] sm:$0xff] }
 0x276   : > { %3430 = vst [vmem:[%s4474_s21 + $0x98] sm:$0xff] %v5248_v47 }
 0x279   : > { %940 = vadd.xlane.f32.xlu0 %v912_v8  ;;  %v913_v8 = vmul.f32 %v6746_v10, %v5258_v24 }
 0x27b   : > { %655 = vadd.xlane.f32.xlu1 %v626_v3 }
 0x27c   : > { %880 = vxpose.xlu2.b32.cont [13/16] %v5245_v23, 128  ;;  %v5273_v6 = vpop.f32.mrf.mxu2  ;;  %v6749_v23 = vld [vmem:[#allocation23_spill] sm:$0xff] }
 0x27d   : > { %v5256_v18 = vpop.f32.mrf.mxu3  ;;  %6747 = vst [vmem:[#allocation62_spill] sm:$0xff] %v5273_v6  ;;  %v614_v38 = vmul.f32 %v6749_v23, %v6748_v35 }
 0x27e   : > { %3431 = vst [vmem:[%s4474_s21 + $0xa0] sm:$0xff] %v5256_v18 }
 0x281   : > { %629 = vadd.xlane.f32.xlu0 %v613_v32  ;;  %v2048_v32 = vsub.f32 1.0, %v4903_v11  ;;  %v6751_v11 = vld [vmem:[#allocation53_spill] sm:$0xff] }
 0x282   : > { %v914_v31 = vmul.f32 %v6751_v11, %v5273_v6 }
 0x283   : > { %v2176_v10 = vmax.f32 %v2048_v32, 0.0 }
 0x284   : > { %881 = vxpose.xlu2.b32.cont [14/16] %v5258_v24, 128  ;;  %v5285_v24 = vpop.f32.mrf.mxu2 }
 0x285   : > { %v5267_v37 = vpop.f32.mrf.mxu3  ;;  %6750 = vst [vmem:[#allocation22_spill] sm:$0xff] %v5285_v24 }
 0x286   : > { %3432 = vst [vmem:[%s4474_s21 + $0xa8] sm:$0xff] %v5267_v37 }
 0x289   : > { %942 = vadd.xlane.f32.xlu0 %v913_v8 }
 0x28c   : > { %v5275_v3 = vpop.xlane.xlu0 %916  ;;  %882 = vxpose.xlu2.b32.cont [15/16] %v5273_v6, 128 }
 0x28d   : > { %v5278_v42 = vpop.f32.mrf.mxu3 }
 0x28e   : > { %3433 = vst [vmem:[%s4474_s21 + $0xb0] sm:$0xff] %v5278_v42 }
 0x291   : > { %631 = vadd.xlane.f32.xlu0 %v614_v38  ;;  %v6752_v38 = vld [vmem:[#allocation56_spill] sm:$0xff] }
 0x292   : > { %v915_v32 = vmul.f32 %v6752_v38, %v5285_v24 }
 0x294   : > { %v5287_v8 = vpop.xlane.xlu0 %918  ;;  %883 = vxpose.xlu2.b32.end [16/16] %v5285_v24, 128  ;;  %2475 = vperm.xlu1 %3573, %v2176_v10   ;;  %v6753_v10 = vld [vmem:[#allocation34_spill] sm:$0xff] }
 0x295   : > { %v1452_v59 = vpop.f32.mrf.mxu3  ;;  %v619_v40 = vmul.f32 %v6753_v10, %v4953_v17  ;;  %v6755_v17 = vld [vmem:[#allocation31_spill] sm:$0xff] }
 0x296   : > { %3434 = vst [vmem:[%s4474_s21 + $0xb8] sm:$0xff] %v1452_v59 }
 0x299   : > { %944 = vadd.xlane.f32.xlu0 %v914_v31 }
 0x29c   : > { %v5293_v63 = vpop.xlane.xlu0 %920 }
 0x29d   : > { %v1455_v23 = vpop.f32.mrf.mxu3 }
 0x29e   : > { %3435 = vst [vmem:[%s4474_s21 + $0xc0] sm:$0xff] %v1455_v23 }
 0x2a1   : > { %946 = vadd.xlane.f32.xlu0 %v915_v32 }
 0x2a4   : > { %v5298_v35 = vpop.xlane.xlu0 %922 }
 0x2a5   : > { %v1458_v41 = vpop.f32.mrf.mxu3 }
 0x2a6   : > { %3436 = vst [vmem:[%s4474_s21 + $0xc8] sm:$0xff] %v1458_v41 }
 0x2a9   : > { %641 = vadd.xlane.f32.xlu0 %v619_v40  ;;  %v622_v40 = vmul.f32 %v6755_v17, %v5035_v46 }
 0x2ac   : > { %v5303_v11 = vpop.xlane.xlu0 %924 }
 0x2ad   : > { %v1461_v31 = vpop.f32.mrf.mxu3 }
 0x2ae   : > { %3437 = vst [vmem:[%s4474_s21 + $0xd0] sm:$0xff] %v1461_v31 }
 0x2b4   : > { %v5306_v6 = vpop.xlane.xlu0 %926 }
 0x2b5   : > { %v884_v51 = vpop.trf.xlu2  ;;  %v1464_v15 = vpop.f32.mrf.mxu3 }
 0x2b6   : > { %v997_v38 = vmul.f32 %v884_v51, %v4970_v50  ;;  %3438 = vst [vmem:[%s4474_s21 + $0xd8] sm:$0xff] %v1464_v15 }
 0x2b8   : > { %1013 = vadd.xlane.f32.xlu0 %v997_v38 }
 0x2bc   : > { %v5310_v32 = vpop.xlane.xlu0 %928 }
 0x2bd   : > { %6754 = vst [vmem:[#allocation50_spill] sm:$0xff] %v5310_v32  ;;  %v885_v24 = vpop.trf.xlu2  ;;  %v1467_v25 = vpop.f32.mrf.mxu3 }
 0x2be   : > { %3439 = vst [vmem:[%s4474_s21 + $0xe0] sm:$0xff] %v1467_v25  ;;  %v998_v60 = vmul.f32 %v885_v24, %v5014_v20 }
 0x2c0   : > { %647 = vadd.xlane.f32.xlu0 %v622_v40 }
 0x2c4   : > { %v5315_v10 = vpop.xlane.xlu0 %930 }
 0x2c5   : > { %6756 = vst [vmem:[#allocation63_spill] sm:$0xff] %v5315_v10  ;;  %v886_v36 = vpop.trf.xlu2  ;;  %v1470_v14 = vpop.f32.mrf.mxu3 }
 0x2c6   : > { %3440 = vst [vmem:[%s4474_s21 + $0xe8] sm:$0xff] %v1470_v14  ;;  %v999_v32 = vmul.f32 %v886_v36, %v5045_v54  ;;  %v6757_v36 = vld [vmem:[#allocation26_spill] sm:$0xff] }
 0x2c7   : > { %v625_v54 = vmul.f32 %v6757_v36, %v5180_v1 }
 0x2c8   : > { %1015 = vadd.xlane.f32.xlu0 %v998_v60 }
 0x2cc   : > { %v5319_v51 = vpop.xlane.xlu0 %932 }
 0x2cd   : > { %v887_v50 = vpop.trf.xlu2  ;;  %v1473_v38 = vpop.f32.mrf.mxu3 }
 0x2ce   : > { %3441 = vst [vmem:[%s4474_s21 + $0xf0] sm:$0xff] %v1473_v38  ;;  %v1000_v10 = vmul.f32 %v887_v50, %v5070_v7  ;;  %v6761_v50 = vld [vmem:[#allocation65_spill] sm:$0xff] }
 0x2d0   : > { %1017 = vadd.xlane.f32.xlu0 %v999_v32  ;;  %v6760_v32 = vld [vmem:[#allocation33_spill] sm:$0xff] }
 0x2d4   : > { %v5323_v46 = vpop.xlane.xlu0 %934 }
 0x2d5   : > { %v5325_v17 = vpop.trf.xlu2  ;;  %v1476_v40 = vpop.f32.mrf.mxu3 }
 0x2d6   : > { %3442 = vst [vmem:[%s4474_s21 + $0xf8] sm:$0xff] %v1476_v40  ;;  %1496 = vmatpush.msrb.mxu0 %v1476_v40 }
 0x2d8   : > { %1019 = vadd.xlane.f32.xlu0 %v1000_v10  ;;  %1497 = vmatpush.msrb.mxu0 %v1473_v38  ;;  %v634_v38 = vpop.xlane.xlu1 %633 }
 0x2da   : > { %1498 = vmatpush.msrb.mxu0 %v1470_v14 }
 0x2dc   : > { %v5329_v20 = vpop.xlane.xlu0 %936  ;;  %1499 = vmatpush.msrb.mxu0 %v1467_v25  ;;  %v3896_v25 = vmov 6.0  }
 0x2dd   : > { %v5331_v60 = vpop.trf.xlu2  ;;  %3608 = vrcp.f32 %v3896_v25 }
 0x2de   : > { %1500 = vmatpush.msrb.mxu0 %v1464_v15 }
 0x2e0   : > { %653 = vadd.xlane.f32.xlu0 %v625_v54  ;;  %1501 = vmatpush.msrb.mxu0 %v1461_v31 }
 0x2e2   : > { %1502 = vmatpush.msrb.mxu0 %v1458_v41  ;;  %v2046_v41 = vsub.f32 1.0, %v4906_v44 }
 0x2e4   : > { %v5335_v24 = vpop.xlane.xlu0 %938  ;;  %1503 = vmatpush.msrb.mxu0 %v1455_v23 }
 0x2e5   : > { %v5337_v7 = vpop.trf.xlu2 }
 0x2e6   : > { %1504 = vmatpush.msrb.mxu0 %v1452_v59  ;;  %v2174_v59 = vmax.f32 %v2046_v41, 0.0  ;;  %v2054_v41 = vsub.f32 1.0, %v4930_v27 }
 0x2e8   : > { %1505 = vmatpush.msrb.mxu0 %v5278_v42  ;;  %v3609_v42 = vpop.eup %3608 }
 0x2e9   : > { %v662_v23 = vmul.f32 6.0, %v3609_v42  ;;  %vm666_vm15 = vweird.f32 %v3609_v42 }
 0x2ea   : > { %1506 = vmatpush.msrb.mxu0 %v5267_v37 }
 0x2eb   : > { %v663_v31 = vsub.f32 1.0, %v662_v23  ;;  %v636_v23 = vpop.xlane.xlu1 %635 }
 0x2ec   : > { %v5341_v14 = vpop.xlane.xlu0 %940  ;;  %1507 = vmatpush.msrb.mxu0 %v5256_v18  ;;  %v6758_v18 = vld [vmem:[#allocation64_spill] sm:$0xff] }
 0x2ed   : > { %v891_v15 = vpop.trf.xlu2  ;;  %v664_v44 = vmul.f32 %v3609_v42, %v663_v31  ;;  %v2182_v31 = vmax.f32 %v2054_v41, 0.0 }
 0x2ee   : > { %v1004_v1 = vmul.f32 %v891_v15, %v5111_v39  ;;  %1508 = vmatpush.msrb.mxu0 %v5248_v47  ;;  %v6763_v15 = vld [vmem:[#allocation32_spill] sm:$0xff] }
 0x2ef   : > { %v665_v47 = vadd.f32 %v3609_v42, %v664_v44  ;;  %v1655_v44 = vsub.f32 %v4357_v62, %v4980_v2 }
 0x2f0   : > { %1027 = vadd.xlane.f32.xlu1 %v1004_v1  ;;  %1509 = vmatpush.msrb.mxu0 %v5239_v43  ;;  %v6759_v43 = vld [vmem:[#allocation66_spill] sm:$0xff]  ;;  %v618_v1 = vmul.f32 %v6763_v15, %v4944_v4  ;;  %v1002_v15 = vmul.f32 %v5331_v60, %v5096_v52 }
 0x2f1   : > { %v617_v10 = vmul.f32 %v6760_v32, %v6759_v43  ;;  %v6764_v43 = vld [vmem:[#allocation30_spill] sm:$0xff] }
 0x2f2   : > { %1510 = vmatpush.msrb.mxu0 %v5223_v13  ;;  %v2051_v13 = vsub.f32 1.0, %v6761_v50  ;;  %v621_v32 = vmul.f32 %v6764_v43, %v5009_v33  ;;  %v1783_v50 = vand.u32 2147483647, %v1655_v44  ;;  %v3617_v52 = vld [vmem:[%s4474_s21 + $0x30] sm:$0xff] }
 0x2f4   : > { %v630_v37 = vpop.xlane.xlu0 %629  ;;  %2469 = vperm.xlu0 %3575, %v2174_v59   ;;  %1511 = vmatpush.msrb.mxu0 %v5198_v9  ;;  %v5357_v9 = vsel %vm666_vm15, %v3609_v42, %v665_v47  ;;  %v2179_v54 = vmax.f32 %v2051_v13, 0.0  ;;  %vm3043_vm15 = vcmask 1041409  }
 0x2f5   : > { %1512 = vmatmul.f32.vlgmr.msrb.gmra.mxu0 %v6758_v18  ;;  %6762 = vst [vmem:[#allocation23_spill] sm:$0xff] %v5357_v9  ;;  %v670_v59 = vmul.f32 %v5357_v9, %v634_v38  ;;  %v671_v18 = vmul.f32 %v5357_v9, %v636_v23  ;;  %v3615_v38 = vld [vmem:[%s4474_s21 + $0x20] sm:$0xff]  ;;  %v5402_v44 = vpop.trf.xlu2 }
 0x2f7   : > { %v706_v4 = vperm.slane %v670_v59, %v5117_v34  ;;  %v710_v47 = vperm.slane %v671_v18, %v5130_v0 }
 0x2fc   : > { %v5351_v39 = vpop.xlane.xlu0 %942 }
 0x2fd   : > { %1515 = vmatmul.f32.gmra.mxu0 %v4813_v19  ;;  %v668_v19 = vmul.f32 %v5357_v9, %v630_v37 }
 0x2ff   : > { %v700_v42 = vperm.slane %v668_v19, %v6711_v22  ;;  %v6765_v19 = vld [vmem:[#allocation29_spill] sm:$0xff] }
 0x300   : > { %v624_v33 = vmul.f32 %v6765_v19, %v5139_v28  ;;  %v1001_v28 = vmul.f32 %v5325_v17, %v5084_v16 }
 0x304   : > { %v632_v40 = vpop.xlane.xlu0 %631 }
 0x305   : > { %637 = vadd.xlane.f32.xlu2 %v617_v10  ;;  %1518 = vmatmul.f32.gmra.mxu0 %v4798_v56  ;;  %v669_v36 = vmul.f32 %v5357_v9, %v632_v40  ;;  %v3614_v56 = vld [vmem:[%s4474_s21 + $0x18] sm:$0xff]  ;;  %v2057_v10 = vsub.f32 1.0, %v4935_v45 }
 0x307   : > { %v702_v25 = vperm.slane %v669_v36, %v5114_v21  ;;  %v2185_v40 = vmax.f32 %v2057_v10, 0.0  ;;  %v1932_v36 = vmul.f32 %v4996_v12, %v1783_v50 }
 0x309   : > { %2484 = vperm.xlu1 %3573, %v2179_v54   ;;  %v704_v37 = vsel %vm703_vm0, %v702_v25, %v700_v42  ;;  %v1658_v54 = vsub.f32 %v4435_v26, %v4980_v2  ;;  %v2060_v25 = vsub.f32 1.0, %v1932_v36  ;;  %v1661_v42 = vsub.f32 %v4487_v5, %v4980_v2  ;;  %v5418_v36 = vpop.trf.xlu2 }
 0x30a   : > { %v708_v27 = vsel %vm707_vm1, %v706_v4, %v704_v37  ;;  %v1664_v37 = vsub.f32 %v4524_v29, %v4980_v2  ;;  %v2049_v4 = vsub.f32 1.0, %v4938_v48 }
 0x30b   : > { %v5380_v13 = vsel %vm711_vm2, %v710_v47, %v708_v27  ;;  %v1786_v45 = vand.u32 2147483647, %v1658_v54  ;;  %v2188_v41 = vmax.f32 %v2060_v25, 0.0  ;;  %v3618_v27 = vld [vmem:[%s4474_s21 + $0x38] sm:$0xff]  ;;  %v3619_v54 = vld [vmem:[%s4474_s21 + $0x40] sm:$0xff] }
 0x30c   : > { %v1792_v17 = vand.u32 2147483647, %v1664_v37  ;;  %v2177_v10 = vmax.f32 %v2049_v4, 0.0  ;;  %v6769_v37 = vld [vmem:[#allocation63_spill] sm:$0xff] }
 0x30d   : > { %639 = vadd.xlane.f32.xlu2 %v618_v1  ;;  %1521 = vmatmul.f32.gmra.mxu0 %v3614_v56  ;;  %v3616_v1 = vld [vmem:[%s4474_s21 + $0x28] sm:$0xff]  ;;  %v1935_v59 = vmul.f32 %v4996_v12, %v1786_v45  ;;  %v1789_v56 = vand.u32 2147483647, %v1661_v42  ;;  %v965_v45 = vperm.slane %v5287_v8, %v5114_v21  ;;  %v6771_v4 = vld [vmem:[#allocation43_spill] sm:$0xff] }
 0x30e   : > { %v1941_v43 = vmul.f32 %v4996_v12, %v1792_v17  ;;  %v3620_v17 = vld [vmem:[%s4474_s21 + $0x48] sm:$0xff] }
 0x30f   : > { %v2063_v23 = vsub.f32 1.0, %v1935_v59  ;;  %v1938_v18 = vmul.f32 %v4996_v12, %v1789_v56  ;;  %v971_v59 = vperm.slane %v5303_v11, %v5125_v30 }
 0x311   : > { %2493 = vperm.xlu1 %3573, %v2182_v31   ;;  %v2191_v60 = vmax.f32 %v2063_v23, 0.0  ;;  %v5400_v31 = vpop.f32.mrf.mxu1  ;;  %v2066_v16 = vsub.f32 1.0, %v1938_v18  ;;  %v973_v23 = vperm.slane %v5306_v6, %v5143_v53  ;;  %v5447_v11 = vpop.trf.xlu2 }
 0x312   : > { %611 = vst [vmem:[%s4745_s15 + $0x70] sm:$0xff] %v5400_v31 }
 0x313   : > { %v2194_v47 = vmax.f32 %v2066_v16, 0.0  ;;  %6770 = vst [vmem:[#allocation53_spill] sm:$0xff] %v5447_v11 }
 0x315   : > { %645 = vadd.xlane.f32.xlu2 %v621_v32  ;;  %1524 = vmatmul.f32.gmra.mxu0 %v3615_v38  ;;  %v1667_v32 = vsub.f32 %v4555_v61, %v4980_v2  ;;  %v5416_v38 = vperm.slane %v4708_v57, 3 }
 0x317   : > { %v1795_v48 = vand.u32 2147483647, %v1667_v32  ;;  %v1670_v25 = vsub.f32 %v4353_v58, %v5416_v38 }
 0x319   : > { %2502 = vperm.xlu1 %3573, %v2185_v40   ;;  %v5411_v50 = vpop.f32.mrf.mxu1  ;;  %v2069_v40 = vsub.f32 1.0, %v1941_v43  ;;  %v1944_v2 = vmul.f32 %v4996_v12, %v1795_v48  ;;  %v969_v12 = vperm.slane %v5298_v35, %v5130_v0  ;;  %v6768_v35 = vld [vmem:[#allocation61_spill] sm:$0xff] }
 0x31a   : > { %612 = vst [vmem:[%s4745_s15 + $0x78] sm:$0xff] %v5411_v50  ;;  %v977_v16 = vperm.slane %v6769_v37, %v6768_v35  ;;  %v6773_v48 = vld [vmem:[#allocation85_spill] sm:$0xff] }
 0x31b   : > { %v2197_v19 = vmax.f32 %v2069_v40, 0.0  ;;  %v2072_v8 = vsub.f32 1.0, %v1944_v2 }
 0x31d   : > { %651 = vadd.xlane.f32.xlu2 %v624_v33  ;;  %1527 = vmatmul.f32.gmra.mxu0 %v3616_v1  ;;  %v2044_v33 = vsub.f32 1.0, %v4941_v49  ;;  %v945_v1 = vpop.xlane.xlu0 %944  ;;  %v964_v49 = vperm.slane %v5275_v3, %v6711_v22  ;;  %v2200_v32 = vmax.f32 %v2072_v8, 0.0 }
 0x31e   : > { %1023 = vadd.xlane.f32.xlu0 %v1002_v15  ;;  %v967_v15 = vperm.slane %v5293_v63, %v5117_v34 }
 0x31f   : > { %v2172_v42 = vmax.f32 %v2044_v33, 0.0  ;;  %v966_v63 = vsel %vm703_vm0, %v965_v45, %v964_v49  ;;  %v6774_v33 = vld [vmem:[#allocation39_spill] sm:$0xff]  ;;  %v6775_v45 = vld [vmem:[#allocation86_spill] sm:$0xff] }
 0x320   : > { %v968_v56 = vsel %vm707_vm1, %v967_v15, %v966_v63  ;;  %v983_v2 = vperm.slane %v5329_v20, %v6774_v33  ;;  %v6776_v49 = vld [vmem:[#allocation87_spill] sm:$0xff] }
 0x321   : > { %2511 = vperm.xlu1 %3573, %v2188_v41   ;;  %v5430_v41 = vperm.slane %v4686_v55, 3  ;;  %v970_v3 = vsel %vm711_vm2, %v969_v12, %v968_v56  ;;  %v987_v12 = vperm.slane %v5341_v14, %v6776_v49  ;;  %v3621_v14 = vld [vmem:[%s4474_s21 + $0x50] sm:$0xff] }
 0x322   : > { %v972_v6 = vsel %vm715_vm3, %v971_v59, %v970_v3 }
 0x323   : > { %v974_v40 = vsel %vm719_vm4, %v973_v23, %v972_v6  ;;  %v6778_v23 = vld [vmem:[#allocation89_spill] sm:$0xff] }
 0x324   : > { %v991_v56 = vperm.slane %v945_v1, %v6778_v23  ;;  %v5481_v1 = vpop.trf.xlu2 }
 0x325   : > { %1021 = vadd.xlane.f32.xlu2 %v1001_v28  ;;  %1530 = vmatmul.f32.gmra.mxu0 %v3617_v52  ;;  %v1798_v28 = vand.u32 2147483647, %v1670_v25  ;;  %v6766_v52 = vld [vmem:[#allocation21_spill] sm:$0xff]  ;;  %v947_v59 = vpop.xlane.xlu0 %946  ;;  %6781 = vst [vmem:[#allocation56_spill] sm:$0xff] %v5481_v1 }
 0x329   : > { %2520 = vperm.xlu1 %3573, %v2191_v60   ;;  %v6767_v60 = vld [vmem:[#allocation50_spill] sm:$0xff] }
 0x32a   : > { %v975_v18 = vperm.slane %v6767_v60, %v6766_v52  ;;  %v6779_v60 = vld [vmem:[#allocation90_spill] sm:$0xff] }
 0x32d   : > { %1533 = vmatmul.f32.gmra.mxu0 %v3618_v27  ;;  %v1673_v27 = vsub.f32 %v6771_v4, %v5416_v38 }
 0x331   : > { %2529 = vperm.xlu1 %3573, %v2194_v47   ;;  %v6772_v47 = vld [vmem:[#allocation58_spill] sm:$0xff] }
 0x332   : > { %2478 = vperm.xlu0 %3575, %v2177_v10   ;;  %v979_v43 = vperm.slane %v5319_v51, %v6772_v47  ;;  %v1947_v10 = vmul.f32 %v5430_v41, %v1798_v28  ;;  %v985_v51 = vperm.slane %v5335_v24, %v6775_v45  ;;  %v6777_v28 = vld [vmem:[#allocation40_spill] sm:$0xff] }
 0x333   : > { %v989_v63 = vperm.slane %v5351_v39, %v6777_v28  ;;  %v6780_v39 = vld [vmem:[#allocation45_spill] sm:$0xff] }
 0x335   : > { %1536 = vmatmul.f32.gmra.mxu0 %v3619_v54  ;;  %v981_v54 = vperm.slane %v5323_v46, %v6773_v48  ;;  %v1801_v46 = vand.u32 2147483647, %v1673_v27 }
 0x339   : > { %2538 = vperm.xlu1 %3573, %v2197_v19   ;;  %v976_v19 = vsel %vm723_vm5, %v975_v18, %v974_v40  ;;  %v993_v18 = vperm.slane %v947_v59, %v6779_v60  ;;  %v3622_v40 = vld [vmem:[%s4474_s21 + $0x58] sm:$0xff] }
 0x33a   : > { %v978_v25 = vsel %vm727_vm6, %v977_v16, %v976_v19  ;;  %v1950_v16 = vmul.f32 %v5430_v41, %v1801_v46 }
 0x33b   : > { %v980_v15 = vsel %vm731_vm7, %v979_v43, %v978_v25 }
 0x33c   : > { %v982_v8 = vsel %vm735_vm8, %v981_v54, %v980_v15  ;;  %v5494_v15 = vpop.xlane.xlu0 %641 }
 0x33d   : > { %2463 = vperm.xlu2 %3574, %v2172_v42   ;;  %1539 = vmatmul.f32.gmra.mxu0 %v3620_v17  ;;  %v2075_v42 = vsub.f32 1.0, %v1947_v10  ;;  %v984_v20 = vsel %vm739_vm9, %v983_v2, %v982_v8  ;;  %v1676_v17 = vsub.f32 %v6780_v39, %v5416_v38  ;;  %v6782_v2 = vld [vmem:[#allocation48_spill] sm:$0xff] }
 0x33e   : > { %v986_v24 = vsel %vm743_vm10, %v985_v51, %v984_v20  ;;  %v1679_v25 = vsub.f32 %v6782_v2, %v5416_v38  ;;  %v5492_v51 = vpop.trf.xlu2 }
 0x33f   : > { %v988_v3 = vsel %vm747_vm11, %v987_v12, %v986_v24  ;;  %v2203_v37 = vmax.f32 %v2075_v42, 0.0  ;;  %v1804_v10 = vand.u32 2147483647, %v1676_v17  ;;  %6783 = vst [vmem:[#allocation34_spill] sm:$0xff] %v5492_v51  ;;  %v3623_v42 = vld [vmem:[%s4474_s21 + $0x60] sm:$0xff] }
 0x340   : > { %v990_v27 = vsel %vm6578_vm12, %v989_v63, %v988_v3  ;;  %v1807_v59 = vand.u32 2147483647, %v1679_v25  ;;  %v6784_v63 = vld [vmem:[#allocation51_spill] sm:$0xff] }
 0x341   : > { %2547 = vperm.xlu1 %3573, %v2200_v32   ;;  %v992_v6 = vsel %vm755_vm13, %v991_v56, %v990_v27  ;;  %v2078_v32 = vsub.f32 1.0, %v1950_v16  ;;  %v1953_v19 = vmul.f32 %v5430_v41, %v1804_v10  ;;  %v1682_v20 = vsub.f32 %v6784_v63, %v5416_v38  ;;  %v6785_v56 = vld [vmem:[#allocation59_spill] sm:$0xff]  ;;  %v3624_v16 = vld [vmem:[%s4474_s21 + $0x68] sm:$0xff] }
 0x342   : > { %v994_v43 = vsel %vm6579_vm14, %v993_v18, %v992_v6  ;;  %v1956_v8 = vmul.f32 %v5430_v41, %v1807_v59  ;;  %v1003_v24 = vmul.f32 %v5337_v7, %v6785_v56  ;;  %v6787_v6 = vld [vmem:[#allocation54_spill] sm:$0xff]  ;;  %v5513_v10 = vperm.slane %v4708_v57, 4 }
 0x343   : > { %996 = vst [vmem:[%s6580_s22] sm:$0x1] %v994_v43  ;;  %v2206_v54 = vmax.f32 %v2078_v32, 0.0  ;;  %v2081_v12 = vsub.f32 1.0, %v1953_v19  ;;  %v1810_v3 = vand.u32 2147483647, %v1682_v20  ;;  %v1685_v43 = vsub.f32 %v6787_v6, %v5416_v38  ;;  %v6788_v32 = vld [vmem:[#allocation25_spill] sm:$0xff] }
 0x344   : > { %v5502_v18 = vpop.xlane.xlu0 %1013  ;;  %v628_v7 = vmul.f32 %v6788_v32, %v5411_v50  ;;  %v6789_v19 = vld [vmem:[#allocation24_spill] sm:$0xff]  ;;  %v6791_v50 = vld [vmem:[#allocation41_spill] sm:$0xff]  ;;  %v5526_v56 = vperm.slane %v4686_v55, 4  ;;  %s3688_s22 = scalar_lea.hbm %s3687_s24, 1 }
 0x345   : > { %1542 = vmatmul.f32.gmra.mxu0 %v3621_v14  ;;  %v2209_v46 = vmax.f32 %v2081_v12, 0.0  ;;  %v2084_v14 = vsub.f32 1.0, %v1956_v8  ;;  %v1959_v27 = vmul.f32 %v5430_v41, %v1810_v3  ;;  %v627_v25 = vmul.f32 %v6789_v19, %v5400_v31  ;;  %p3689_p6 = scmp.ne.s32.totalorder %s3687_s24, %s3688_s22  ;;  %p3694_p1 = scmp.lt.s32.totalorder %s3692_s10, %s3688_s22 }
 0x346   : > { %v1688_v20 = vsub.f32 %v6791_v50, %v5513_v10 }
 0x347   : > { %v2212_v17 = vmax.f32 %v2084_v14, 0.0  ;;  %v6792_v14 = vld [vmem:[#allocation37_spill] sm:$0xff]  ;;  %p3690_p9 = pnand %p3689_p6, %p3996_p11  ;;  %p3695_p3 = por %p3694_p1, %p3693_p0 }
 0x348   : > { %v1816_v31 = vand.u32 2147483647, %v1688_v20  ;;  %v6796_v20 = vld [vmem:[#allocation49_spill] sm:$0xff] }
 0x349   : > { %2556 = vperm.xlu1 %3573, %v2203_v37   ;;  %v5504_v37 = vpop.trf.xlu2  ;;  %p3691_p13 = pneg %p3690_p9 }
 0x34a   : > { %6786 = vst [vmem:[#allocation31_spill] sm:$0xff] %v5504_v37 }
 0x34b   : > { %p3696_p4 = pnand %p3695_p3, %p3691_p13 }
 0x34c   : > { %v5517_v12 = vpop.xlane.xlu0 %647 }
 0x34d   : > { %1545 = vmatmul.f32.gmra.mxu0 %v3622_v40  ;;  %v2087_v40 = vsub.f32 1.0, %v1959_v27  ;;  %v6793_v27 = vld [vmem:[#allocation46_spill] sm:$0xff] }
 0x351   : > { %2565 = vperm.xlu1 %3573, %v2206_v54   ;;  %v1813_v54 = vand.u32 2147483647, %v1685_v43  ;;  %v5519_v59 = vpop.trf.xlu2  ;;  %v1691_v43 = vsub.f32 %v6793_v27, %v5513_v10 }
 0x352   : > { %6790 = vst [vmem:[#allocation26_spill] sm:$0xff] %v5519_v59 }
 0x353   : > { %v1962_v8 = vmul.f32 %v5430_v41, %v1813_v54 }
 0x354   : > { %v5529_v3 = vpop.xlane.xlu0 %1015 }
 0x355   : > { %1548 = vmatmul.f32.gmra.mxu0 %v3623_v42  ;;  %v3625_v42 = vld [vmem:[%s4474_s21 + $0x70] sm:$0xff] }
 0x359   : > { %2574 = vperm.xlu1 %3573, %v2209_v46   ;;  %v2215_v46 = vmax.f32 %v2087_v40, 0.0  ;;  %v5534_v32 = vpop.trf.xlu2 }
 0x35a   : > { %6794 = vst [vmem:[#allocation64_spill] sm:$0xff] %v5534_v32 }
 0x35c   : > { %1025 = vadd.xlane.f32.xlu0 %v1003_v24  ;;  %v2090_v24 = vsub.f32 1.0, %v1962_v8  ;;  %v5542_v32 = vpop.xlane.xlu0 %1017 }
 0x35d   : > { %1551 = vmatmul.f32.gmra.mxu0 %v3624_v16 }
 0x35e   : > { %v2218_v16 = vmax.f32 %v2090_v24, 0.0  ;;  %v1694_v24 = vsub.f32 %v6796_v20, %v5513_v10 }
 0x361   : > { %2583 = vperm.xlu1 %3573, %v2212_v17   ;;  %v1965_v17 = vmul.f32 %v5526_v56, %v1816_v31 }
 0x363   : > { %v2093_v19 = vsub.f32 1.0, %v1965_v17  ;;  %v6798_v17 = vld [vmem:[#allocation69_spill] sm:$0xff] }
 0x364   : > { %659 = vadd.xlane.f32.xlu0 %v628_v7  ;;  %v6795_v7 = vld [vmem:[#allocation67_spill] sm:$0xff] }
 0x365   : > { %1554 = vmatmul.f32.gmra.mxu0 %v3625_v42  ;;  %v2052_v40 = vsub.f32 1.0, %v6795_v7 }
 0x366   : > { %657 = vadd.xlane.f32.xlu2 %v627_v25  ;;  %v1819_v25 = vand.u32 2147483647, %v1691_v43  ;;  %v2055_v43 = vsub.f32 1.0, %v6798_v17 }
 0x367   : > { %v2180_v42 = vmax.f32 %v2052_v40, 0.0 }
 0x368   : > { %v1968_v8 = vmul.f32 %v5526_v56, %v1819_v25 }
 0x369   : > { %2592 = vperm.xlu1 %3573, %v2215_v46   ;;  %v2221_v46 = vmax.f32 %v2093_v19, 0.0  ;;  %v1822_v19 = vand.u32 2147483647, %v1694_v24  ;;  %v6800_v24 = vld [vmem:[#allocation70_spill] sm:$0xff] }
 0x36b   : > { %v1971_v23 = vmul.f32 %v5526_v56, %v1822_v19 }
 0x36d   : > { %1557 = vmatmul.f32.gmra.mxu0 %v6792_v14  ;;  %v6797_v14 = vld [vmem:[#allocation68_spill] sm:$0xff] }
 0x36e   : > { %v2047_v59 = vsub.f32 1.0, %v6797_v14  ;;  %v2183_v14 = vmax.f32 %v2055_v43, 0.0  ;;  %v6801_v43 = vld [vmem:[#allocation71_spill] sm:$0xff] }
 0x370   : > { %v2175_v25 = vmax.f32 %v2047_v59, 0.0  ;;  %v2050_v59 = vsub.f32 1.0, %v6800_v24 }
 0x371   : > { %2601 = vperm.xlu1 %3573, %v2218_v16  }
 0x372   : > { %v1513_v54 = vpop.f32.mrf.mxu0 }
 0x373   : > { %3443 = vst [vmem:[%s4474_s21 + $0x100] sm:$0xff] %v1513_v54  ;;  %v2096_v54 = vsub.f32 1.0, %v1968_v8 }
 0x375   : > { %v2224_v60 = vmax.f32 %v2096_v54, 0.0 }
 0x378   : > { %v638_v31 = vpop.xlane.xlu2 %637  ;;  %2487 = vperm.xlu0 %3575, %v2180_v42   ;;  %v644_v42 = vpop.xlane.xlu1 %643 }
 0x379   : > { %v672_v16 = vmul.f32 %v5357_v9, %v638_v31  ;;  %2610 = vperm.xlu1 %3573, %v2221_v46   ;;  %v6799_v46 = vld [vmem:[#allocation52_spill] sm:$0xff]  ;;  %v675_v17 = vmul.f32 %v5357_v9, %v644_v42 }
 0x37a   : > { %v1516_v40 = vpop.f32.mrf.mxu0  ;;  %v1697_v31 = vsub.f32 %v6799_v46, %v5513_v10 }
 0x37b   : > { %v714_v7 = vperm.slane %v672_v16, %v5125_v30  ;;  %3444 = vst [vmem:[%s4474_s21 + $0x108] sm:$0xff] %v1516_v40  ;;  %v674_v16 = vmul.f32 %v5357_v9, %v5494_v15  ;;  %v5559_v40 = vpop.xlane.xlu0 %1019  ;;  %v726_v24 = vperm.slane %v675_v17, %v6768_v35 }
 0x37c   : > { %v1825_v51 = vand.u32 2147483647, %v1697_v31 }
 0x37d   : > { %v716_v37 = vsel %vm715_vm3, %v714_v7, %v5380_v13  ;;  %v2058_v7 = vsub.f32 1.0, %v6801_v43  ;;  %v722_v15 = vperm.slane %v674_v16, %v6766_v52 }
 0x37e   : > { %2472 = vperm.xlu2 %3574, %v2175_v25   ;;  %v2099_v25 = vsub.f32 1.0, %v1971_v23  ;;  %v6802_v23 = vld [vmem:[#allocation55_spill] sm:$0xff] }
 0x37f   : > { %v1700_v31 = vsub.f32 %v6802_v23, %v5513_v10 }
 0x380   : > { %v640_v8 = vpop.xlane.xlu2 %639  ;;  %2496 = vperm.xlu0 %3575, %v2183_v14   ;;  %v2178_v14 = vmax.f32 %v2050_v59, 0.0  ;;  %v2227_v1 = vmax.f32 %v2099_v25, 0.0  ;;  %v650_v16 = vpop.xlane.xlu1 %649  ;;  %v677_v59 = vmul.f32 %v5357_v9, %v5517_v12  ;;  %v6804_v25 = vld [vmem:[#allocation73_spill] sm:$0xff] }
 0x381   : > { %v673_v13 = vmul.f32 %v5357_v9, %v640_v8  ;;  %2619 = vperm.xlu1 %3573, %v2224_v60   ;;  %v2186_v60 = vmax.f32 %v2058_v7, 0.0 }
 0x382   : > { %v1519_v19 = vpop.f32.mrf.mxu0  ;;  %v734_v12 = vperm.slane %v677_v59, %v6773_v48 }
 0x383   : > { %v718_v54 = vperm.slane %v673_v13, %v5143_v53  ;;  %3445 = vst [vmem:[%s4474_s21 + $0x110] sm:$0xff] %v1519_v19  ;;  %v1974_v13 = vmul.f32 %v5526_v56, %v1825_v51  ;;  %v678_v19 = vmul.f32 %v5357_v9, %v650_v16  ;;  %v5578_v51 = vperm.slane %v4708_v57, 5  ;;  %v654_v16 = vpop.xlane.xlu0 %653 }
 0x384   : > { %v680_v59 = vmul.f32 %v5357_v9, %v654_v16 }
 0x385   : > { %v720_v42 = vsel %vm719_vm4, %v718_v54, %v716_v37  ;;  %v6803_v37 = vld [vmem:[#allocation72_spill] sm:$0xff] }
 0x386   : > { %v724_v8 = vsel %vm723_vm5, %v722_v15, %v720_v42  ;;  %2481 = vperm.xlu2 %3574, %v2178_v14   ;;  %v2053_v54 = vsub.f32 1.0, %v6803_v37  ;;  %v2061_v15 = vsub.f32 1.0, %v6804_v25  ;;  %v2102_v42 = vsub.f32 1.0, %v1974_v13 }
 0x387   : > { %v728_v43 = vsel %vm727_vm6, %v726_v24, %v724_v8  ;;  %v1828_v8 = vand.u32 2147483647, %v1700_v31  ;;  %v738_v37 = vperm.slane %v678_v19, %v6774_v33  ;;  %v1703_v31 = vsub.f32 %v4357_v62, %v5578_v51  ;;  %v6805_v19 = vld [vmem:[#allocation74_spill] sm:$0xff] }
 0x388   : > { %v646_v17 = vpop.xlane.xlu2 %645  ;;  %2505 = vperm.xlu0 %3575, %v2186_v60   ;;  %v2181_v60 = vmax.f32 %v2053_v54, 0.0  ;;  %v2189_v25 = vmax.f32 %v2061_v15, 0.0  ;;  %v2230_v11 = vmax.f32 %v2102_v42, 0.0 }
 0x389   : > { %v676_v7 = vmul.f32 %v5357_v9, %v646_v17  ;;  %2628 = vperm.xlu1 %3573, %v2227_v1   ;;  %v1977_v13 = vmul.f32 %v5526_v56, %v1828_v8 }
 0x38a   : > { %v1522_v24 = vpop.f32.mrf.mxu0 }
 0x38b   : > { %v730_v14 = vperm.slane %v676_v7, %v6772_v47  ;;  %3446 = vst [vmem:[%s4474_s21 + $0x118] sm:$0xff] %v1522_v24  ;;  %v2056_v7 = vsub.f32 1.0, %v6805_v19  ;;  %v5595_v24 = vperm.slane %v4686_v55, 5  ;;  %v1706_v19 = vsub.f32 %v4435_v26, %v5578_v51 }
 0x38d   : > { %v732_v17 = vsel %vm731_vm7, %v730_v14, %v728_v43  ;;  %v6806_v14 = vld [vmem:[#allocation75_spill] sm:$0xff]  ;;  %v2184_v16 = vmax.f32 %v2056_v7, 0.0  ;;  %v6808_v7 = vld [vmem:[#allocation77_spill] sm:$0xff] }
 0x38e   : > { %v736_v1 = vsel %vm735_vm8, %v734_v12, %v732_v17  ;;  %2490 = vperm.xlu2 %3574, %v2181_v60   ;;  %v2064_v15 = vsub.f32 1.0, %v6806_v14  ;;  %v2105_v12 = vsub.f32 1.0, %v1977_v13  ;;  %v1831_v60 = vand.u32 2147483647, %v1703_v31  ;;  %v6807_v31 = vld [vmem:[#allocation76_spill] sm:$0xff] }
 0x38f   : > { %v740_v35 = vsel %vm739_vm9, %v738_v37, %v736_v1  ;;  %v746_v37 = vperm.slane %v680_v59, %v6776_v49  ;;  %v2059_v59 = vsub.f32 1.0, %v6807_v31  ;;  %v6810_v31 = vld [vmem:[#allocation27_spill] sm:$0xff] }
 0x390   : > { %v652_v54 = vpop.xlane.xlu2 %651  ;;  %2514 = vperm.xlu0 %3575, %v2189_v25   ;;  %v2233_v25 = vmax.f32 %v2105_v12, 0.0  ;;  %v2467_v12 = vpop.permute.xlu1 %2466 }
 0x391   : > { %v679_v43 = vmul.f32 %v5357_v9, %v652_v54  ;;  %2637 = vperm.xlu1 %3573, %v2230_v11   ;;  %v2192_v11 = vmax.f32 %v2064_v15, 0.0  ;;  %v1980_v54 = vmul.f32 %v5595_v24, %v1831_v60 }
 0x392   : > { %v1525_v8 = vpop.f32.mrf.mxu0 }
 0x393   : > { %v742_v42 = vperm.slane %v679_v43, %v6775_v45  ;;  %3447 = vst [vmem:[%s4474_s21 + $0x120] sm:$0xff] %v1525_v8  ;;  %v2067_v43 = vsub.f32 1.0, %v6808_v7  ;;  %v2187_v8 = vmax.f32 %v2059_v59, 0.0  ;;  %v2829_v7 = vperm.slane %v2467_v12, %v5117_v34 }
 0x394   : > { %v1061_v12 = vperm.slane %v5502_v18, %v6711_v22 }
 0x395   : > { %v744_v17 = vsel %vm743_vm10, %v742_v42, %v740_v35  ;;  %v2108_v35 = vsub.f32 1.0, %v1980_v54  ;;  %v1834_v42 = vand.u32 2147483647, %v1706_v19  ;;  %v2195_v15 = vmax.f32 %v2067_v43, 0.0  ;;  %v5616_v19 = vpop.permute.xlu0 %2469  ;;  %v6811_v43 = vld [vmem:[#allocation79_spill] sm:$0xff] }
 0x396   : > { %v5602_v1 = vsel %vm747_vm11, %v746_v37, %v744_v17  ;;  %2499 = vperm.xlu2 %3574, %v2184_v16   ;;  %v1709_v16 = vsub.f32 %v4487_v5, %v5578_v51  ;;  %v2826_v54 = vperm.slane %v6810_v31, %v6711_v22 }
 0x397   : > { %v2236_v37 = vmax.f32 %v2108_v35, 0.0  ;;  %v1983_v60 = vmul.f32 %v5595_v24, %v1834_v42 }
 0x398   : > { %v1022_v13 = vpop.xlane.xlu2 %1021  ;;  %2523 = vperm.xlu0 %3575, %v2192_v11   ;;  %v6809_v11 = vld [vmem:[#allocation78_spill] sm:$0xff]  ;;  %v1837_v5 = vand.u32 2147483647, %v1709_v16  ;;  %v656_v16 = vpop.xlane.xlu1 %655 }
 0x399   : > { %2646 = vperm.xlu1 %3573, %v2233_v25   ;;  %v2062_v25 = vsub.f32 1.0, %v6809_v11 }
 0x39a   : > { %v1528_v14 = vpop.f32.mrf.mxu0 }
 0x39b   : > { %3448 = vst [vmem:[%s4474_s21 + $0x128] sm:$0xff] %v1528_v14  ;;  %v2070_v14 = vsub.f32 1.0, %v6811_v43  ;;  %v2190_v31 = vmax.f32 %v2062_v25, 0.0  ;;  %v1712_v25 = vsub.f32 %v4524_v29, %v5578_v51 }
 0x39e   : > { %2508 = vperm.xlu2 %3574, %v2187_v8   ;;  %v2111_v8 = vsub.f32 1.0, %v1983_v60  ;;  %v2198_v60 = vmax.f32 %v2070_v14, 0.0 }
 0x3a0   : > { %v2464_v17 = vpop.permute.xlu2 %2463  ;;  %2532 = vperm.xlu0 %3575, %v2195_v15   ;;  %v1062_v15 = vperm.slane %v5529_v3, %v5114_v21  ;;  %v2239_v3 = vmax.f32 %v2111_v8, 0.0 }
 0x3a1   : > { %v2827_v59 = vperm.slane %v2464_v17, %v5114_v21  ;;  %2655 = vperm.xlu1 %3573, %v2236_v37   ;;  %v1064_v37 = vperm.slane %v5542_v32, %v5117_v34  ;;  %v1066_v17 = vperm.slane %v5559_v40, %v5130_v0  ;;  %v1024_v40 = vpop.xlane.xlu0 %1023 }
 0x3a2   : > { %v1531_v42 = vpop.f32.mrf.mxu0  ;;  %v1063_v32 = vsel %vm703_vm0, %v1062_v15, %v1061_v12  ;;  %v1070_v34 = vperm.slane %v1024_v40, %v5143_v53 }
 0x3a3   : > { %v2828_v35 = vsel %vm703_vm0, %v2827_v59, %v2826_v54  ;;  %3449 = vst [vmem:[%s4474_s21 + $0x130] sm:$0xff] %v1531_v42  ;;  %v1068_v54 = vperm.slane %v1022_v13, %v5125_v30  ;;  %v1986_v59 = vmul.f32 %v5595_v24, %v1837_v5  ;;  %v1065_v43 = vsel %vm707_vm1, %v1064_v37, %v1063_v32 }
 0x3a4   : > { %v5625_v11 = vsel %vm707_vm1, %v2829_v7, %v2828_v35  ;;  %v6812_v7 = vld [vmem:[#allocation80_spill] sm:$0xff]  ;;  %v1067_v14 = vsel %vm711_vm2, %v1066_v17, %v1065_v43  ;;  %v6813_v35 = vld [vmem:[#allocation81_spill] sm:$0xff]  ;;  %v5656_v32 = vperm.slane %v4708_v57, 6 }
 0x3a5   : > { %v2065_v18 = vsub.f32 1.0, %v6812_v7  ;;  %v2073_v13 = vsub.f32 1.0, %v6813_v35  ;;  %v1069_v42 = vsel %vm715_vm3, %v1068_v54, %v1067_v14  ;;  %v2114_v5 = vsub.f32 1.0, %v1986_v59  ;;  %v6814_v54 = vld [vmem:[#allocation82_spill] sm:$0xff] }
 0x3a6   : > { %2517 = vperm.xlu2 %3574, %v2190_v31   ;;  %v1840_v31 = vand.u32 2147483647, %v1712_v25  ;;  %v5647_v37 = vsel %vm719_vm4, %v1070_v34, %v1069_v42  ;;  %v2068_v59 = vsub.f32 1.0, %v6814_v54  ;;  %v5653_v25 = vpop.permute.xlu1 %2475  ;;  %6815 = vst [vmem:[#allocation66_spill] sm:$0xff] %v5656_v32  ;;  %v681_v34 = vmul.f32 %v5357_v9, %v656_v16  ;;  %v3626_v9 = vld [vmem:[%s4038_s20] sm:$0xff] }
 0x3a7   : > { %v2193_v15 = vmax.f32 %v2065_v18, 0.0  ;;  %v2201_v12 = vmax.f32 %v2073_v13, 0.0  ;;  %v1718_v13 = vsub.f32 %v4353_v58, %v5656_v32  ;;  %v1672_v54 = vsub.f32 %v6791_v50, %v5416_v38 }
 0x3a8   : > { %2541 = vperm.xlu0 %3575, %v2198_v60   ;;  %v2242_v60 = vmax.f32 %v2114_v5, 0.0  ;;  %v1989_v17 = vmul.f32 %v5595_v24, %v1840_v31  ;;  %v2196_v40 = vmax.f32 %v2068_v59, 0.0  ;;  %v750_v42 = vperm.slane %v681_v34, %v6777_v28 }
 0x3a9   : > { %2664 = vperm.xlu1 %3573, %v2239_v3   ;;  %v1715_v3 = vsub.f32 %v4555_v61, %v5578_v51  ;;  %v2831_v59 = vperm.slane %v5616_v19, %v5130_v0 }
 0x3aa   : > { %v1534_v8 = vpop.f32.mrf.mxu0  ;;  %v2117_v18 = vsub.f32 1.0, %v1989_v17  ;;  %v5669_v16 = vsel %vm6578_vm12, %v750_v42, %v5602_v1  ;;  %v1846_v17 = vand.u32 2147483647, %v1718_v13 }
 0x3ab   : > { %3450 = vst [vmem:[%s4474_s21 + $0x138] sm:$0xff] %v1534_v8  ;;  %v1843_v43 = vand.u32 2147483647, %v1715_v3  ;;  %v6816_v8 = vld [vmem:[#allocation83_spill] sm:$0xff] }
 0x3ac   : > { %v2245_v14 = vmax.f32 %v2117_v18, 0.0  ;;  %v2071_v5 = vsub.f32 1.0, %v6816_v8  ;;  %6817 = vst [vmem:[#allocation33_spill] sm:$0xff] %v5669_v16  ;;  %v1721_v18 = vsub.f32 %v6771_v4, %v5656_v32 }
 0x3ad   : > { %v1992_v35 = vmul.f32 %v5595_v24, %v1843_v43  ;;  %v6819_v43 = vld [vmem:[#allocation84_spill] sm:$0xff] }
 0x3ae   : > { %2526 = vperm.xlu2 %3574, %v2193_v15   ;;  %v5665_v31 = vpop.xlane.xlu1 %1027  ;;  %v5672_v15 = vperm.slane %v4686_v55, 6  ;;  %v2199_v3 = vmax.f32 %v2071_v5, 0.0  ;;  %v2074_v34 = vsub.f32 1.0, %v6819_v43  ;;  %v1849_v8 = vand.u32 2147483647, %v1721_v18 }
 0x3b0   : > { %2550 = vperm.xlu0 %3575, %v2201_v12   ;;  %6818 = vst [vmem:[#allocation65_spill] sm:$0xff] %v5672_v15  ;;  %v1995_v1 = vmul.f32 %v5672_v15, %v1846_v17  ;;  %v2202_v19 = vmax.f32 %v2074_v34, 0.0 }
 0x3b1   : > { %2673 = vperm.xlu1 %3573, %v2242_v60   ;;  %v2120_v60 = vsub.f32 1.0, %v1992_v35  ;;  %v5687_v35 = vsel %vm711_vm2, %v2831_v59, %v5625_v11  ;;  %v1724_v11 = vsub.f32 %v6780_v39, %v5656_v32 }
 0x3b2   : > { %v1537_v7 = vpop.f32.mrf.mxu0  ;;  %v2123_v42 = vsub.f32 1.0, %v1995_v1 }
 0x3b3   : > { %3451 = vst [vmem:[%s4474_s21 + $0x140] sm:$0xff] %v1537_v7  ;;  %v2248_v7 = vmax.f32 %v2120_v60, 0.0  ;;  %v5693_v60 = vpop.permute.xlu0 %2478  ;;  %v1852_v43 = vand.u32 2147483647, %v1724_v11 }
 0x3b4   : > { %v2251_v17 = vmax.f32 %v2123_v42, 0.0 }
 0x3b6   : > { %2535 = vperm.xlu2 %3574, %v2196_v40   ;;  %v1800_v40 = vand.u32 2147483647, %v1672_v54 }
 0x3b8   : > { %v1949_v5 = vmul.f32 %v5430_v41, %v1800_v40 }
 0x3b9   : > { %2682 = vperm.xlu1 %3573, %v2245_v14   ;;  %v5683_v14 = vpop.permute.xlu1 %2484 }
 0x3ba   : > { %v1540_v12 = vpop.f32.mrf.mxu0  ;;  %v2077_v54 = vsub.f32 1.0, %v1949_v5  ;;  %v1727_v5 = vsub.f32 %v6782_v2, %v5656_v32 }
 0x3bb   : > { %3452 = vst [vmem:[%s4474_s21 + $0x148] sm:$0xff] %v1540_v12  ;;  %v1675_v12 = vsub.f32 %v6793_v27, %v5416_v38 }
 0x3bc   : > { %v2205_v34 = vmax.f32 %v2077_v54, 0.0 }
 0x3bd   : > { %v1803_v59 = vand.u32 2147483647, %v1675_v12 }
 0x3be   : > { %2544 = vperm.xlu2 %3574, %v2199_v3   ;;  %v1998_v3 = vmul.f32 %v5672_v15, %v1849_v8 }
 0x3bf   : > { %v1952_v40 = vmul.f32 %v5430_v41, %v1803_v59 }
 0x3c0   : > { %v2126_v18 = vsub.f32 1.0, %v1998_v3 }
 0x3c1   : > { %2691 = vperm.xlu1 %3573, %v2248_v7   ;;  %v5698_v7 = vpop.permute.xlu1 %2493 }
 0x3c2   : > { %v1543_v13 = vpop.f32.mrf.mxu0  ;;  %v2254_v8 = vmax.f32 %v2126_v18, 0.0 }
 0x3c3   : > { %3453 = vst [vmem:[%s4474_s21 + $0x150] sm:$0xff] %v1543_v13  ;;  %v1678_v13 = vsub.f32 %v6796_v20, %v5416_v38 }
 0x3c5   : > { %v1806_v3 = vand.u32 2147483647, %v1678_v13 }
 0x3c6   : > { %2553 = vperm.xlu2 %3574, %v2202_v19   ;;  %v2001_v19 = vmul.f32 %v5672_v15, %v1852_v43  ;;  %v1681_v43 = vsub.f32 %v6799_v46, %v5416_v38 }
 0x3c7   : > { %v1955_v18 = vmul.f32 %v5430_v41, %v1806_v3 }
 0x3c8   : > { %v2129_v59 = vsub.f32 1.0, %v2001_v19 }
 0x3c9   : > { %2700 = vperm.xlu1 %3573, %v2251_v17   ;;  %v2080_v17 = vsub.f32 1.0, %v1952_v40  ;;  %v5716_v16 = vpop.permute.xlu1 %2502  ;;  %v2083_v19 = vsub.f32 1.0, %v1955_v18 }
 0x3ca   : > { %v1546_v1 = vpop.f32.mrf.mxu0  ;;  %v2257_v40 = vmax.f32 %v2129_v59, 0.0 }
 0x3cb   : > { %3454 = vst [vmem:[%s4474_s21 + $0x158] sm:$0xff] %v1546_v1  ;;  %v1855_v1 = vand.u32 2147483647, %v1727_v5  ;;  %v1809_v5 = vand.u32 2147483647, %v1681_v43  ;;  %v2211_v59 = vmax.f32 %v2083_v19, 0.0 }
 0x3cd   : > { %v2004_v13 = vmul.f32 %v5672_v15, %v1855_v1  ;;  %v1958_v1 = vmul.f32 %v5430_v41, %v1809_v5  ;;  %v3628_v5 = vld [vmem:[%s4038_s20 + $0x10] sm:$0xff] }
 0x3ce   : > { %2562 = vperm.xlu2 %3574, %v2205_v34   ;;  %v2208_v34 = vmax.f32 %v2080_v17, 0.0 }
 0x3cf   : > { %v1026_v42 = vpop.xlane.xlu0 %1025  ;;  %v2132_v3 = vsub.f32 1.0, %v2004_v13  ;;  %v1733_v13 = vsub.f32 %v6787_v6, %v5656_v32  ;;  %v6826_v6 = vld [vmem:[#allocation53_spill] sm:$0xff] }
 0x3d0   : > { %v1072_v12 = vperm.slane %v1026_v42, %v6766_v52  ;;  %v6821_v42 = vld [vmem:[#allocation60_spill] sm:$0xff] }
 0x3d1   : > { %2709 = vperm.xlu1 %3573, %v2254_v8   ;;  %v1005_v8 = vmul.f32 %v5402_v44, %v6821_v42  ;;  %v5731_v18 = vpop.permute.xlu1 %2511  ;;  %v2260_v43 = vmax.f32 %v2132_v3, 0.0 }
 0x3d2   : > { %v5710_v11 = vsel %vm723_vm5, %v1072_v12, %v5647_v37  ;;  %v1549_v54 = vpop.f32.mrf.mxu0  ;;  %v1730_v37 = vsub.f32 %v6784_v63, %v5656_v32  ;;  %v6825_v32 = vld [vmem:[#allocation88_spill] sm:$0xff] }
 0x3d3   : > { %6820 = vst [vmem:[#allocation32_spill] sm:$0xff] %v5710_v11  ;;  %v3627_v11 = vld [vmem:[%s4038_s20 + $0x8] sm:$0xff] }
 0x3d4   : > { %3455 = vst [vmem:[%s4474_s21 + $0x160] sm:$0xff] %v1549_v54  ;;  %v1858_v54 = vand.u32 2147483647, %v1730_v37  ;;  %v1580_v44 = vadd.f32 %v3627_v11, %v3626_v9  ;;  %v6823_v37 = vld [vmem:[#allocation38_spill] sm:$0xff]  ;;  %v5740_v11 = vperm.slane %v4708_v57, 7 }
 0x3d5   : > { %v1006_v42 = vmul.f32 %v5418_v36, %v6823_v37 }
 0x3d6   : > { %2571 = vperm.xlu2 %3574, %v2208_v34   ;;  %v1684_v34 = vsub.f32 %v6802_v23, %v5416_v38 }
 0x3d7   : > { %v5742_v3 = vpop.xlane.xlu0 %659 }
 0x3d8   : > { %v1812_v19 = vand.u32 2147483647, %v1684_v34  ;;  %6824 = vst [vmem:[#allocation29_spill] sm:$0xff] %v5742_v3  ;;  %v1861_v34 = vand.u32 2147483647, %v1733_v13 }
 0x3d9   : > { %2718 = vperm.xlu1 %3573, %v2257_v40   ;;  %v5723_v12 = vpop.xlane.xlu2 %657  ;;  %v2007_v40 = vmul.f32 %v5672_v15, %v1858_v54 }
 0x3da   : > { %6822 = vst [vmem:[#allocation30_spill] sm:$0xff] %v5723_v12  ;;  %1029 = vadd.xlane.f32.xlu0 %v1005_v8  ;;  %v1552_v17 = vpop.f32.mrf.mxu0  ;;  %v2086_v8 = vsub.f32 1.0, %v1958_v1  ;;  %v2010_v12 = vmul.f32 %v5672_v15, %v1861_v34  ;;  %v6827_v34 = vld [vmem:[#allocation61_spill] sm:$0xff] }
 0x3db   : > { %3456 = vst [vmem:[%s4474_s21 + $0x168] sm:$0xff] %v1552_v17  ;;  %v1581_v17 = vadd.f32 %v3628_v5, %v1580_v44  ;;  %v2135_v1 = vsub.f32 1.0, %v2007_v40  ;;  %v1687_v44 = vsub.f32 %v4357_v62, %v5513_v10  ;;  %v3632_v15 = vld [vmem:[%s4038_s20 + $0x30] sm:$0xff] }
 0x3dc   : > { %v2214_v5 = vmax.f32 %v2086_v8, 0.0 }
 0x3dd   : > { %v2263_v13 = vmax.f32 %v2135_v1, 0.0  ;;  %v1815_v8 = vand.u32 2147483647, %v1687_v44  ;;  %v5767_v1 = vperm.slane %v4686_v55, 7 }
 0x3de   : > { %2580 = vperm.xlu2 %3574, %v2211_v59   ;;  %v2835_v59 = vperm.slane %v5653_v25, %v5143_v53 }
 0x3e1   : > { %2727 = vperm.xlu1 %3573, %v2260_v43   ;;  %v2473_v9 = vpop.permute.xlu2 %2472  ;;  %v2837_v43 = vperm.slane %v5693_v60, %v6766_v52  ;;  %v1736_v60 = vsub.f32 %v6791_v50, %v5740_v11 }
 0x3e2   : > { %v2833_v54 = vperm.slane %v2473_v9, %v5125_v30  ;;  %1031 = vadd.xlane.f32.xlu0 %v1006_v42  ;;  %v1555_v36 = vpop.f32.mrf.mxu0  ;;  %v1961_v42 = vmul.f32 %v5430_v41, %v1812_v19  ;;  %v3629_v9 = vld [vmem:[%s4038_s20 + $0x18] sm:$0xff]  ;;  %v3630_v19 = vld [vmem:[%s4038_s20 + $0x20] sm:$0xff] }
 0x3e3   : > { %3457 = vst [vmem:[%s4474_s21 + $0x170] sm:$0xff] %v1555_v36  ;;  %v1582_v3 = vadd.f32 %v3629_v9, %v1581_v17  ;;  %v5764_v17 = vpop.permute.xlu1 %2520 }
 0x3e4   : > { %v2834_v37 = vsel %vm715_vm3, %v2833_v54, %v5687_v35  ;;  %v1007_v35 = vmul.f32 %v6826_v6, %v6825_v32  ;;  %v2089_v54 = vsub.f32 1.0, %v1961_v42  ;;  %v2841_v6 = vperm.slane %v5683_v14, %v6772_v47 }
 0x3e5   : > { %v2836_v25 = vsel %vm719_vm4, %v2835_v59, %v2834_v37  ;;  %v1583_v36 = vadd.f32 %v3630_v19, %v1582_v3  ;;  %v1864_v3 = vand.u32 2147483647, %v1736_v60  ;;  %v6828_v60 = vld [vmem:[#allocation42_spill] sm:$0xff] }
 0x3e6   : > { %2589 = vperm.xlu2 %3574, %v2214_v5   ;;  %v2838_v40 = vsel %vm723_vm5, %v2837_v43, %v2836_v25  ;;  %v2138_v5 = vsub.f32 1.0, %v2010_v12  ;;  %v2217_v9 = vmax.f32 %v2089_v54, 0.0  ;;  %v1964_v25 = vmul.f32 %v5526_v56, %v1815_v8  ;;  %v6829_v54 = vld [vmem:[#allocation56_spill] sm:$0xff] }
 0x3e7   : > { %v2013_v12 = vmul.f32 %v5767_v1, %v1864_v3 }
 0x3e8   : > { %v2092_v8 = vsub.f32 1.0, %v1964_v25 }
 0x3e9   : > { %2736 = vperm.xlu1 %3573, %v2263_v13   ;;  %v2482_v59 = vpop.permute.xlu2 %2481  ;;  %v1690_v13 = vsub.f32 %v4435_v26, %v5513_v10 }
 0x3ea   : > { %v2839_v43 = vperm.slane %v2482_v59, %v6827_v34  ;;  %1033 = vadd.xlane.f32.xlu0 %v1007_v35  ;;  %v2488_v37 = vpop.permute.xlu0 %2487  ;;  %v1558_v32 = vpop.f32.mrf.mxu0  ;;  %v3631_v35 = vld [vmem:[%s4038_s20 + $0x28] sm:$0xff] }
 0x3eb   : > { %v2843_v44 = vperm.slane %v2488_v37, %v6773_v48  ;;  %3458 = vst [vmem:[%s4474_s21 + $0x178] sm:$0xff] %v1558_v32  ;;  %v1584_v19 = vadd.f32 %v3631_v35, %v1583_v36  ;;  %v2266_v37 = vmax.f32 %v2138_v5, 0.0  ;;  %v1818_v32 = vand.u32 2147483647, %v1690_v13  ;;  %v5790_v3 = vpop.permute.xlu1 %2529 }
 0x3ec   : > { %v2840_v42 = vsel %vm727_vm6, %v2839_v43, %v2838_v40  ;;  %v1739_v40 = vsub.f32 %v6793_v27, %v5740_v11  ;;  %v1008_v43 = vmul.f32 %v6829_v54, %v6828_v60  ;;  %v2847_v5 = vperm.slane %v5698_v7, %v6775_v45 }
 0x3ed   : > { %v2842_v59 = vsel %vm731_vm7, %v2841_v6, %v2840_v42  ;;  %v1585_v50 = vadd.f32 %v3632_v15, %v1584_v19  ;;  %v2220_v13 = vmax.f32 %v2092_v8, 0.0  ;;  %v1967_v15 = vmul.f32 %v5526_v56, %v1818_v32  ;;  %v6830_v19 = vld [vmem:[#allocation57_spill] sm:$0xff]  ;;  %v6832_v8 = vld [vmem:[#allocation34_spill] sm:$0xff] }
 0x3ee   : > { %v2844_v14 = vsel %vm735_vm8, %v2843_v44, %v2842_v59  ;;  %2598 = vperm.xlu2 %3574, %v2217_v9   ;;  %v2141_v9 = vsub.f32 1.0, %v2013_v12  ;;  %v1867_v35 = vand.u32 2147483647, %v1739_v40  ;;  %v1693_v59 = vsub.f32 %v6830_v19, %v5513_v10 }
 0x3ef   : > { %v1742_v40 = vsub.f32 %v6796_v20, %v5740_v11  ;;  %v2095_v32 = vsub.f32 1.0, %v1967_v15  ;;  %v3636_v20 = vld [vmem:[%s4038_s20 + $0x50] sm:$0xff] }
 0x3f0   : > { %v2016_v12 = vmul.f32 %v5767_v1, %v1867_v35  ;;  %v6833_v35 = vld [vmem:[#allocation89_spill] sm:$0xff] }
 0x3f1   : > { %2745 = vperm.xlu1 %3573, %v2266_v37   ;;  %v2491_v36 = vpop.permute.xlu2 %2490  ;;  %v3633_v37 = vld [vmem:[%s4038_s20 + $0x38] sm:$0xff]  ;;  %v1870_v15 = vand.u32 2147483647, %v1742_v40  ;;  %v1745_v40 = vsub.f32 %v6799_v46, %v5740_v11 }
 0x3f2   : > { %v2845_v6 = vperm.slane %v2491_v36, %v6774_v33  ;;  %1035 = vadd.xlane.f32.xlu0 %v1008_v43  ;;  %v2497_v44 = vpop.permute.xlu0 %2496  ;;  %v1586_v60 = vadd.f32 %v3633_v37, %v1585_v50  ;;  %v2269_v43 = vmax.f32 %v2141_v9, 0.0  ;;  %v1696_v9 = vsub.f32 %v4524_v29, %v5513_v10 }
 0x3f3   : > { %v2849_v42 = vperm.slane %v2497_v44, %v6776_v49  ;;  %v3634_v44 = vld [vmem:[%s4038_s20 + $0x40] sm:$0xff] }
 0x3f4   : > { %v2846_v25 = vsel %vm739_vm9, %v2845_v6, %v2844_v14  ;;  %v6831_v14 = vld [vmem:[#allocation44_spill] sm:$0xff]  ;;  %v1821_v6 = vand.u32 2147483647, %v1693_v59  ;;  %v1587_v27 = vadd.f32 %v3634_v44, %v1586_v60  ;;  %v2223_v60 = vmax.f32 %v2095_v32, 0.0  ;;  %v6836_v32 = vld [vmem:[#allocation47_spill] sm:$0xff] }
 0x3f5   : > { %v2848_v54 = vsel %vm743_vm10, %v2847_v5, %v2846_v25  ;;  %v1009_v36 = vmul.f32 %v6832_v8, %v6831_v14  ;;  %v2853_v25 = vperm.slane %v5716_v16, %v6833_v35  ;;  %v3635_v14 = vld [vmem:[%s4038_s20 + $0x48] sm:$0xff]  ;;  %v6835_v16 = vld [vmem:[#allocation91_spill] sm:$0xff] }
 0x3f6   : > { %v2850_v7 = vsel %vm747_vm11, %v2849_v42, %v2848_v54  ;;  %2607 = vperm.xlu2 %3574, %v2220_v13   ;;  %v6834_v13 = vld [vmem:[#allocation90_spill] sm:$0xff]  ;;  %v2144_v54 = vsub.f32 1.0, %v2016_v12  ;;  %v1588_v8 = vadd.f32 %v3635_v14, %v1587_v27  ;;  %v1824_v14 = vand.u32 2147483647, %v1696_v9 }
 0x3f8   : > { %v2272_v12 = vmax.f32 %v2144_v54, 0.0  ;;  %v1973_v9 = vmul.f32 %v5526_v56, %v1824_v14 }
 0x3f9   : > { %2754 = vperm.xlu1 %3573, %v2269_v43   ;;  %v2500_v50 = vpop.permute.xlu2 %2499  ;;  %v1970_v43 = vmul.f32 %v5526_v56, %v1821_v6  ;;  %v6837_v6 = vld [vmem:[#allocation31_spill] sm:$0xff] }
 0x3fa   : > { %v2851_v5 = vperm.slane %v2500_v50, %v6777_v28  ;;  %1037 = vadd.xlane.f32.xlu0 %v1009_v36  ;;  %v2506_v42 = vpop.permute.xlu0 %2505  ;;  %v5815_v36 = vpop.permute.xlu1 %2538  ;;  %v2101_v14 = vsub.f32 1.0, %v1973_v9 }
 0x3fb   : > { %v2855_v37 = vperm.slane %v2506_v42, %v6834_v13  ;;  %v2098_v27 = vsub.f32 1.0, %v1970_v43 }
 0x3fc   : > { %v2852_v59 = vsel %vm6578_vm12, %v2851_v5, %v2850_v7  ;;  %v2019_v7 = vmul.f32 %v5767_v1, %v1870_v15  ;;  %v1010_v5 = vmul.f32 %v6837_v6, %v6836_v32  ;;  %v2229_v9 = vmax.f32 %v2101_v14, 0.0 }
 0x3fd   : > { %v2854_v44 = vsel %vm755_vm13, %v2853_v25, %v2852_v59  ;;  %v1589_v25 = vadd.f32 %v3636_v20, %v1588_v8  ;;  %v2858_v59 = vperm.slane %v5731_v18, %v5114_v21  ;;  %v2226_v43 = vmax.f32 %v2098_v27, 0.0  ;;  %v3637_v18 = vld [vmem:[%s4038_s20 + $0x58] sm:$0xff] }
 0x3fe   : > { %v2856_v50 = vsel %vm6579_vm14, %v2855_v37, %v2854_v44  ;;  %2616 = vperm.xlu2 %3574, %v2223_v60   ;;  %v6838_v60 = vld [vmem:[#allocation28_spill] sm:$0xff]  ;;  %v1699_v20 = vsub.f32 %v4555_v61, %v5513_v10  ;;  %v6839_v27 = vld [vmem:[#allocation62_spill] sm:$0xff] }
 0x3ff   : > { %v5820_v42 = vsel %vm3043_vm15, %v2856_v50, %v6835_v16  ;;  %v2147_v50 = vsub.f32 1.0, %v2019_v7  ;;  %v1873_v16 = vand.u32 2147483647, %v1745_v40  ;;  %v1748_v40 = vsub.f32 %v6802_v23, %v5740_v11 }
 0x400   : > { %vm3045_vm15 = vcmask 1042434  }
 0x401   : > { %2763 = vperm.xlu1 %3573, %v2272_v12   ;;  %v2509_v37 = vpop.permute.xlu2 %2508  ;;  %v1590_v12 = vadd.f32 %v3637_v18, %v1589_v25  ;;  %v2022_v7 = vmul.f32 %v5767_v1, %v1873_v16 }
 0x402   : > { %v2857_v54 = vperm.slane %v2509_v37, %v6711_v22  ;;  %1039 = vadd.xlane.f32.xlu0 %v1010_v5  ;;  %v2515_v15 = vpop.permute.xlu0 %2514  ;;  %v5838_v6 = vpop.permute.xlu1 %2547  ;;  %v2275_v5 = vmax.f32 %v2147_v50, 0.0  ;;  %v6840_v37 = vld [vmem:[#allocation26_spill] sm:$0xff]  ;;  %v2864_v50 = vperm.slane %v5764_v17, %v5125_v30 }
 0x403   : > { %v2860_v44 = vperm.slane %v2515_v15, %v6838_v60  ;;  %v2150_v18 = vsub.f32 1.0, %v2022_v7  ;;  %v1876_v60 = vand.u32 2147483647, %v1748_v40  ;;  %v6841_v40 = vld [vmem:[#allocation22_spill] sm:$0xff] }
 0x404   : > { %v2859_v32 = vsel %vm703_vm0, %v2858_v59, %v2857_v54  ;;  %v1011_v59 = vmul.f32 %v6840_v37, %v6839_v27  ;;  %v1827_v54 = vand.u32 2147483647, %v1699_v20  ;;  %v3639_v37 = vld [vmem:[%s4038_s20 + $0x68] sm:$0xff] }
 0x405   : > { %v2861_v8 = vsel %vm707_vm1, %v2860_v44, %v2859_v32  ;;  %v3638_v44 = vld [vmem:[%s4038_s20 + $0x60] sm:$0xff]  ;;  %v2278_v17 = vmax.f32 %v2150_v18, 0.0  ;;  %v2025_v7 = vmul.f32 %v5767_v1, %v1876_v60  ;;  %v2870_v18 = vperm.slane %v5790_v3, %v6827_v34 }
 0x406   : > { %2625 = vperm.xlu2 %3574, %v2226_v43   ;;  %v1591_v32 = vadd.f32 %v3638_v44, %v1590_v12  ;;  %v1976_v20 = vmul.f32 %v5526_v56, %v1827_v54  ;;  %v1702_v12 = vsub.f32 %v4353_v58, %v5578_v51  ;;  %v6842_v44 = vld [vmem:[#allocation64_spill] sm:$0xff] }
 0x408   : > { %v2104_v14 = vsub.f32 1.0, %v1976_v20 }
 0x409   : > { %2772 = vperm.xlu1 %3573, %v2275_v5   ;;  %v2518_v15 = vpop.permute.xlu2 %2517 }
 0x40a   : > { %v2862_v25 = vperm.slane %v2518_v15, %v5130_v0  ;;  %1041 = vadd.xlane.f32.xlu0 %v1011_v59  ;;  %v2524_v43 = vpop.permute.xlu0 %2523  ;;  %v1592_v59 = vadd.f32 %v3639_v37, %v1591_v32 }
 0x40b   : > { %v2866_v16 = vperm.slane %v2524_v43, %v5143_v53  ;;  %v5860_v43 = vpop.permute.xlu1 %2556  ;;  %v3640_v53 = vld [vmem:[%s4038_s20 + $0x70] sm:$0xff] }
 0x40c   : > { %v2863_v27 = vsel %vm711_vm2, %v2862_v25, %v2861_v8  ;;  %v1012_v8 = vmul.f32 %v6842_v44, %v6841_v40  ;;  %v1830_v25 = vand.u32 2147483647, %v1702_v12  ;;  %v2232_v12 = vmax.f32 %v2104_v14, 0.0 }
 0x40d   : > { %v2865_v5 = vsel %vm715_vm3, %v2864_v50, %v2863_v27  ;;  %v1593_v50 = vadd.f32 %v3640_v53, %v1592_v59  ;;  %v2153_v27 = vsub.f32 1.0, %v2025_v7  ;;  %v1671_v53 = vsub.f32 %v4357_v62, %v5416_v38  ;;  %v3641_v59 = vld [vmem:[%s4038_s20 + $0x78] sm:$0xff] }
 0x40e   : > { %v2867_v15 = vsel %vm719_vm4, %v2866_v16, %v2865_v5  ;;  %2634 = vperm.xlu2 %3574, %v2229_v9   ;;  %v1705_v9 = vsub.f32 %v6771_v4, %v5578_v51  ;;  %v1979_v5 = vmul.f32 %v5595_v24, %v1830_v25 }
 0x40f   : > { %v2281_v40 = vmax.f32 %v2153_v27, 0.0 }
 0x410   : > { %v2107_v7 = vsub.f32 1.0, %v1979_v5  ;;  %v1833_v44 = vand.u32 2147483647, %v1705_v9 }
 0x411   : > { %2781 = vperm.xlu1 %3573, %v2278_v17   ;;  %v2527_v54 = vpop.permute.xlu2 %2526  ;;  %v1594_v17 = vadd.f32 %v3641_v59, %v1593_v50 }
 0x412   : > { %v2868_v32 = vperm.slane %v2527_v54, %v6766_v52  ;;  %1043 = vadd.xlane.f32.xlu0 %v1012_v8  ;;  %v2533_v16 = vpop.permute.xlu0 %2532  ;;  %v1799_v8 = vand.u32 2147483647, %v1671_v53  ;;  %v2235_v9 = vmax.f32 %v2107_v7, 0.0  ;;  %v1711_v7 = vsub.f32 %v6782_v2, %v5578_v51 }
 0x413   : > { %v2872_v60 = vperm.slane %v2533_v16, %v6772_v47  ;;  %v5879_v16 = vpop.permute.xlu1 %2565 }
 0x414   : > { %v2869_v20 = vsel %vm723_vm5, %v2868_v32, %v2867_v15  ;;  %v1595_v15 = vrot.slane %v1594_v17, 4  ;;  %v2876_v32 = vperm.slane %v5815_v36, %v6774_v33 }
 0x415   : > { %v2871_v37 = vsel %vm727_vm6, %v2870_v18, %v2869_v20  ;;  %v1708_v18 = vsub.f32 %v6780_v39, %v5578_v51  ;;  %v1982_v20 = vmul.f32 %v5595_v24, %v1833_v44  ;;  %v2882_v44 = vperm.slane %v5838_v6, %v6777_v28 }
 0x416   : > { %v2873_v3 = vsel %vm731_vm7, %v2872_v60, %v2871_v37  ;;  %2643 = vperm.xlu2 %3574, %v2232_v12   ;;  %v1674_v60 = vsub.f32 %v4435_v26, %v5416_v38  ;;  %v1948_v12 = vmul.f32 %v5430_v41, %v1799_v8  ;;  %v1596_v36 = vadd.f32 %v1595_v15, %v1594_v17 }
 0x417   : > { %v1836_v37 = vand.u32 2147483647, %v1708_v18  ;;  %v1677_v18 = vsub.f32 %v6830_v19, %v5416_v38 }
 0x418   : > { %v1802_v59 = vand.u32 2147483647, %v1674_v60  ;;  %v1597_v52 = vrot.slane %v1596_v36, 2 }
 0x419   : > { %2790 = vperm.xlu1 %3573, %v2281_v40   ;;  %v2536_v54 = vpop.permute.xlu2 %2535  ;;  %v2110_v40 = vsub.f32 1.0, %v1982_v20  ;;  %v1985_v8 = vmul.f32 %v5595_v24, %v1836_v37  ;;  %v1805_v37 = vand.u32 2147483647, %v1677_v18 }
 0x41a   : > { %v2874_v14 = vperm.slane %v2536_v54, %v6773_v48  ;;  %v2542_v25 = vpop.permute.xlu0 %2541  ;;  %v2076_v54 = vsub.f32 1.0, %v1948_v12  ;;  %v1951_v15 = vmul.f32 %v5430_v41, %v1802_v59  ;;  %v1839_v12 = vand.u32 2147483647, %v1711_v7 }
 0x41b   : > { %v2878_v50 = vperm.slane %v2542_v25, %v6775_v45  ;;  %v5902_v60 = vpop.permute.xlu1 %2574  ;;  %v2113_v20 = vsub.f32 1.0, %v1985_v8 }
 0x41c   : > { %v2875_v27 = vsel %vm735_vm8, %v2874_v14, %v2873_v3 }
 0x41d   : > { %v2877_v5 = vsel %vm739_vm9, %v2876_v32, %v2875_v27  ;;  %v2238_v32 = vmax.f32 %v2110_v40, 0.0 }
 0x41e   : > { %v2879_v53 = vsel %vm743_vm10, %v2878_v50, %v2877_v5  ;;  %2652 = vperm.xlu2 %3574, %v2235_v9   ;;  %v2204_v50 = vmax.f32 %v2076_v54, 0.0  ;;  %v1598_v9 = vadd.f32 %v1597_v52, %v1596_v36  ;;  %v2079_v5 = vsub.f32 1.0, %v1951_v15 }
 0x41f   : > { %v2241_v54 = vmax.f32 %v2113_v20, 0.0  ;;  %v1714_v52 = vsub.f32 %v6784_v63, %v5578_v51  ;;  %v1680_v36 = vsub.f32 %v4524_v29, %v5416_v38 }
 0x420   : > { %v2207_v7 = vmax.f32 %v2079_v5, 0.0 }
 0x421   : > { %v2545_v25 = vpop.permute.xlu2 %2544 }
 0x422   : > { %v2880_v30 = vperm.slane %v2545_v25, %v6776_v49  ;;  %v2551_v3 = vpop.permute.xlu0 %2550  ;;  %v1988_v25 = vmul.f32 %v5595_v24, %v1839_v12 }
 0x423   : > { %v2884_v17 = vperm.slane %v2551_v3, %v6833_v35 }
 0x424   : > { %v2881_v14 = vsel %vm747_vm11, %v2880_v30, %v2879_v53  ;;  %v1599_v30 = vrot.slane %v1598_v9, 1  ;;  %v1074_v53 = vperm.slane %v5665_v31, %v6827_v34  ;;  %v2116_v18 = vsub.f32 1.0, %v1988_v25 }
 0x425   : > { %v2883_v27 = vsel %vm6578_vm12, %v2882_v44, %v2881_v14  ;;  %v1954_v44 = vmul.f32 %v5430_v41, %v1805_v37  ;;  %v5923_v14 = vpop.permute.xlu1 %2583 }
 0x426   : > { %v2885_v6 = vsel %vm755_vm13, %v2884_v17, %v2883_v27  ;;  %2661 = vperm.xlu2 %3574, %v2238_v32   ;;  %2559 = vperm.xlu0 %3575, %v2204_v50   ;;  %v6843_v17 = vld [vmem:[#allocation32_spill] sm:$0xff]  ;;  %v1600_v15 = vadd.f32 %v1599_v30, %v1598_v9  ;;  %v1842_v32 = vand.u32 2147483647, %v1714_v52  ;;  %v1808_v50 = vand.u32 2147483647, %v1680_v36  ;;  %v6845_v9 = vld [vmem:[#allocation54_spill] sm:$0xff] }
 0x427   : > { %v5918_v31 = vsel %vm727_vm6, %v1074_v53, %v6843_v17  ;;  %v2082_v27 = vsub.f32 1.0, %v1954_v44  ;;  %v2244_v37 = vmax.f32 %v2116_v18, 0.0  ;;  %v1683_v30 = vsub.f32 %v4555_v61, %v5416_v38  ;;  %v6846_v38 = vld [vmem:[#allocation66_spill] sm:$0xff] }
 0x428   : > { %v3065_v20 = vsub.f32 %v1600_v15, %v4708_v57  ;;  %v1991_v12 = vmul.f32 %v5595_v24, %v1842_v32  ;;  %v1957_v5 = vmul.f32 %v5430_v41, %v1808_v50  ;;  %v6847_v32 = vld [vmem:[#allocation41_spill] sm:$0xff]  ;;  %v1686_v18 = vsub.f32 %v4353_v58, %v5513_v10 }
 0x429   : > { %v2554_v59 = vpop.permute.xlu2 %2553  ;;  %v1811_v52 = vand.u32 2147483647, %v1683_v30  ;;  %v1720_v50 = vsub.f32 %v6847_v32, %v6846_v38 }
 0x42a   : > { %v2886_v40 = vperm.slane %v2554_v59, %v6834_v13  ;;  %v1717_v59 = vsub.f32 %v6845_v9, %v5578_v51  ;;  %v3066_v53 = vand.u32 2147483647, %v3065_v20 }
 0x42b   : > { %v1960_v15 = vmul.f32 %v5430_v41, %v1811_v52  ;;  %v6848_v41 = vld [vmem:[#allocation46_spill] sm:$0xff] }
 0x42c   : > { %v2887_v3 = vsel %vm6579_vm14, %v2886_v40, %v2885_v6  ;;  %v2119_v40 = vsub.f32 1.0, %v1991_v12  ;;  %v1845_v25 = vand.u32 2147483647, %v1717_v59  ;;  %v1723_v30 = vsub.f32 %v6848_v41, %v6846_v38 }
 0x42d   : > { %v5921_v8 = vsel %vm3045_vm15, %v2887_v3, %v5820_v42  ;;  %v2210_v42 = vmax.f32 %v2082_v27, 0.0  ;;  %v5934_v57 = vpop.permute.xlu1 %2592  ;;  %v3067_v3 = vmul.f32 %v3066_v53, %v4686_v55  ;;  %v2088_v12 = vsub.f32 1.0, %v1960_v15 }
 0x42e   : > { %6844 = vst [vmem:[#allocation50_spill] sm:$0xff] %v5921_v8  ;;  %2670 = vperm.xlu2 %3574, %v2241_v54   ;;  %2568 = vperm.xlu0 %3575, %v2207_v7   ;;  %v2085_v54 = vsub.f32 1.0, %v1957_v5  ;;  %v2247_v7 = vmax.f32 %v2119_v40, 0.0  ;;  %v1994_v17 = vmul.f32 %v5595_v24, %v1845_v25  ;;  %v1848_v5 = vand.u32 2147483647, %v1720_v50  ;;  %v6849_v25 = vld [vmem:[#allocation65_spill] sm:$0xff] }
 0x42f   : > { %v3068_v27 = vsub.f32 1.0, %v3067_v3  ;;  %v1689_v53 = vsub.f32 %v6771_v4, %v5513_v10  ;;  %vm3047_vm15 = vcmask 1043459  }
 0x430   : > { %v2213_v44 = vmax.f32 %v2085_v54, 0.0  ;;  %v2122_v20 = vsub.f32 1.0, %v1994_v17  ;;  %v2216_v54 = vmax.f32 %v2088_v12, 0.0  ;;  %v1997_v52 = vmul.f32 %v6849_v25, %v1848_v5 }
 0x431   : > { %v5925_v6 = vpop.permute.xlu2 %2562  ;;  %v1817_v15 = vand.u32 2147483647, %v1689_v53  ;;  %v1692_v5 = vsub.f32 %v6780_v39, %v5513_v10 }
 0x432   : > { %v2250_v40 = vmax.f32 %v2122_v20, 0.0 }
 0x433   : > { %v1966_v12 = vmul.f32 %v5526_v56, %v1817_v15 }
 0x435   : > { %v5947_v59 = vpop.permute.xlu1 %2601 }
 0x436   : > { %2679 = vperm.xlu2 %3574, %v2244_v37   ;;  %2577 = vperm.xlu0 %3575, %v2210_v42   ;;  %v1814_v37 = vand.u32 2147483647, %v1686_v18  ;;  %v3069_v42 = vmax.f32 %v3068_v27, 0.0  ;;  %v6850_v27 = vld [vmem:[#allocation49_spill] sm:$0xff] }
 0x438   : > { %v1963_v3 = vmul.f32 %v5526_v56, %v1814_v37 }
 0x439   : > { %v5936_v36 = vpop.permute.xlu2 %2571 }
 0x43a   : > { %v2091_v17 = vsub.f32 1.0, %v1963_v3  ;;  %v2094_v3 = vsub.f32 1.0, %v1966_v12 }
 0x43c   : > { %v2219_v20 = vmax.f32 %v2091_v17, 0.0  ;;  %v2222_v39 = vmax.f32 %v2094_v3, 0.0 }
 0x43d   : > { %v5963_v37 = vpop.permute.xlu1 %2610 }
 0x43e   : > { %2688 = vperm.xlu2 %3574, %v2247_v7   ;;  %2586 = vperm.xlu0 %3575, %v2213_v44   ;;  %v1851_v7 = vand.u32 2147483647, %v1723_v30  ;;  %v2125_v44 = vsub.f32 1.0, %v1997_v52  ;;  %6851 = vst [vmem:[#allocation63_spill] sm:$0xff] %v5963_v37 }
 0x440   : > { %v2000_v18 = vmul.f32 %v6849_v25, %v1851_v7  ;;  %v2253_v8 = vmax.f32 %v2125_v44, 0.0  ;;  %v1820_v7 = vand.u32 2147483647, %v1692_v5 }
 0x441   : > { %v5945_v55 = vpop.permute.xlu2 %2580 }
 0x442   : > { %v2128_v53 = vsub.f32 1.0, %v2000_v18  ;;  %v1969_v4 = vmul.f32 %v5526_v56, %v1820_v7  ;;  %v1732_v7 = vsub.f32 %v6802_v23, %v6846_v38 }
 0x443   : > { %3070 = vadd.xlane.f32.xlu1 %v3069_v42  ;;  %v1726_v42 = vsub.f32 %v6850_v27, %v6846_v38 }
 0x444   : > { %v2256_v17 = vmax.f32 %v2128_v53, 0.0  ;;  %v2097_v5 = vsub.f32 1.0, %v1969_v4  ;;  %v1860_v4 = vand.u32 2147483647, %v1732_v7 }
 0x446   : > { %2697 = vperm.xlu2 %3574, %v2250_v40   ;;  %2595 = vperm.xlu0 %3575, %v2216_v54   ;;  %v1854_v54 = vand.u32 2147483647, %v1726_v42 }
 0x448   : > { %v2003_v15 = vmul.f32 %v6849_v25, %v1854_v54 }
 0x449   : > { %v5955_v50 = vpop.permute.xlu2 %2589 }
 0x44d   : > { %v1030_v30 = vpop.xlane.xlu0 %1029 }
 0x44e   : > { %v1076_v40 = vperm.slane %v1030_v30, %v6772_v47  ;;  %2706 = vperm.xlu2 %3574, %v2253_v8   ;;  %2604 = vperm.xlu0 %3575, %v2219_v20   ;;  %v1729_v30 = vsub.f32 %v6799_v46, %v6846_v38  ;;  %v1695_v8 = vsub.f32 %v6782_v2, %v5513_v10  ;;  %v2131_v20 = vsub.f32 1.0, %v2003_v15 }
 0x44f   : > { %v2225_v2 = vmax.f32 %v2097_v5, 0.0 }
 0x450   : > { %v1077_v52 = vsel %vm731_vm7, %v1076_v40, %v5918_v31  ;;  %v5977_v31 = vpop.permute.xlu1 %2619  ;;  %v1857_v40 = vand.u32 2147483647, %v1729_v30  ;;  %v1823_v53 = vand.u32 2147483647, %v1695_v8  ;;  %v2259_v3 = vmax.f32 %v2131_v20, 0.0 }
 0x451   : > { %v5968_v44 = vpop.permute.xlu2 %2598  ;;  %6852 = vst [vmem:[#allocation58_spill] sm:$0xff] %v5977_v31 }
 0x452   : > { %v2006_v37 = vmul.f32 %v6849_v25, %v1857_v40  ;;  %v2009_v40 = vmul.f32 %v6849_v25, %v1860_v4 }
 0x454   : > { %v2134_v8 = vsub.f32 1.0, %v2006_v37  ;;  %v2137_v7 = vsub.f32 1.0, %v2009_v40 }
 0x455   : > { %v1032_v18 = vpop.xlane.xlu0 %1031 }
 0x456   : > { %v1078_v42 = vperm.slane %v1032_v18, %v6773_v48  ;;  %2715 = vperm.xlu2 %3574, %v2256_v17   ;;  %2613 = vperm.xlu0 %3575, %v2222_v39   ;;  %v1972_v17 = vmul.f32 %v5526_v56, %v1823_v53  ;;  %v1698_v39 = vsub.f32 %v6784_v63, %v5513_v10  ;;  %v2262_v63 = vmax.f32 %v2134_v8, 0.0  ;;  %v6855_v8 = vld [vmem:[#allocation30_spill] sm:$0xff] }
 0x457   : > { %v1735_v53 = vsub.f32 %v4357_v62, %v5740_v11 }
 0x458   : > { %v1079_v12 = vsel %vm735_vm8, %v1078_v42, %v1077_v52  ;;  %v2100_v18 = vsub.f32 1.0, %v1972_v17  ;;  %v1826_v42 = vand.u32 2147483647, %v1698_v39  ;;  %v5990_v20 = vpop.permute.xlu1 %2628 }
 0x459   : > { %v5980_v54 = vpop.permute.xlu2 %2607  ;;  %6853 = vst [vmem:[#allocation85_spill] sm:$0xff] %v5990_v20  ;;  %v1863_v17 = vand.u32 2147483647, %v1735_v53 }
 0x45a   : > { %v2228_v31 = vmax.f32 %v2100_v18, 0.0  ;;  %v6856_v18 = vld [vmem:[#allocation23_spill] sm:$0xff] }
 0x45b   : > { %v682_v20 = vmul.f32 %v6856_v18, %v6855_v8  ;;  %v1741_v8 = vsub.f32 %v6830_v19, %v5740_v11 }
 0x45d   : > { %v1034_v15 = vpop.xlane.xlu0 %1033  ;;  %v754_v53 = vperm.slane %v682_v20, %v6833_v35 }
 0x45e   : > { %v1080_v52 = vperm.slane %v1034_v15, %v6774_v33  ;;  %2724 = vperm.xlu2 %3574, %v2259_v3   ;;  %2622 = vperm.xlu0 %3575, %v2225_v2   ;;  %v1975_v3 = vmul.f32 %v5526_v56, %v1826_v42  ;;  %v1701_v2 = vsub.f32 %v6845_v9, %v5513_v10 }
 0x45f   : > { %v2012_v10 = vmul.f32 %v5767_v1, %v1863_v17 }
 0x460   : > { %v1081_v30 = vsel %vm739_vm9, %v1080_v52, %v1079_v12  ;;  %v2103_v15 = vsub.f32 1.0, %v1975_v3  ;;  %v1829_v52 = vand.u32 2147483647, %v1701_v2  ;;  %v6006_v42 = vpop.permute.xlu1 %2637  ;;  %v6857_v2 = vld [vmem:[#allocation29_spill] sm:$0xff] }
 0x461   : > { %v5992_v5 = vpop.permute.xlu2 %2616 }
 0x462   : > { %6854 = vst [vmem:[#allocation39_spill] sm:$0xff] %v5992_v5  ;;  %v2265_v5 = vmax.f32 %v2137_v7, 0.0  ;;  %v2231_v9 = vmax.f32 %v2103_v15, 0.0 }
 0x465   : > { %v1036_v12 = vpop.xlane.xlu0 %1035 }
 0x466   : > { %v1082_v37 = vperm.slane %v1036_v12, %v6775_v45  ;;  %2733 = vperm.xlu2 %3574, %v2262_v63   ;;  %2631 = vperm.xlu0 %3575, %v2228_v31   ;;  %v1978_v63 = vmul.f32 %v5526_v56, %v1829_v52  ;;  %v1738_v31 = vsub.f32 %v4435_v26, %v5740_v11  ;;  %v6858_v52 = vld [vmem:[#allocation33_spill] sm:$0xff] }
 0x467   : > { %v683_v12 = vmul.f32 %v6856_v18, %v6857_v2  ;;  %v756_v20 = vsel %vm755_vm13, %v754_v53, %v6858_v52 }
 0x468   : > { %v1083_v39 = vsel %vm743_vm10, %v1082_v37, %v1081_v30  ;;  %v1704_v30 = vsub.f32 %v6847_v32, %v5578_v51  ;;  %v2140_v37 = vsub.f32 1.0, %v2012_v10  ;;  %v2106_v56 = vsub.f32 1.0, %v1978_v63 }
 0x469   : > { %v6002_v4 = vpop.permute.xlu2 %2625  ;;  %v1866_v17 = vand.u32 2147483647, %v1738_v31  ;;  %v1707_v63 = vsub.f32 %v6848_v41, %v5578_v51  ;;  %v6032_v31 = vpop.permute.xlu1 %2646  ;;  %v1744_v41 = vsub.f32 %v4524_v29, %v5740_v11 }
 0x46a   : > { %v1832_v15 = vand.u32 2147483647, %v1704_v30  ;;  %v2234_v18 = vmax.f32 %v2106_v56, 0.0  ;;  %6859 = vst [vmem:[#allocation86_spill] sm:$0xff] %v6032_v31 }
 0x46b   : > { %v1835_v2 = vand.u32 2147483647, %v1707_v63 }
 0x46c   : > { %v1981_v10 = vmul.f32 %v5595_v24, %v1832_v15 }
 0x46d   : > { %v1038_v40 = vpop.xlane.xlu0 %1037  ;;  %v1984_v52 = vmul.f32 %v5595_v24, %v1835_v2 }
 0x46e   : > { %v1084_v3 = vperm.slane %v1038_v40, %v6776_v49  ;;  %2742 = vperm.xlu2 %3574, %v2265_v5   ;;  %2640 = vperm.xlu0 %3575, %v2231_v9   ;;  %v758_v5 = vperm.slane %v683_v12, %v6834_v13  ;;  %v2268_v9 = vmax.f32 %v2140_v37, 0.0  ;;  %v1869_v40 = vand.u32 2147483647, %v1741_v8 }
 0x470   : > { %v6019_v7 = vsel %vm747_vm11, %v1084_v3, %v1083_v39  ;;  %v2015_v39 = vmul.f32 %v5767_v1, %v1866_v17  ;;  %v760_v30 = vsel %vm6579_vm14, %v758_v5, %v756_v20  ;;  %v2109_v3 = vsub.f32 1.0, %v1981_v10 }
 0x471   : > { %v6021_v32 = vpop.permute.xlu2 %2634  ;;  %762 = vst [vmem:[%s341_s23] sm:$0x1] %v760_v30  ;;  %v2018_v37 = vmul.f32 %v5767_v1, %v1869_v40  ;;  %v1710_v20 = vsub.f32 %v6850_v27, %v5578_v51  ;;  %v2656_v5 = vpop.permute.xlu1 %2655  ;;  %v1713_v27 = vsub.f32 %v6799_v46, %v5578_v51 }
 0x472   : > { %v2143_v53 = vsub.f32 1.0, %v2015_v39  ;;  %v2237_v15 = vmax.f32 %v2109_v3, 0.0  ;;  %v2951_v63 = vperm.slane %v2656_v5, %v5114_v21 }
 0x473   : > { %v2146_v8 = vsub.f32 1.0, %v2018_v37  ;;  %v1838_v39 = vand.u32 2147483647, %v1710_v20  ;;  %v1841_v5 = vand.u32 2147483647, %v1713_v27 }
 0x474   : > { %v2271_v17 = vmax.f32 %v2143_v53, 0.0  ;;  %v1747_v53 = vsub.f32 %v4555_v61, %v5740_v11 }
 0x475   : > { %v6043_v56 = vpop.xlane.xlu0 %1039  ;;  %v2274_v2 = vmax.f32 %v2146_v8, 0.0  ;;  %v1990_v46 = vmul.f32 %v5595_v24, %v1841_v5  ;;  %v1716_v8 = vsub.f32 %v6802_v23, %v5578_v51  ;;  %v2888_v23 = vperm.slane %v5860_v43, %v6711_v22 }
 0x476   : > { %2751 = vperm.xlu2 %3574, %v2268_v9   ;;  %2649 = vperm.xlu0 %3575, %v2234_v18   ;;  %v1872_v9 = vand.u32 2147483647, %v1744_v41  ;;  %v2112_v18 = vsub.f32 1.0, %v1984_v52  ;;  %v1987_v41 = vmul.f32 %v5595_v24, %v1838_v39 }
 0x478   : > { %v2021_v40 = vmul.f32 %v5767_v1, %v1872_v9  ;;  %v2240_v37 = vmax.f32 %v2112_v18, 0.0  ;;  %v2115_v20 = vsub.f32 1.0, %v1987_v41 }
 0x479   : > { %v6038_v12 = vpop.permute.xlu2 %2643 }
 0x47a   : > { %v2149_v52 = vsub.f32 1.0, %v2021_v40  ;;  %v2243_v31 = vmax.f32 %v2115_v20, 0.0  ;;  %v2893_v20 = vperm.slane %v5879_v16, %v5130_v0 }
 0x47e   : > { %2760 = vperm.xlu2 %3574, %v2271_v17   ;;  %2658 = vperm.xlu0 %3575, %v2237_v15   ;;  %v6059_v17 = vpop.xlane.xlu0 %1041  ;;  %v1875_v15 = vand.u32 2147483647, %v1747_v53 }
 0x480   : > { %v2024_v9 = vmul.f32 %v5767_v1, %v1875_v15 }
 0x481   : > { %v2653_v10 = vpop.permute.xlu2 %2652 }
 0x482   : > { %v2950_v30 = vperm.slane %v2653_v10, %v6711_v22  ;;  %v2277_v10 = vmax.f32 %v2149_v52, 0.0  ;;  %v2152_v39 = vsub.f32 1.0, %v2024_v9 }
 0x484   : > { %v6056_v3 = vsel %vm703_vm0, %v2951_v63, %v2950_v30  ;;  %v2118_v63 = vsub.f32 1.0, %v1990_v46  ;;  %v1844_v30 = vand.u32 2147483647, %v1716_v8  ;;  %v2280_v53 = vmax.f32 %v2152_v39, 0.0 }
 0x486   : > { %2769 = vperm.xlu2 %3574, %v2274_v2   ;;  %2667 = vperm.xlu0 %3575, %v2240_v37   ;;  %v6065_v18 = vpop.xlane.xlu0 %1043  ;;  %v2246_v40 = vmax.f32 %v2118_v63, 0.0  ;;  %v1993_v27 = vmul.f32 %v5595_v24, %v1844_v30  ;;  %v1719_v2 = vsub.f32 %v4357_v62, %v6846_v38  ;;  %v6862_v30 = vld [vmem:[#allocation36_spill] sm:$0xff] }
 0x487   : > { %v2897_v16 = vperm.slane %v5936_v36, %v6862_v30 }
 0x488   : > { %v2121_v41 = vsub.f32 1.0, %v1993_v27  ;;  %v1847_v15 = vand.u32 2147483647, %v1719_v2 }
 0x48a   : > { %v2249_v5 = vmax.f32 %v2121_v41, 0.0  ;;  %v1996_v9 = vmul.f32 %v6849_v25, %v1847_v15  ;;  %v1725_v41 = vsub.f32 %v6830_v19, %v6846_v38 }
 0x48c   : > { %v2124_v8 = vsub.f32 1.0, %v1996_v9  ;;  %v1728_v9 = vsub.f32 %v4524_v29, %v6846_v38 }
 0x48e   : > { %2778 = vperm.xlu2 %3574, %v2277_v10   ;;  %2676 = vperm.xlu0 %3575, %v2243_v31   ;;  %v6860_v31 = vld [vmem:[#allocation28_spill] sm:$0xff]  ;;  %v1722_v10 = vsub.f32 %v4435_v26, %v6846_v38 }
 0x48f   : > { %v2891_v52 = vperm.slane %v5925_v6, %v6860_v31  ;;  %v6861_v6 = vld [vmem:[#allocation35_spill] sm:$0xff] }
 0x490   : > { %v1850_v39 = vand.u32 2147483647, %v1722_v10 }
 0x492   : > { %v1999_v26 = vmul.f32 %v6849_v25, %v1850_v39  ;;  %v2911_v39 = vperm.slane %v5934_v57, %v6776_v49  ;;  %v1088_v57 = vperm.slane %v6059_v17, %v6833_v35 }
 0x496   : > { %2787 = vperm.xlu2 %3574, %v2280_v53   ;;  %2685 = vperm.xlu0 %3575, %v2246_v40   ;;  %v6863_v53 = vld [vmem:[#allocation21_spill] sm:$0xff] }
 0x497   : > { %v2899_v40 = vperm.slane %v5902_v60, %v6863_v53  ;;  %v2903_v60 = vperm.slane %v5945_v55, %v6772_v47 }
 0x498   : > { %v2560_v37 = vpop.permute.xlu0 %2559 }
 0x499   : > { %v2889_v51 = vperm.slane %v2560_v37, %v5114_v21  ;;  %v2252_v37 = vmax.f32 %v2124_v8, 0.0  ;;  %v1856_v8 = vand.u32 2147483647, %v1728_v9  ;;  %v6864_v9 = vld [vmem:[#allocation63_spill] sm:$0xff] }
 0x49b   : > { %v2890_v24 = vsel %vm703_vm0, %v2889_v51, %v2888_v23  ;;  %v2127_v51 = vsub.f32 1.0, %v1999_v26  ;;  %v1090_v26 = vperm.slane %v6065_v18, %v6834_v13 }
 0x49c   : > { %v2892_v62 = vsel %vm707_vm1, %v2891_v52, %v2890_v24  ;;  %v1853_v52 = vand.u32 2147483647, %v1725_v41 }
 0x49d   : > { %v2894_v43 = vsel %vm711_vm2, %v2893_v20, %v2892_v62  ;;  %v2905_v20 = vperm.slane %v5923_v14, %v6773_v48  ;;  %v2909_v14 = vperm.slane %v5955_v50, %v6775_v45  ;;  %v1086_v50 = vperm.slane %v6043_v56, %v6777_v28 }
 0x49e   : > { %2694 = vperm.xlu0 %3575, %v2249_v5   ;;  %v2255_v5 = vmax.f32 %v2127_v51, 0.0  ;;  %v2002_v19 = vmul.f32 %v6849_v25, %v1853_v52  ;;  %v2917_v56 = vperm.slane %v5947_v59, %v6834_v13  ;;  %v1734_v52 = vsub.f32 %v4353_v58, %v5740_v11 }
 0x49f   : > { %v2920_v58 = vperm.slane %v5980_v54, %v5114_v21  ;;  %v6866_v54 = vld [vmem:[#allocation50_spill] sm:$0xff] }
 0x4a0   : > { %v2569_v46 = vpop.permute.xlu0 %2568 }
 0x4a1   : > { %v2895_v63 = vperm.slane %v2569_v46, %v6861_v6  ;;  %v2130_v46 = vsub.f32 1.0, %v2002_v19 }
 0x4a3   : > { %v2896_v27 = vsel %vm715_vm3, %v2895_v63, %v2894_v43  ;;  %v6110_v63 = vpop.permute.xlu1 %2664 }
 0x4a4   : > { %v2898_v2 = vsel %vm719_vm4, %v2897_v16, %v2896_v27  ;;  %v2005_v27 = vmul.f32 %v6849_v25, %v1856_v8 }
 0x4a5   : > { %v2900_v15 = vsel %vm723_vm5, %v2899_v40, %v2898_v2  ;;  %v2258_v40 = vmax.f32 %v2130_v46, 0.0  ;;  %v1731_v2 = vsub.f32 %v4555_v61, %v6846_v38  ;;  %v2915_v61 = vperm.slane %v5968_v44, %v6833_v35 }
 0x4a6   : > { %2703 = vperm.xlu0 %3575, %v2252_v37   ;;  %v1087_v38 = vsel %vm6578_vm12, %v1086_v50, %v6019_v7 }
 0x4a7   : > { %v1089_v17 = vsel %vm755_vm13, %v1088_v57, %v1087_v38  ;;  %v6868_v57 = vld [vmem:[#allocation58_spill] sm:$0xff] }
 0x4a8   : > { %v2578_v23 = vpop.permute.xlu0 %2577 }
 0x4a9   : > { %v2901_v36 = vperm.slane %v2578_v23, %v6827_v34  ;;  %v1859_v23 = vand.u32 2147483647, %v1731_v2 }
 0x4ab   : > { %v2902_v24 = vsel %vm727_vm6, %v2901_v36, %v2900_v15  ;;  %v2133_v15 = vsub.f32 1.0, %v2005_v27  ;;  %v1091_v36 = vsel %vm6579_vm14, %v1090_v26, %v1089_v17  ;;  %v2008_v44 = vmul.f32 %v6849_v25, %v1859_v23 }
 0x4ac   : > { %v2904_v62 = vsel %vm731_vm7, %v2903_v60, %v2902_v24  ;;  %v6138_v24 = vpop.permute.xlu1 %2673  ;;  %1093 = vst [vmem:[%s6581_s19] sm:$0x1] %v1091_v36  ;;  %v2928_v26 = vperm.slane %v6868_v57, %v6862_v30 }
 0x4ad   : > { %v2906_v10 = vsel %vm735_vm8, %v2905_v20, %v2904_v62  ;;  %v2261_v20 = vmax.f32 %v2133_v15, 0.0  ;;  %v2136_v62 = vsub.f32 1.0, %v2008_v44  ;;  %v6870_v44 = vld [vmem:[#allocation85_spill] sm:$0xff] }
 0x4ae   : > { %2712 = vperm.xlu0 %3575, %v2255_v5   ;;  %v1862_v5 = vand.u32 2147483647, %v1734_v52 }
 0x4b0   : > { %v2587_v43 = vpop.permute.xlu0 %2586  ;;  %v2011_v8 = vmul.f32 %v5767_v1, %v1862_v5 }
 0x4b1   : > { %v2907_v55 = vperm.slane %v2587_v43, %v6774_v33  ;;  %v2264_v43 = vmax.f32 %v2136_v62, 0.0 }
 0x4b3   : > { %v2908_v16 = vsel %vm739_vm9, %v2907_v55, %v2906_v10  ;;  %v2922_v10 = vperm.slane %v6864_v9, %v6860_v31  ;;  %v6865_v55 = vld [vmem:[#allocation43_spill] sm:$0xff] }
 0x4b4   : > { %v2910_v29 = vsel %vm743_vm10, %v2909_v14, %v2908_v16  ;;  %v1737_v14 = vsub.f32 %v6865_v55, %v5740_v11  ;;  %v2938_v55 = vperm.slane %v6021_v32, %v6774_v33 }
 0x4b5   : > { %v2912_v37 = vsel %vm747_vm11, %v2911_v39, %v2910_v29  ;;  %v6154_v39 = vpop.permute.xlu1 %2682 }
 0x4b6   : > { %2721 = vperm.xlu0 %3575, %v2258_v40   ;;  %v2139_v40 = vsub.f32 1.0, %v2011_v8  ;;  %v1865_v27 = vand.u32 2147483647, %v1737_v14  ;;  %v2940_v14 = vperm.slane %v6006_v42, %v6775_v45 }
 0x4b8   : > { %v2596_v41 = vpop.permute.xlu0 %2595  ;;  %v2267_v23 = vmax.f32 %v2139_v40, 0.0 }
 0x4b9   : > { %v2913_v51 = vperm.slane %v2596_v41, %v6777_v28 }
 0x4bb   : > { %v2914_v18 = vsel %vm6578_vm12, %v2913_v51, %v2912_v37  ;;  %v6867_v37 = vld [vmem:[#allocation39_spill] sm:$0xff]  ;;  %v2014_v51 = vmul.f32 %v5767_v1, %v1865_v27 }
 0x4bc   : > { %v2916_v60 = vsel %vm755_vm13, %v2915_v61, %v2914_v18  ;;  %v2926_v50 = vperm.slane %v6867_v37, %v6861_v6  ;;  %v6869_v61 = vld [vmem:[#allocation45_spill] sm:$0xff]  ;;  %v6872_v37 = vld [vmem:[#allocation51_spill] sm:$0xff] }
 0x4bd   : > { %v2918_v7 = vsel %vm6579_vm14, %v2917_v56, %v2916_v60  ;;  %v1740_v38 = vsub.f32 %v6869_v61, %v5740_v11  ;;  %v2142_v18 = vsub.f32 1.0, %v2014_v51  ;;  %v6170_v36 = vpop.permute.xlu1 %2691  ;;  %v6873_v51 = vld [vmem:[#allocation86_spill] sm:$0xff] }
 0x4be   : > { %2730 = vperm.xlu0 %3575, %v2261_v20   ;;  %v6157_v16 = vsel %vm3047_vm15, %v2918_v7, %v6866_v54  ;;  %v2932_v20 = vperm.slane %v6002_v4, %v6827_v34  ;;  %v2934_v7 = vperm.slane %v6870_v44, %v6772_v47  ;;  %v2946_v61 = vperm.slane %v6873_v51, %v6833_v35 }
 0x4bf   : > { %v1868_v52 = vand.u32 2147483647, %v1740_v38  ;;  %v2270_v5 = vmax.f32 %v2142_v18, 0.0  ;;  %vm3049_vm15 = vcmask 1044484  }
 0x4c0   : > { %v2605_v59 = vpop.permute.xlu0 %2604 }
 0x4c1   : > { %v2919_v19 = vperm.slane %v2605_v59, %v6711_v22 }
 0x4c3   : > { %v2921_v25 = vsel %vm703_vm0, %v2920_v58, %v2919_v19  ;;  %v2017_v58 = vmul.f32 %v5767_v1, %v1868_v52  ;;  %v6871_v19 = vld [vmem:[#allocation48_spill] sm:$0xff]  ;;  %v6874_v52 = vld [vmem:[#allocation54_spill] sm:$0xff] }
 0x4c4   : > { %v2923_v46 = vsel %vm707_vm1, %v2922_v10, %v2921_v25  ;;  %v1743_v9 = vsub.f32 %v6871_v19, %v5740_v11  ;;  %v2662_v25 = vpop.permute.xlu2 %2661 }
 0x4c5   : > { %v6188_v54 = vpop.permute.xlu1 %2700 }
 0x4c6   : > { %2739 = vperm.xlu0 %3575, %v2264_v43   ;;  %v1871_v4 = vand.u32 2147483647, %v1743_v9 }
 0x4c8   : > { %v2614_v29 = vpop.permute.xlu0 %2613 }
 0x4c9   : > { %v2924_v2 = vperm.slane %v2614_v29, %v5130_v0 }
 0x4cb   : > { %v2925_v41 = vsel %vm711_vm2, %v2924_v2, %v2923_v46  ;;  %v2145_v46 = vsub.f32 1.0, %v2017_v58  ;;  %v2020_v2 = vmul.f32 %v5767_v1, %v1871_v4 }
 0x4cc   : > { %v2927_v15 = vsel %vm715_vm3, %v2926_v50, %v2925_v41  ;;  %v1746_v50 = vsub.f32 %v6872_v37, %v5740_v11 }
 0x4cd   : > { %v2929_v56 = vsel %vm719_vm4, %v2928_v26, %v2927_v15  ;;  %v2273_v27 = vmax.f32 %v2145_v46, 0.0  ;;  %v2671_v26 = vpop.permute.xlu2 %2670  ;;  %v2148_v41 = vsub.f32 1.0, %v2020_v2 }
 0x4ce   : > { %2748 = vperm.xlu0 %3575, %v2267_v23   ;;  %v1874_v15 = vand.u32 2147483647, %v1746_v50  ;;  %v2944_v23 = vperm.slane %v6038_v12, %v6777_v28  ;;  %v2961_v50 = vperm.slane %v2671_v26, %v6863_v53 }
 0x4d0   : > { %v2623_v17 = vpop.permute.xlu0 %2622  ;;  %v2023_v18 = vmul.f32 %v5767_v1, %v1874_v15 }
 0x4d1   : > { %v2930_v60 = vperm.slane %v2623_v17, %v6863_v53  ;;  %v2276_v17 = vmax.f32 %v2148_v41, 0.0 }
 0x4d2   : > { %v2151_v12 = vsub.f32 1.0, %v2023_v18 }
 0x4d3   : > { %v2931_v59 = vsel %vm723_vm5, %v2930_v60, %v2929_v56  ;;  %v1749_v60 = vsub.f32 %v6874_v52, %v5740_v11  ;;  %v2975_v52 = vperm.slane %v6170_v36, %v6777_v28 }
 0x4d4   : > { %v2933_v62 = vsel %vm727_vm6, %v2932_v20, %v2931_v59  ;;  %v6206_v20 = vpop.permute.xlu1 %2709  ;;  %v2279_v9 = vmax.f32 %v2151_v12, 0.0 }
 0x4d5   : > { %v2935_v10 = vsel %vm731_vm7, %v2934_v7, %v2933_v62  ;;  %v1877_v59 = vand.u32 2147483647, %v1749_v60 }
 0x4d6   : > { %2757 = vperm.xlu0 %3575, %v2270_v5   ;;  %v2680_v5 = vpop.permute.xlu2 %2679 }
 0x4d7   : > { %v2026_v11 = vmul.f32 %v5767_v1, %v1877_v59 }
 0x4d8   : > { %v2632_v43 = vpop.permute.xlu0 %2631 }
 0x4d9   : > { %v2936_v8 = vperm.slane %v2632_v43, %v6773_v48  ;;  %v2154_v46 = vsub.f32 1.0, %v2026_v11 }
 0x4db   : > { %v2937_v29 = vsel %vm735_vm8, %v2936_v8, %v2935_v10  ;;  %v2955_v8 = vperm.slane %v2662_v25, %v5130_v0  ;;  %v2963_v25 = vperm.slane %v6138_v24, %v6827_v34 }
 0x4dc   : > { %v2939_v40 = vsel %vm739_vm9, %v2938_v55, %v2937_v29  ;;  %v6215_v10 = vpop.permute.xlu1 %2718  ;;  %v2957_v55 = vperm.slane %v6110_v63, %v6861_v6 }
 0x4dd   : > { %v2941_v57 = vsel %vm743_vm10, %v2940_v14, %v2939_v40  ;;  %v2282_v40 = vmax.f32 %v2154_v46, 0.0 }
 0x4de   : > { %2766 = vperm.xlu0 %3575, %v2273_v27  }
 0x4e0   : > { %v2641_v32 = vpop.permute.xlu0 %2640 }
 0x4e1   : > { %v2942_v42 = vperm.slane %v2641_v32, %v6776_v49 }
 0x4e3   : > { %v2943_v38 = vsel %vm747_vm11, %v2942_v42, %v2941_v57  ;;  %v2967_v42 = vperm.slane %v2680_v5, %v6773_v48 }
 0x4e4   : > { %v2945_v56 = vsel %vm6578_vm12, %v2944_v23, %v2943_v38  ;;  %v2728_v2 = vpop.permute.xlu1 %2727  ;;  %v2969_v23 = vperm.slane %v6154_v39, %v6774_v33 }
 0x4e5   : > { %v2947_v44 = vsel %vm755_vm13, %v2946_v61, %v2945_v56 }
 0x4e6   : > { %2775 = vperm.xlu0 %3575, %v2276_v17  }
 0x4e8   : > { %v2650_v7 = vpop.permute.xlu0 %2649 }
 0x4e9   : > { %v2948_v62 = vperm.slane %v2650_v7, %v6834_v13 }
 0x4eb   : > { %v2949_v58 = vsel %vm6579_vm14, %v2948_v62, %v2947_v44 }
 0x4ec   : > { %v6212_v19 = vsel %vm3049_vm15, %v2949_v58, %v6157_v16  ;;  %v2689_v16 = vpop.permute.xlu2 %2688  ;;  %v2737_v51 = vpop.permute.xlu1 %2736  ;;  %vm3051_vm15 = vcmask 1045509  }
 0x4ed   : > { %v2973_v18 = vperm.slane %v2689_v16, %v6776_v49 }
 0x4ee   : > { %2784 = vperm.xlu0 %3575, %v2279_v9  }
 0x4f0   : > { %v2659_v43 = vpop.permute.xlu0 %2658 }
 0x4f1   : > { %v2953_v4 = vperm.slane %v2659_v43, %v6860_v31  ;;  %v2981_v43 = vperm.slane %v6188_v54, %v6711_v22 }
 0x4f3   : > { %v2954_v14 = vsel %vm707_vm1, %v2953_v4, %v6056_v3 }
 0x4f4   : > { %v2956_v29 = vsel %vm711_vm2, %v2955_v8, %v2954_v14  ;;  %v2698_v32 = vpop.permute.xlu2 %2697  ;;  %v2746_v44 = vpop.permute.xlu1 %2745  ;;  %v2986_v8 = vperm.slane %v6206_v20, %v5130_v0 }
 0x4f5   : > { %v2958_v1 = vsel %vm715_vm3, %v2957_v55, %v2956_v29  ;;  %v2979_v62 = vperm.slane %v2698_v32, %v6834_v13 }
 0x4f6   : > { %2793 = vperm.xlu0 %3575, %v2282_v40  }
 0x4f8   : > { %v2668_v27 = vpop.permute.xlu0 %2667 }
 0x4f9   : > { %v2959_v37 = vperm.slane %v2668_v27, %v6862_v30 }
 0x4fb   : > { %v2960_v63 = vsel %vm719_vm4, %v2959_v37, %v2958_v1  ;;  %v2992_v37 = vperm.slane %v6215_v10, %v6863_v53 }
 0x4fc   : > { %v2962_v3 = vsel %vm723_vm5, %v2961_v50, %v2960_v63  ;;  %v2707_v38 = vpop.permute.xlu2 %2706  ;;  %v6250_v11 = vpop.permute.xlu1 %2754 }
 0x4fd   : > { %v2964_v57 = vsel %vm727_vm6, %v2963_v25, %v2962_v3  ;;  %v2984_v4 = vperm.slane %v2707_v38, %v6860_v31 }
 0x500   : > { %v2677_v41 = vpop.permute.xlu0 %2676 }
 0x501   : > { %v2965_v15 = vperm.slane %v2677_v41, %v6772_v47  ;;  %v2998_v41 = vperm.slane %v2728_v2, %v6773_v48 }
 0x503   : > { %v2966_v26 = vsel %vm731_vm7, %v2965_v15, %v2964_v57 }
 0x504   : > { %v2968_v24 = vsel %vm735_vm8, %v2967_v42, %v2966_v26  ;;  %v2716_v5 = vpop.permute.xlu2 %2715  ;;  %v2764_v1 = vpop.permute.xlu1 %2763 }
 0x505   : > { %v2970_v61 = vsel %vm739_vm9, %v2969_v23, %v2968_v24  ;;  %v2990_v54 = vperm.slane %v2716_v5, %v6862_v30 }
 0x508   : > { %v2686_v56 = vpop.permute.xlu0 %2685 }
 0x509   : > { %v2971_v17 = vperm.slane %v2686_v56, %v6775_v45  ;;  %v3004_v56 = vperm.slane %v2737_v51, %v6776_v49 }
 0x50b   : > { %v2972_v60 = vsel %vm743_vm10, %v2971_v17, %v2970_v61 }
 0x50c   : > { %v2974_v39 = vsel %vm747_vm11, %v2973_v18, %v2972_v60  ;;  %v2725_v14 = vpop.permute.xlu2 %2724  ;;  %v2773_v15 = vpop.permute.xlu1 %2772 }
 0x50d   : > { %v2976_v7 = vsel %vm6578_vm12, %v2975_v52, %v2974_v39  ;;  %v2996_v32 = vperm.slane %v2725_v14, %v6772_v47 }
 0x510   : > { %v2695_v12 = vpop.permute.xlu0 %2694 }
 0x511   : > { %v2977_v59 = vperm.slane %v2695_v12, %v6833_v35 }
 0x513   : > { %v2978_v58 = vsel %vm755_vm13, %v2977_v59, %v2976_v7 }
 0x514   : > { %v2980_v9 = vsel %vm6579_vm14, %v2979_v62, %v2978_v58  ;;  %v2734_v63 = vpop.permute.xlu2 %2733  ;;  %v2782_v2 = vpop.permute.xlu1 %2781 }
 0x515   : > { %v3002_v38 = vperm.slane %v2734_v63, %v6775_v45 }
 0x518   : > { %v2704_v36 = vpop.permute.xlu0 %2703 }
 0x519   : > { %v2982_v46 = vperm.slane %v2704_v36, %v5114_v21  ;;  %v3010_v36 = vperm.slane %v2746_v44, %v6834_v13  ;;  %v3015_v44 = vperm.slane %v6250_v11, %v6860_v31 }
 0x51b   : > { %v2983_v55 = vsel %vm703_vm0, %v2982_v46, %v2981_v43 }
 0x51c   : > { %v2985_v16 = vsel %vm707_vm1, %v2984_v4, %v2983_v55  ;;  %v2743_v26 = vpop.permute.xlu2 %2742  ;;  %v6280_v7 = vpop.permute.xlu1 %2790 }
 0x51d   : > { %v2987_v29 = vsel %vm711_vm2, %v2986_v8, %v2985_v16  ;;  %v3008_v5 = vperm.slane %v2743_v26, %v6833_v35 }
 0x520   : > { %v2713_v40 = vpop.permute.xlu0 %2712 }
 0x521   : > { %v2988_v27 = vperm.slane %v2713_v40, %v6861_v6  ;;  %v3052_v40 = vsel %vm3051_vm15, %v2980_v9, %v6212_v19  ;;  %v3021_v9 = vperm.slane %v2764_v1, %v6862_v30 }
 0x523   : > { %v2989_v50 = vsel %vm715_vm3, %v2988_v27, %v2987_v29 }
 0x524   : > { %v2991_v20 = vsel %vm719_vm4, %v2990_v54, %v2989_v50  ;;  %v2752_v39 = vpop.permute.xlu2 %2751  ;;  %v3071_v43 = vpop.xlane.xlu1 %3070 }
 0x525   : > { %v2993_v25 = vsel %vm723_vm5, %v2992_v37, %v2991_v20  ;;  %v3013_v8 = vperm.slane %v2752_v39, %v5114_v21  ;;  %v3073_v14 = vperm.slane %v3071_v43, %v6711_v22 }
 0x528   : > { %v2722_v3 = vpop.permute.xlu0 %2721 }
 0x529   : > { %v2994_v57 = vperm.slane %v2722_v3, %v6827_v34 }
 0x52b   : > { %v2995_v42 = vsel %vm727_vm6, %v2994_v57, %v2993_v25 }
 0x52c   : > { %v2997_v23 = vsel %vm731_vm7, %v2996_v32, %v2995_v42  ;;  %v2761_v51 = vpop.permute.xlu2 %2760  ;;  %v3027_v32 = vperm.slane %v2773_v15, %v6772_v47 }
 0x52d   : > { %v2999_v10 = vsel %vm735_vm8, %v2998_v41, %v2997_v23 }
 0x530   : > { %v2731_v24 = vpop.permute.xlu0 %2730 }
 0x531   : > { %v3000_v61 = vperm.slane %v2731_v24, %v6774_v33 }
 0x533   : > { %v3001_v17 = vsel %vm739_vm9, %v3000_v61, %v2999_v10 }
 0x534   : > { %v3003_v18 = vsel %vm743_vm10, %v3002_v38, %v3001_v17  ;;  %v2770_v54 = vpop.permute.xlu2 %2769 }
 0x535   : > { %v3005_v52 = vsel %vm747_vm11, %v3004_v56, %v3003_v18  ;;  %v3025_v25 = vperm.slane %v2770_v54, %v6827_v34  ;;  %v3033_v34 = vperm.slane %v2782_v2, %v6775_v45 }
 0x538   : > { %v2740_v60 = vpop.permute.xlu0 %2739 }
 0x539   : > { %v3006_v12 = vperm.slane %v2740_v60, %v6777_v28 }
 0x53b   : > { %v3007_v62 = vsel %vm6578_vm12, %v3006_v12, %v3005_v52  ;;  %vm3053_vm12 = vcmask 1046534  }
 0x53c   : > { %v3009_v58 = vsel %vm755_vm13, %v3008_v5, %v3007_v62  ;;  %v2779_v63 = vpop.permute.xlu2 %2778 }
 0x53d   : > { %v3011_v55 = vsel %vm6579_vm14, %v3010_v36, %v3009_v58  ;;  %vm3063_vm14 = vcmask 57344   ;;  %v3031_v1 = vperm.slane %v2779_v63, %v6774_v33 }
 0x53e   : > { %v6297_v27 = vsel %vm3053_vm12, %v3011_v55, %v3052_v40  ;;  %3075 = vst.msk [vmem:[%s6301_s29 + $0x1] sm:$0x1] %vm3063_vm14, %v3073_v14 }
 0x540   : > { %v2749_v59 = vpop.permute.xlu0 %2748 }
 0x541   : > { %v3012_v46 = vperm.slane %v2749_v59, %v6711_v22 }
 0x543   : > { %v3014_v16 = vsel %vm703_vm0, %v3013_v8, %v3012_v46 }
 0x544   : > { %v3016_v21 = vsel %vm707_vm1, %v3015_v44, %v3014_v16  ;;  %v2788_v47 = vpop.permute.xlu2 %2787 }
 0x545   : > { %v3037_v45 = vperm.slane %v2788_v47, %v6777_v28 }
 0x548   : > { %v2758_v4 = vpop.permute.xlu0 %2757 }
 0x549   : > { %v3017_v29 = vperm.slane %v2758_v4, %v5130_v0  ;;  %v3019_v0 = vperm.slane %v2761_v51, %v6861_v6 }
 0x54b   : > { %v3018_v37 = vsel %vm711_vm2, %v3017_v29, %v3016_v21 }
 0x54c   : > { %v3020_v31 = vsel %vm715_vm3, %v3019_v0, %v3018_v37 }
 0x54d   : > { %v3022_v11 = vsel %vm719_vm4, %v3021_v9, %v3020_v31 }
 0x550   : > { %v2767_v50 = vpop.permute.xlu0 %2766 }
 0x551   : > { %v3023_v19 = vperm.slane %v2767_v50, %v6863_v53 }
 0x553   : > { %v3024_v20 = vsel %vm723_vm5, %v3023_v19, %v3022_v11 }
 0x554   : > { %v3026_v6 = vsel %vm727_vm6, %v3025_v25, %v3024_v20 }
 0x555   : > { %v3028_v53 = vsel %vm731_vm7, %v3027_v32, %v3026_v6 }
 0x558   : > { %v2776_v3 = vpop.permute.xlu0 %2775 }
 0x559   : > { %v3029_v57 = vperm.slane %v2776_v3, %v6773_v48 }
 0x55b   : > { %v3030_v30 = vsel %vm735_vm8, %v3029_v57, %v3028_v53 }
 0x55c   : > { %v3032_v41 = vsel %vm739_vm9, %v3031_v1, %v3030_v30 }
 0x55d   : > { %v3034_v48 = vsel %vm743_vm10, %v3033_v34, %v3032_v41 }
 0x560   : > { %v2785_v42 = vpop.permute.xlu0 %2784 }
 0x561   : > { %v3035_v23 = vperm.slane %v2785_v42, %v6776_v49 }
 0x563   : > { %v3036_v33 = vsel %vm747_vm11, %v3035_v23, %v3034_v48 }
 0x564   : > { %3699 = shalt.err (!%p3696_p4)
}
 0x565   : > { %3498 = dma.vmem_to_hbm [thread:$0]  (%p3996_p11), %s3128_s25, 16, %s3130_s12, %s6333_s13   ;;  %vm6878_vm0 = vcmask 917312   ;;  %v3039_v28 = vperm.slane %v6280_v7, %v6833_v35  ;;  %vm3055_vm1 = vcmask 1047559  }
 0x566   : > { %s6876_s6 = sld [smem:[#allocation97_spill]]  ;;  %s6877_s20 = scalar_lea.vmem [#allocation9], %s4032_s26  ;;  %v3038_v49 = vsel %vm6878_vm0, %v3037_v45, %v3036_v33 }
 0x567   : > { %s3153_s1 = sshll.u32 %s6877_s20, 4  ;;  %s6879_s19 = sand.u32 1, %s3965_s9   ;;  %s3154_s1 = int_to_ptr.vmem [resolvable:$true] %s3153_s1 }
 0x568   : > { %v2794_v15 = vpop.permute.xlu0 %2793  ;;  %s6358_s25 = scalar_lea.sflag [#allocation10], %s6879_s19 }
 0x569   : > { %v3041_v10 = vperm.slane %v2794_v15, %v6834_v13 }
 0x56c   : > { %s3151_s23 = scalar_lea.hbm %s6876_s6, %s3965_s9  ;;  %s3720_s10 = scalar_lea.hbm %s6876_s6, 2 }
 0x56d   : > { %s3155_s22 = sshll.u32 %s3151_s23, 4  ;;  %s3156_s22 = int_to_ptr.hbm [resolvable:$true] %s3155_s22 }
 0x56e   : > { %s3714_s0 = sshra.s32 %s3156_s22, 4  ;;  %s3715_s0 = int_to_ptr.hbm [resolvable:$true] %s3714_s0 }
 0x56f   : > { %s3716_s14 = scalar_lea.hbm %s3715_s0, 1  ;;  %p3721_p10 = scmp.lt.s32.totalorder %s3715_s0, %s6876_s6 }
 0x570   : > { %p3717_p7 = scmp.ne.s32.totalorder %s3715_s0, %s3716_s14  ;;  %p3722_p2 = scmp.lt.s32.totalorder %s3720_s10, %s3716_s14 }
 0x572   : > { %p3718_p5 = pnand %p3717_p7, %p3996_p11  ;;  %p3723_p6 = por %p3722_p2, %p3721_p10 }
 0x574   : > { %p3719_p8 = pneg %p3718_p5 }
 0x576   : > { %p3724_p9 = pnand %p3723_p6, %p3719_p8 }
 0x578   : > { %3727 = shalt.err (!%p3724_p9)
}
 0x579   : > { %3500 = dma.vmem_to_hbm [thread:$0]  (%p3996_p11), %s3154_s1, 16, %s3156_s22, %s6358_s25   ;;  %v3040_v35 = vsel %vm755_vm13, %v3039_v28, %v3038_v49  ;;  %vm6880_vm2 = vcmask 1048512  }
 0x57a   : > { %s3468_s20 = sshll.u32 %s3965_s9, 7  ;;  %s3111_s19 = sshll.u32 %s4745_s15, 4  ;;  %v3042_v13 = vsel %vm6880_vm2, %v3041_v10, %v3040_v35  ;;  %s3112_s19 = int_to_ptr.vmem [resolvable:$true] %s3111_s19 }
 0x57b   : > { %s6881_s3 = sld [smem:[#allocation95_spill]]  ;;  %v3056_v26 = vsel %vm3055_vm1, %v3042_v13, %v6297_v27  ;;  %s3077_s10 = scalar_lea.sflag [#allocation4], %s4032_s26 }
 0x57c   : > { %3058 = vadd.xlane.f32.xlu2 %v3056_v26 }
 0x581   : > { %s3110_s14 = scalar_lea.hbm %s6881_s3, %s3468_s20  ;;  %s3748_s23 = scalar_lea.hbm %s6881_s3, 256 }
 0x582   : > { %s3113_s24 = sshll.u32 %s3110_s14, 4  ;;  %s3114_s24 = int_to_ptr.hbm [resolvable:$true] %s3113_s24 }
 0x583   : > { %s3742_s1 = sshra.s32 %s3114_s24, 4  ;;  %s3743_s1 = int_to_ptr.hbm [resolvable:$true] %s3742_s1 }
 0x584   : > { %s3744_s22 = scalar_lea.hbm %s3743_s1, 128  ;;  %p3749_p3 = scmp.lt.s32.totalorder %s3743_s1, %s6881_s3 }
 0x585   : > { %p3745_p13 = scmp.ne.s32.totalorder %s3743_s1, %s3744_s22  ;;  %p3750_p4 = scmp.lt.s32.totalorder %s3748_s23, %s3744_s22 }
 0x587   : > { %p3746_p0 = pnand %p3745_p13, %p3996_p11  ;;  %p3751_p7 = por %p3750_p4, %p3749_p3 }
 0x589   : > { %p3747_p1 = pneg %p3746_p0 }
 0x58b   : > { %p3752_p5 = pnand %p3751_p7, %p3747_p1 }
 0x58d   : > { %3755 = shalt.err (!%p3752_p5)
}
 0x58e   : > { %s3897_s0 = smov 128   ;;  %s3898_s14 = smov 8  }
 0x58f   : > { %3497 = dma.vmem_to_hbm [thread:$0]  (%p3996_p11), %s3112_s19, 2048, %s3114_s24, %s3077_s10, %s3897_s0, %s3897_s0, %s3898_s14  }
 0x590   : > { %s3138_s1 = scalar_lea.hbm %s6474_s5, %s3965_s9  ;;  %s6882_s22 = scalar_lea.vmem [#allocation8], %s4032_s26 }
 0x591   : > { %s3140_s23 = sshll.u32 %s6882_s22, 4  ;;  %s3142_s20 = sshll.u32 %s3138_s1, 4  ;;  %s3141_s23 = int_to_ptr.vmem [resolvable:$true] %s3140_s23  ;;  %s3143_s20 = int_to_ptr.hbm [resolvable:$true] %s3142_s20 }
 0x592   : > { %s3494_s12 = smul.u32 384, %s3965_s9  ;;  %s3770_s2 = sshra.s32 %s3143_s20, 4  ;;  %s3771_s2 = int_to_ptr.hbm [resolvable:$true] %s3770_s2 }
 0x593   : > { %s3772_s3 = scalar_lea.hbm %s3771_s2, 1  ;;  %s3776_s19 = scalar_lea.hbm %s6474_s5, 2 }
 0x594   : > { %p3773_p8 = scmp.ne.s32.totalorder %s3771_s2, %s3772_s3  ;;  %p3777_p6 = scmp.lt.s32.totalorder %s3771_s2, %s6474_s5 }
 0x595   : > { %p3778_p9 = scmp.lt.s32.totalorder %s3776_s19, %s3772_s3 }
 0x596   : > { %p3774_p10 = pnand %p3773_p8, %p3996_p11 }
 0x597   : > { %p3779_p13 = por %p3778_p9, %p3777_p6 }
 0x598   : > { %p3775_p2 = pneg %p3774_p10 }
 0x59a   : > { %p3780_p0 = pnand %p3779_p13, %p3775_p2 }
 0x59c   : > { %3783 = shalt.err (!%p3780_p0)
}
 0x59d   : > { %3499 = dma.vmem_to_hbm [thread:$0]  (%p3996_p11), %s3141_s23, 16, %s3143_s20, %s6333_s13  }
 0x59e   : > { %s3166_s1 = scalar_lea.hbm %s6476_s7, %s3494_s12  ;;  %s3167_s4 = sshll.u32 %s4474_s21, 4  ;;  %s3168_s4 = int_to_ptr.vmem [resolvable:$true] %s3167_s4 }
 0x59f   : > { %s3169_s6 = sshll.u32 %s3166_s1, 4  ;;  %s3804_s24 = scalar_lea.hbm %s6476_s7, 768  ;;  %s3170_s6 = int_to_ptr.hbm [resolvable:$true] %s3169_s6 }
 0x5a0   : > { %s3798_s22 = sshra.s32 %s3170_s6, 4  ;;  %s3799_s22 = int_to_ptr.hbm [resolvable:$true] %s3798_s22 }
 0x5a1   : > { %s3800_s2 = scalar_lea.hbm %s3799_s22, 384  ;;  %p3805_p7 = scmp.lt.s32.totalorder %s3799_s22, %s6476_s7 }
 0x5a2   : > { %p3801_p1 = scmp.ne.s32.totalorder %s3799_s22, %s3800_s2  ;;  %p3806_p5 = scmp.lt.s32.totalorder %s3804_s24, %s3800_s2 }
 0x5a4   : > { %p3802_p3 = pnand %p3801_p1, %p3996_p11  ;;  %p3807_p8 = por %p3806_p5, %p3805_p7 }
 0x5a6   : > { %p3803_p4 = pneg %p3802_p3 }
 0x5a8   : > { %p3808_p10 = pnand %p3807_p8, %p3803_p4 }
 0x5aa   : > { %3811 = shalt.err (!%p3808_p10)
}
 0x5ab   : > { %3501 = dma.vmem_to_hbm [thread:$0]  (%p3996_p11), %s3168_s4, 6144, %s3170_s6, %s6358_s25, %s3897_s0, %s3897_s0, %s3898_s14  }
 0x5ac   : > { %s3464_s21 = sshll.u32 %s3965_s9, 1  ;;  %s3184_s15 = sshll.u32 %s6301_s29, 4  ;;  %s3185_s15 = int_to_ptr.vmem [resolvable:$true] %s3184_s15 }
 0x5ad   : > { %s3182_s10 = scalar_lea.hbm %s6477_s8, %s3464_s21  ;;  %s3099_s1 = scalar_lea.sflag [#allocation13], %s4032_s26 }
 0x5ae   : > { %s3186_s16 = sshll.u32 %s3182_s10, 4  ;;  %s3832_s0 = scalar_lea.hbm %s6477_s8, 4  ;;  %s3187_s16 = int_to_ptr.hbm [resolvable:$true] %s3186_s16 }
 0x5af   : > { %s3826_s22 = sshra.s32 %s3187_s16, 4  ;;  %s3827_s22 = int_to_ptr.hbm [resolvable:$true] %s3826_s22 }
 0x5b0   : > { %s3828_s2 = scalar_lea.hbm %s3827_s22, 2  ;;  %p3833_p13 = scmp.lt.s32.totalorder %s3827_s22, %s6477_s8 }
 0x5b1   : > { %p3829_p2 = scmp.ne.s32.totalorder %s3827_s22, %s3828_s2  ;;  %p3834_p0 = scmp.lt.s32.totalorder %s3832_s0, %s3828_s2 }
 0x5b3   : > { %p3830_p6 = pnand %p3829_p2, %p3996_p11  ;;  %p3835_p1 = por %p3834_p0, %p3833_p13 }
 0x5b5   : > { %p3831_p9 = pneg %p3830_p6 }
 0x5b7   : > { %p3836_p3 = pnand %p3835_p1, %p3831_p9 }
 0x5ef   : > { %v3059_v24 = vpop.xlane.xlu2 %3058 }
 0x5f0   : > { %v3061_v61 = vperm.slane %v3059_v24, %v6711_v22 }
 0x5f2   : > { %3064 = vst.msk [vmem:[%s6301_s29] sm:$0x1] %vm3063_vm14, %v3061_v61 }
 0x5f3   : > { %3839 = shalt.err (!%p3836_p3)
}
 0x5f4   : > { %3502 = dma.vmem_to_hbm [thread:$0]  (%p3996_p11), %s3185_s15, 32, %s3187_s16, %s3099_s1  }
 0x5f5 PF: > { %s3198_s26 = sand.u32 1, %s3878_s27   ;;  %p6883_p4 = scmp.ge.s32.totalorder %s3890_s30, 2 }
 0x5f6   : > { %s3199_s29 = scalar_lea.sflag [#allocation4], %s3198_s26 }
 0x5f7   : > { %p3514_p7 = pnand %p6883_p4, %p4000_p12 }
 0x5f9   : > { %p3515_p5 = pneg %p3514_p7 }
 0x5fb   : > { %3861 = dma.done.wait (%p3515_p5), %s3199_s29, 2048  }
 0x5fc   : > { %3863 = vsyncadd (%p3515_p5), %s3199_s29, 4294965248  ;;  %s6884_s6 = sadd.s32 4294967294, %s3890_s30  }
 0x5fd   : > { %s3208_s3 = sand.u32 1, %s6884_s6  }
 0x5fe   : > { %s3209_s19 = scalar_lea.sflag [#allocation7], %s3208_s3 }
 0x5ff   : > { %3865 = dma.done.wait (%p3515_p5), %s3209_s19, 32  }
 0x600   : > { %3867 = vsyncadd (%p3515_p5), %s3209_s19, 4294967264  ;;  %s3227_s17 = scalar_lea.sflag [#allocation10], %s3208_s3 }
 0x601   : > { %3869 = dma.done.wait (%p3515_p5), %s3227_s17, 6160  }
 0x602   : > { %3871 = vsyncadd (%p3515_p5), %s3227_s17, 4294961136  ;;  %s3246_s24 = scalar_lea.sflag [#allocation13], %s3198_s26 }
 0x603   : > { %3873 = dma.done.wait (%p3515_p5), %s3246_s24, 32  }
 0x604   : > { %3875 = vsyncadd (%p3515_p5), %s3246_s24, 4294967264  ;;  %s6885_s18 = sld [smem:[#allocation19_spill]]  ;;  %p31_p11 = scmp.ge.s32.totalorder %s3969_s11, 4  }
 0x605   : > { %s6886_s29 = sld [smem:[#allocation20_spill]]  ;;  %s6887_s27 = smov %s3882_s28 }
 0x606   : > { %s6889_s30 = smov %s3969_s11  ;;  %33 = sbr.rel (!%p31_p11) target bundleno = 18 (0x12), region = 160 }
 0x60a   : > { %s6888_s28 = smov %s6885_s18 }
 0x60b   :  { %3252 = vsyncpa [#allocation3], 1 }
 0x60c   :  { %3254 = vsyncpa [#allocation3 + $0x1], 1 }
 0x60d   :  { %3255 = vsyncpa [#allocation4], 1 }
 0x60e   :  { %3257 = vsyncpa [#allocation4 + $0x1], 1 }
 0x60f   :  { %3258 = vsyncpa [#allocation7], 1 }
 0x610   :  { %3260 = vsyncpa [#allocation7 + $0x1], 1 }
 0x611   :  { %3261 = vsyncpa [#allocation10], 1 }
 0x612   :  { %3263 = vsyncpa [#allocation10 + $0x1], 1 }
 0x613   :  { %3264 = vsyncpa [#allocation13], 1 }
 0x614   :  { %3266 = vsyncpa [#allocation13 + $0x1], 1 }

</bundles_post_ra>
